<compile_context>
chip_gen: v7x
topology: tpu7x:2x2x1
jax: 0.10.0
libtpu: 0.0.40
codegen_flags: <defaults>
</compile_context>

<pallas_src>
import numpy as np
import jax
import jax.numpy as jnp
from jax import lax
from jax.experimental import pallas as pl
from jax.experimental.pallas import tpu as pltpu


# ----------------------------- static geometry ------------------------------
def _geom(H, W):
    Hp, Wp = H + 2, W + 2
    Fp = Hp * Wp                 # zero-padded flat length
    L = (H - 1) * Wp + W         # conv "computed window" length
    return Hp, Wp, Fp, L


_G1 = _geom(48, 32)   # stage 1: Cin=1,  Cout=4
_G2 = _geom(24, 16)   # stage 2: Cin=4,  Cout=8
_G3 = _geom(12, 8)    # stage 3: Cin=8,  Cout=16
_G4 = _geom(6, 4)     # stage 4: Cin=16, Cout=32

_FP1_PAD = 1792       # Fp1 = 1700 padded to a multiple of 128 lanes
_NOUT = 21
_OUTP = 128           # lane-dense padded output width


# ------------------------------ kernel helpers -------------------------------
def _conv_stage(x, xs_ref, w_ref, b_ref, Wp, L, cin):
    """3x3 'same' conv + tanh on a zero-padded flat activation.

    x      : (Cin, Fp)     value, zero-padded flat layout with row stride Wp
    xs_ref : (9*Cin, L)    VMEM scratch for the stacked shifted slices
    w_ref  : (Cout, 9*Cin) pre-stacked taps
    b_ref  : (Cout, 1)
    returns (Cout, L) value (junk columns where w >= W are finite garbage,
    masked later by zero rows/columns of the selection / linear matrices).
    """
    for t in range(9):
        dy, dx = t // 3, t % 3
        off = dy * Wp + dx
        xs_ref[t * cin:(t + 1) * cin, :] = x[:, off:off + L]
    y = jnp.dot(w_ref[...], xs_ref[...], preferred_element_type=jnp.float32)
    return jnp.tanh(y + b_ref[...])


def _pool_stage(y, s_ref, Wp):
    """2x2/2 max-pool of the (Cout, L) conv output, scattered by one selection
    matmul straight into the next stage's zero-padded flat layout."""
    L = y.shape[1]
    Lh = L - 1
    K = Lh - Wp                                             # == s_ref.shape[0]
    hm = jnp.maximum(y[:, 0:Lh], y[:, 1:1 + Lh])            # horizontal max
    vm = jnp.maximum(hm[:, 0:K], hm[:, Wp:Wp + K])          # vertical max
    return jnp.dot(vm, s_ref[...], preferred_element_type=jnp.float32)


def _fused_cnn_kernel(x_ref, w1, b1, w2, b2, w3, b3, w4, b4,
                      s1, s2, s3, wlw, msk, gsum, bl, out_ref,
                      xs1, xs2, xs3, xs4):
    Wp1, L1 = _G1[1], _G1[3]
    Wp2, L2 = _G2[1], _G2[3]
    Wp3, L3 = _G3[1], _G3[3]
    Wp4, L4 = _G4[1], _G4[3]

    x1 = x_ref[0]                                        # (1, 1792)
    y1 = _conv_stage(x1, xs1, w1, b1, Wp1, L1, 1)        # (4, L1)
    x2 = _pool_stage(y1, s1, Wp1)                        # (4, Fp2)
    y2 = _conv_stage(x2, xs2, w2, b2, Wp2, L2, 4)        # (8, L2)
    x3 = _pool_stage(y2, s2, Wp2)                        # (8, Fp3)
    y3 = _conv_stage(x3, xs3, w3, b3, Wp3, L3, 8)        # (16, L3)
    x4 = _pool_stage(y3, s3, Wp3)                        # (16, Fp4)
    y4 = _conv_stage(x4, xs4, w4, b4, Wp4, L4, 16)       # (32, 34)

    # TODO(synk): nn.Dropout(0.1) is identity at inference; not applied here.

    # Flatten + Linear without any per-channel store loop:
    #   out[o] = sum_c sum_i y4[c,i] * WL[c,i,o]
    #   out2[c, c'*21+o] = sum_i y4[c,i] * WL[c',i,o]     (one matmul, K=34)
    #   mask keeps c' == c, ones-matmul sums the channels,
    #   gsum folds the 32 channel blocks onto the 21 (pad 128) output lanes.
    out2 = jnp.dot(y4, wlw[...], preferred_element_type=jnp.float32)   # (32, 672)
    prod = out2 * msk[...]                                             # (32, 672)
    ones = jnp.ones((1, 32), jnp.float32)
    colsum = jnp.dot(ones, prod, preferred_element_type=jnp.float32)   # (1, 672)
    out = jnp.dot(colsum, gsum[...], preferred_element_type=jnp.float32)  # (1, 128)
    out_ref[0] = out + bl[...]


# ------------------------------ param prep (hoisted) -------------------------
def prepare_params(p):
    """One-time re-layout of torch-convention params into kernel-ready constants."""

    def taps(w):   # (Cout, Cin, 3, 3) -> (Cout, 9*Cin), column = (3*dy+dx)*Cin + ci
        co, ci = int(w.shape[0]), int(w.shape[1])
        return jnp.transpose(w, (0, 2, 3, 1)).reshape(co, 9 * ci)

    def pool_sel(H, W):
        # (L-1-Wp, Fp_next) 0/1 matrix: picks stride-2 max positions and
        # scatters them into the next stage's zero-padded flat layout
        # (zero columns give the padding border for free).
        Wp = W + 2
        Wpn = W // 2 + 2
        Fpn = (H // 2 + 2) * Wpn
        K = (H - 1) * Wp + W - 1 - Wp
        s = np.zeros((K, Fpn), np.float32)
        for hp in range(H // 2):
            for wp in range(W // 2):
                s[2 * hp * Wp + 2 * wp, (hp + 1) * Wpn + (wp + 1)] = 1.0
        return jnp.asarray(s)

    L4, Wp4 = _G4[3], _G4[1]
    # Linear weight: torch flat index is c*24 + hh*4 + ww; kernel position
    # index is i = hh*Wp4 + ww (junk columns ww in {4,5} get zero rows).
    wo = np.asarray(p["wo"]).reshape(_NOUT, 32, 6, 4)      # (o, c, h, w)
    wlw = np.zeros((L4, 32 * _NOUT), np.float32)
    msk = np.zeros((32, 32 * _NOUT), np.float32)
    gsum = np.zeros((32 * _NOUT, _OUTP), np.float32)
    for c in range(32):
        msk[c, c * _NOUT:(c + 1) * _NOUT] = 1.0
        gsum[c * _NOUT:(c + 1) * _NOUT, :_NOUT] = np.eye(_NOUT, dtype=np.float32)
        for hh in range(6):
            for ww in range(4):
                wlw[hh * Wp4 + ww, c * _NOUT:(c + 1) * _NOUT] = wo[:, c, hh, ww]
    bl = np.zeros((1, _OUTP), np.float32)
    bl[0, :_NOUT] = np.asarray(p["bo"])

    return {
        "w1": taps(p["w1"]), "b1": p["b1"].reshape(4, 1),
        "w2": taps(p["w2"]), "b2": p["b2"].reshape(8, 1),
        "w3": taps(p["w3"]), "b3": p["b3"].reshape(16, 1),
        "w4": taps(p["w4"]), "b4": p["b4"].reshape(32, 1),
        "s1": pool_sel(48, 32), "s2": pool_sel(24, 16), "s3": pool_sel(12, 8),
        "wlw": jnp.asarray(wlw), "msk": jnp.asarray(msk),
        "gsum": jnp.asarray(gsum), "bl": jnp.asarray(bl),
    }


# ------------------------------- full forward --------------------------------
@jax.jit
def cnn_forward(x_nchw, kp):
    N = x_nchw.shape[0]
    Fp1 = _G1[2]

    # Host prep: zero-pad the image border, flatten spatially, lane-pad to 1792.
    xflat = jnp.pad(x_nchw, ((0, 0), (0, 0), (1, 1), (1, 1))).reshape(N, 1, Fp1)
    xflat = jnp.pad(xflat, ((0, 0), (0, 0), (0, _FP1_PAD - Fp1)))

    def cspec(arr):
        nd = arr.ndim
        return pl.BlockSpec(arr.shape, lambda n, _nd=nd: (0,) * _nd)

    keys = ("w1", "b1", "w2", "b2", "w3", "b3", "w4", "b4",
            "s1", "s2", "s3", "wlw", "msk", "gsum", "bl")
    consts = [kp[k] for k in keys]

    out = pl.pallas_call(
        _fused_cnn_kernel,
        out_shape=jax.ShapeDtypeStruct((N, 1, _OUTP), jnp.float32),
        grid=(N,),
        in_specs=[pl.BlockSpec((1, 1, _FP1_PAD), lambda n: (n, 0, 0))]
                 + [cspec(c) for c in consts],
        out_specs=pl.BlockSpec((1, 1, _OUTP), lambda n: (n, 0, 0)),
        scratch_shapes=[
            pltpu.VMEM((9, _G1[3]), jnp.float32),     # xs1: stacked taps, stage 1
            pltpu.VMEM((36, _G2[3]), jnp.float32),    # xs2
            pltpu.VMEM((72, _G3[3]), jnp.float32),    # xs3
            pltpu.VMEM((144, _G4[3]), jnp.float32),   # xs4
        ],
        compiler_params=pltpu.CompilerParams(
            dimension_semantics=("parallel",)),
    )(xflat, *consts)
    return out[:, 0, :_NOUT]


# --------------------------- params / reference ------------------------------
def init_params(key):
    ks = jax.random.split(key, 10)

    def conv_w(k, co, ci):
        fan_in = ci * 9
        return jax.random.normal(k, (co, ci, 3, 3), jnp.float32) / jnp.sqrt(fan_in)

    return {
        "w1": conv_w(ks[0], 4, 1),   "b1": 0.01 * jax.random.normal(ks[1], (4,), jnp.float32),
        "w2": conv_w(ks[2], 8, 4),   "b2": 0.01 * jax.random.normal(ks[3], (8,), jnp.float32),
        "w3": conv_w(ks[4], 16, 8),  "b3": 0.01 * jax.random.normal(ks[5], (16,), jnp.float32),
        "w4": conv_w(ks[6], 32, 16), "b4": 0.01 * jax.random.normal(ks[7], (32,), jnp.float32),
        "wo": jax.random.normal(ks[8], (21, 768), jnp.float32) / jnp.sqrt(768.0),
        "bo": 0.01 * jax.random.normal(ks[9], (21,), jnp.float32),
    }


def ref_forward(x_nchw, p):
    """Pure-JAX reference matching the PyTorch semantics (inference mode)."""
    def conv(x, w, b):
        y = lax.conv_general_dilated(x, w, (1, 1), ((1, 1), (1, 1)),
                                     dimension_numbers=("NCHW", "OIHW", "NCHW"))
        return jnp.tanh(y + b[None, :, None, None])

    def pool(x):
        return lax.reduce_window(x, -jnp.inf, lax.max,
                                 (1, 1, 2, 2), (1, 1, 2, 2), "VALID")

    x = pool(conv(x_nchw, p["w1"], p["b1"]))
    x = pool(conv(x, p["w2"], p["b2"]))
    x = pool(conv(x, p["w3"], p["b3"]))
    x = conv(x, p["w4"], p["b4"])
    x = x.reshape(x.shape[0], -1)
    return x @ p["wo"].T + p["bo"]


if __name__ == "__main__":
    key = jax.random.PRNGKey(0)
    kx, kparam = jax.random.split(key)
    x = jax.random.normal(kx, (2, 1, 48, 32), jnp.float32)   # NCHW, like PyTorch
    params = init_params(kparam)
    kparams = prepare_params(params)          # one-time weight re-layout (hoisted)

    out = jax.block_until_ready(cnn_forward(x, kparams))
    assert out.shape == (2, 21), out.shape

    ref = jax.block_until_ready(ref_forward(x, params))
    assert jnp.allclose(out, ref, rtol=1e-3, atol=1e-3), \
        float(jnp.max(jnp.abs(out - ref)))

    print("KERNEL_OK")
</pallas_src>

<mosaic_0001>
module attributes {stable_mosaic.version = 11 : i64} {
  func.func @_fused_cnn_kernel(%arg0: i32, %arg1: memref<1x1x1792xf32, #tpu.memory_space<vmem>>, %arg2: memref<4x9xf32, #tpu.memory_space<vmem>>, %arg3: memref<4x1xf32, #tpu.memory_space<vmem>>, %arg4: memref<8x36xf32, #tpu.memory_space<vmem>>, %arg5: memref<8x1xf32, #tpu.memory_space<vmem>>, %arg6: memref<16x72xf32, #tpu.memory_space<vmem>>, %arg7: memref<16x1xf32, #tpu.memory_space<vmem>>, %arg8: memref<32x144xf32, #tpu.memory_space<vmem>>, %arg9: memref<32x1xf32, #tpu.memory_space<vmem>>, %arg10: memref<1595x468xf32, #tpu.memory_space<vmem>>, %arg11: memref<411x140xf32, #tpu.memory_space<vmem>>, %arg12: memref<107x48xf32, #tpu.memory_space<vmem>>, %arg13: memref<34x672xf32, #tpu.memory_space<vmem>>, %arg14: memref<32x672xf32, #tpu.memory_space<vmem>>, %arg15: memref<672x128xf32, #tpu.memory_space<vmem>>, %arg16: memref<1x128xf32, #tpu.memory_space<vmem>>, %arg17: memref<1x1x128xf32, #tpu.memory_space<vmem>>, %arg18: memref<9x1630xf32, #tpu.memory_space<vmem>>, %arg19: memref<36x430xf32, #tpu.memory_space<vmem>>, %arg20: memref<72x118xf32, #tpu.memory_space<vmem>>, %arg21: memref<144x34xf32, #tpu.memory_space<vmem>>) attributes {dimension_semantics = [#tpu.dimension_semantics<parallel>], iteration_bounds = array<i64: 2>, scalar_prefetch = 0 : i64, scratch_operands = 4 : i64, tpu.core_type = #tpu.core_type<tc>, window_params = [{transform_indices = @transform_0, window_bounds = array<i64: 1, 1, 1792>}, {pipeline_mode = #tpu.pipeline_mode<synchronous>, transform_indices = @transform_1, window_bounds = array<i64: 4, 9>}, {pipeline_mode = #tpu.pipeline_mode<synchronous>, transform_indices = @transform_2, window_bounds = array<i64: 4, 1>}, {pipeline_mode = #tpu.pipeline_mode<synchronous>, transform_indices = @transform_3, window_bounds = array<i64: 8, 36>}, {pipeline_mode = #tpu.pipeline_mode<synchronous>, transform_indices = @transform_4, window_bounds = array<i64: 8, 1>}, {pipeline_mode = #tpu.pipeline_mode<synchronous>, transform_indices = @transform_5, window_bounds = array<i64: 16, 72>}, {pipeline_mode = #tpu.pipeline_mode<synchronous>, transform_indices = @transform_6, window_bounds = array<i64: 16, 1>}, {pipeline_mode = #tpu.pipeline_mode<synchronous>, transform_indices = @transform_7, window_bounds = array<i64: 32, 144>}, {pipeline_mode = #tpu.pipeline_mode<synchronous>, transform_indices = @transform_8, window_bounds = array<i64: 32, 1>}, {pipeline_mode = #tpu.pipeline_mode<synchronous>, transform_indices = @transform_9, window_bounds = array<i64: 1595, 468>}, {pipeline_mode = #tpu.pipeline_mode<synchronous>, transform_indices = @transform_10, window_bounds = array<i64: 411, 140>}, {pipeline_mode = #tpu.pipeline_mode<synchronous>, transform_indices = @transform_11, window_bounds = array<i64: 107, 48>}, {pipeline_mode = #tpu.pipeline_mode<synchronous>, transform_indices = @transform_12, window_bounds = array<i64: 34, 672>}, {pipeline_mode = #tpu.pipeline_mode<synchronous>, transform_indices = @transform_13, window_bounds = array<i64: 32, 672>}, {pipeline_mode = #tpu.pipeline_mode<synchronous>, transform_indices = @transform_14, window_bounds = array<i64: 672, 128>}, {pipeline_mode = #tpu.pipeline_mode<synchronous>, transform_indices = @transform_15, window_bounds = array<i64: 1, 128>}, {transform_indices = @transform_16, window_bounds = array<i64: 1, 1, 128>}]} {
    %c0 = arith.constant 0 : index
    %c0_0 = arith.constant 0 : index
    %c0_1 = arith.constant 0 : index
    %0 = vector.load %arg1[%c0, %c0_0, %c0_1] : memref<1x1x1792xf32, #tpu.memory_space<vmem>>, vector<1x1x1792xf32>
    %1 = vector.shape_cast %0 : vector<1x1x1792xf32> to vector<1x1792xf32>
    %2 = vector.extract_strided_slice %1 {offsets = [0, 0], sizes = [1, 1630], strides = [1, 1]} : vector<1x1792xf32> to vector<1x1630xf32>
    %c0_2 = arith.constant 0 : index
    %c0_3 = arith.constant 0 : index
    %3 = vector.load %arg18[%c0_2, %c0_3] : memref<9x1630xf32, #tpu.memory_space<vmem>>, vector<1x1630xf32>
    tpu.vector_store %arg18[%c0_2, %c0_3], %2 {strides = array<i32>} : memref<9x1630xf32, #tpu.memory_space<vmem>>, vector<1x1630xf32>,
    %4 = vector.extract_strided_slice %1 {offsets = [0, 1], sizes = [1, 1630], strides = [1, 1]} : vector<1x1792xf32> to vector<1x1630xf32>
    %c1 = arith.constant 1 : index
    %c0_4 = arith.constant 0 : index
    %5 = vector.load %arg18[%c1, %c0_4] : memref<9x1630xf32, #tpu.memory_space<vmem>>, vector<1x1630xf32>
    tpu.vector_store %arg18[%c1, %c0_4], %4 {strides = array<i32>} : memref<9x1630xf32, #tpu.memory_space<vmem>>, vector<1x1630xf32>,
    %6 = vector.extract_strided_slice %1 {offsets = [0, 2], sizes = [1, 1630], strides = [1, 1]} : vector<1x1792xf32> to vector<1x1630xf32>
    %c2 = arith.constant 2 : index
    %c0_5 = arith.constant 0 : index
    %7 = vector.load %arg18[%c2, %c0_5] : memref<9x1630xf32, #tpu.memory_space<vmem>>, vector<1x1630xf32>
    tpu.vector_store %arg18[%c2, %c0_5], %6 {strides = array<i32>} : memref<9x1630xf32, #tpu.memory_space<vmem>>, vector<1x1630xf32>,
    %8 = vector.extract_strided_slice %1 {offsets = [0, 34], sizes = [1, 1630], strides = [1, 1]} : vector<1x1792xf32> to vector<1x1630xf32>
    %c3 = arith.constant 3 : index
    %c0_6 = arith.constant 0 : index
    %9 = vector.load %arg18[%c3, %c0_6] : memref<9x1630xf32, #tpu.memory_space<vmem>>, vector<1x1630xf32>
    tpu.vector_store %arg18[%c3, %c0_6], %8 {strides = array<i32>} : memref<9x1630xf32, #tpu.memory_space<vmem>>, vector<1x1630xf32>,
    %10 = vector.extract_strided_slice %1 {offsets = [0, 35], sizes = [1, 1630], strides = [1, 1]} : vector<1x1792xf32> to vector<1x1630xf32>
    %c4 = arith.constant 4 : index
    %c0_7 = arith.constant 0 : index
    %11 = vector.load %arg18[%c4, %c0_7] : memref<9x1630xf32, #tpu.memory_space<vmem>>, vector<1x1630xf32>
    tpu.vector_store %arg18[%c4, %c0_7], %10 {strides = array<i32>} : memref<9x1630xf32, #tpu.memory_space<vmem>>, vector<1x1630xf32>,
    %12 = vector.extract_strided_slice %1 {offsets = [0, 36], sizes = [1, 1630], strides = [1, 1]} : vector<1x1792xf32> to vector<1x1630xf32>
    %c5 = arith.constant 5 : index
    %c0_8 = arith.constant 0 : index
    %13 = vector.load %arg18[%c5, %c0_8] : memref<9x1630xf32, #tpu.memory_space<vmem>>, vector<1x1630xf32>
    tpu.vector_store %arg18[%c5, %c0_8], %12 {strides = array<i32>} : memref<9x1630xf32, #tpu.memory_space<vmem>>, vector<1x1630xf32>,
    %14 = vector.extract_strided_slice %1 {offsets = [0, 68], sizes = [1, 1630], strides = [1, 1]} : vector<1x1792xf32> to vector<1x1630xf32>
    %c6 = arith.constant 6 : index
    %c0_9 = arith.constant 0 : index
    %15 = vector.load %arg18[%c6, %c0_9] : memref<9x1630xf32, #tpu.memory_space<vmem>>, vector<1x1630xf32>
    tpu.vector_store %arg18[%c6, %c0_9], %14 {strides = array<i32>} : memref<9x1630xf32, #tpu.memory_space<vmem>>, vector<1x1630xf32>,
    %16 = vector.extract_strided_slice %1 {offsets = [0, 69], sizes = [1, 1630], strides = [1, 1]} : vector<1x1792xf32> to vector<1x1630xf32>
    %c7 = arith.constant 7 : index
    %c0_10 = arith.constant 0 : index
    %17 = vector.load %arg18[%c7, %c0_10] : memref<9x1630xf32, #tpu.memory_space<vmem>>, vector<1x1630xf32>
    tpu.vector_store %arg18[%c7, %c0_10], %16 {strides = array<i32>} : memref<9x1630xf32, #tpu.memory_space<vmem>>, vector<1x1630xf32>,
    %18 = vector.extract_strided_slice %1 {offsets = [0, 70], sizes = [1, 1630], strides = [1, 1]} : vector<1x1792xf32> to vector<1x1630xf32>
    %c8 = arith.constant 8 : index
    %c0_11 = arith.constant 0 : index
    %19 = vector.load %arg18[%c8, %c0_11] : memref<9x1630xf32, #tpu.memory_space<vmem>>, vector<1x1630xf32>
    tpu.vector_store %arg18[%c8, %c0_11], %18 {strides = array<i32>} : memref<9x1630xf32, #tpu.memory_space<vmem>>, vector<1x1630xf32>,
    %c0_12 = arith.constant 0 : index
    %c0_13 = arith.constant 0 : index
    %20 = vector.load %arg2[%c0_12, %c0_13] : memref<4x9xf32, #tpu.memory_space<vmem>>, vector<4x9xf32>
    %c0_14 = arith.constant 0 : index
    %c0_15 = arith.constant 0 : index
    %21 = vector.load %arg18[%c0_14, %c0_15] : memref<9x1630xf32, #tpu.memory_space<vmem>>, vector<9x1630xf32>
    %cst = arith.constant dense<0.000000e+00> : vector<4x1630xf32>
    %22 = tpu.matmul %20, %21, %cst {dimension_numbers = #tpu.dot_dimension_numbers<[1], [0], [0], [1], [0, 0, 1, 1], [], []>} : vector<4x9xf32>, vector<9x1630xf32>, vector<4x1630xf32> -> vector<4x1630xf32>
    %c0_16 = arith.constant 0 : index
    %c0_17 = arith.constant 0 : index
    %23 = vector.load %arg3[%c0_16, %c0_17] : memref<4x1xf32, #tpu.memory_space<vmem>>, vector<4x1xf32>
    %24 = vector.broadcast %23 : vector<4x1xf32> to vector<4x1630xf32>
    %25 = arith.addf %22, %24 : vector<4x1630xf32>
    %26 = math.tanh %25 : vector<4x1630xf32>
    %27 = vector.extract_strided_slice %26 {offsets = [0, 0], sizes = [4, 1629], strides = [1, 1]} : vector<4x1630xf32> to vector<4x1629xf32>
    %28 = vector.extract_strided_slice %26 {offsets = [0, 1], sizes = [4, 1629], strides = [1, 1]} : vector<4x1630xf32> to vector<4x1629xf32>
    %29 = arith.maximumf %27, %28 : vector<4x1629xf32>
    %30 = vector.extract_strided_slice %29 {offsets = [0, 0], sizes = [4, 1595], strides = [1, 1]} : vector<4x1629xf32> to vector<4x1595xf32>
    %31 = vector.extract_strided_slice %29 {offsets = [0, 34], sizes = [4, 1595], strides = [1, 1]} : vector<4x1629xf32> to vector<4x1595xf32>
    %32 = arith.maximumf %30, %31 : vector<4x1595xf32>
    %c0_18 = arith.constant 0 : index
    %c0_19 = arith.constant 0 : index
    %33 = vector.load %arg10[%c0_18, %c0_19] : memref<1595x468xf32, #tpu.memory_space<vmem>>, vector<1595x468xf32>
    %cst_20 = arith.constant dense<0.000000e+00> : vector<4x468xf32>
    %34 = tpu.matmul %32, %33, %cst_20 {dimension_numbers = #tpu.dot_dimension_numbers<[1], [0], [0], [1], [0, 0, 1, 1], [], []>} : vector<4x1595xf32>, vector<1595x468xf32>, vector<4x468xf32> -> vector<4x468xf32>
    %35 = vector.extract_strided_slice %34 {offsets = [0, 0], sizes = [4, 430], strides = [1, 1]} : vector<4x468xf32> to vector<4x430xf32>
    %c0_21 = arith.constant 0 : index
    %c0_22 = arith.constant 0 : index
    %36 = vector.load %arg19[%c0_21, %c0_22] : memref<36x430xf32, #tpu.memory_space<vmem>>, vector<4x430xf32>
    tpu.vector_store %arg19[%c0_21, %c0_22], %35 {strides = array<i32>} : memref<36x430xf32, #tpu.memory_space<vmem>>, vector<4x430xf32>,
    %37 = vector.extract_strided_slice %34 {offsets = [0, 1], sizes = [4, 430], strides = [1, 1]} : vector<4x468xf32> to vector<4x430xf32>
    %c4_23 = arith.constant 4 : index
    %c0_24 = arith.constant 0 : index
    %38 = vector.load %arg19[%c4_23, %c0_24] : memref<36x430xf32, #tpu.memory_space<vmem>>, vector<4x430xf32>
    tpu.vector_store %arg19[%c4_23, %c0_24], %37 {strides = array<i32>} : memref<36x430xf32, #tpu.memory_space<vmem>>, vector<4x430xf32>,
    %39 = vector.extract_strided_slice %34 {offsets = [0, 2], sizes = [4, 430], strides = [1, 1]} : vector<4x468xf32> to vector<4x430xf32>
    %c8_25 = arith.constant 8 : index
    %c0_26 = arith.constant 0 : index
    %40 = vector.load %arg19[%c8_25, %c0_26] : memref<36x430xf32, #tpu.memory_space<vmem>>, vector<4x430xf32>
    tpu.vector_store %arg19[%c8_25, %c0_26], %39 {strides = array<i32>} : memref<36x430xf32, #tpu.memory_space<vmem>>, vector<4x430xf32>,
    %41 = vector.extract_strided_slice %34 {offsets = [0, 18], sizes = [4, 430], strides = [1, 1]} : vector<4x468xf32> to vector<4x430xf32>
    %c12 = arith.constant 12 : index
    %c0_27 = arith.constant 0 : index
    %42 = vector.load %arg19[%c12, %c0_27] : memref<36x430xf32, #tpu.memory_space<vmem>>, vector<4x430xf32>
    tpu.vector_store %arg19[%c12, %c0_27], %41 {strides = array<i32>} : memref<36x430xf32, #tpu.memory_space<vmem>>, vector<4x430xf32>,
    %43 = vector.extract_strided_slice %34 {offsets = [0, 19], sizes = [4, 430], strides = [1, 1]} : vector<4x468xf32> to vector<4x430xf32>
    %c16 = arith.constant 16 : index
    %c0_28 = arith.constant 0 : index
    %44 = vector.load %arg19[%c16, %c0_28] : memref<36x430xf32, #tpu.memory_space<vmem>>, vector<4x430xf32>
    tpu.vector_store %arg19[%c16, %c0_28], %43 {strides = array<i32>} : memref<36x430xf32, #tpu.memory_space<vmem>>, vector<4x430xf32>,
    %45 = vector.extract_strided_slice %34 {offsets = [0, 20], sizes = [4, 430], strides = [1, 1]} : vector<4x468xf32> to vector<4x430xf32>
    %c20 = arith.constant 20 : index
    %c0_29 = arith.constant 0 : index
    %46 = vector.load %arg19[%c20, %c0_29] : memref<36x430xf32, #tpu.memory_space<vmem>>, vector<4x430xf32>
    tpu.vector_store %arg19[%c20, %c0_29], %45 {strides = array<i32>} : memref<36x430xf32, #tpu.memory_space<vmem>>, vector<4x430xf32>,
    %47 = vector.extract_strided_slice %34 {offsets = [0, 36], sizes = [4, 430], strides = [1, 1]} : vector<4x468xf32> to vector<4x430xf32>
    %c24 = arith.constant 24 : index
    %c0_30 = arith.constant 0 : index
    %48 = vector.load %arg19[%c24, %c0_30] : memref<36x430xf32, #tpu.memory_space<vmem>>, vector<4x430xf32>
    tpu.vector_store %arg19[%c24, %c0_30], %47 {strides = array<i32>} : memref<36x430xf32, #tpu.memory_space<vmem>>, vector<4x430xf32>,
    %49 = vector.extract_strided_slice %34 {offsets = [0, 37], sizes = [4, 430], strides = [1, 1]} : vector<4x468xf32> to vector<4x430xf32>
    %c28 = arith.constant 28 : index
    %c0_31 = arith.constant 0 : index
    %50 = vector.load %arg19[%c28, %c0_31] : memref<36x430xf32, #tpu.memory_space<vmem>>, vector<4x430xf32>
    tpu.vector_store %arg19[%c28, %c0_31], %49 {strides = array<i32>} : memref<36x430xf32, #tpu.memory_space<vmem>>, vector<4x430xf32>,
    %51 = vector.extract_strided_slice %34 {offsets = [0, 38], sizes = [4, 430], strides = [1, 1]} : vector<4x468xf32> to vector<4x430xf32>
    %c32 = arith.constant 32 : index
    %c0_32 = arith.constant 0 : index
    %52 = vector.load %arg19[%c32, %c0_32] : memref<36x430xf32, #tpu.memory_space<vmem>>, vector<4x430xf32>
    tpu.vector_store %arg19[%c32, %c0_32], %51 {strides = array<i32>} : memref<36x430xf32, #tpu.memory_space<vmem>>, vector<4x430xf32>,
    %c0_33 = arith.constant 0 : index
    %c0_34 = arith.constant 0 : index
    %53 = vector.load %arg4[%c0_33, %c0_34] : memref<8x36xf32, #tpu.memory_space<vmem>>, vector<8x36xf32>
    %c0_35 = arith.constant 0 : index
    %c0_36 = arith.constant 0 : index
    %54 = vector.load %arg19[%c0_35, %c0_36] : memref<36x430xf32, #tpu.memory_space<vmem>>, vector<36x430xf32>
    %cst_37 = arith.constant dense<0.000000e+00> : vector<8x430xf32>
    %55 = tpu.matmul %53, %54, %cst_37 {dimension_numbers = #tpu.dot_dimension_numbers<[1], [0], [0], [1], [0, 0, 1, 1], [], []>} : vector<8x36xf32>, vector<36x430xf32>, vector<8x430xf32> -> vector<8x430xf32>
    %c0_38 = arith.constant 0 : index
    %c0_39 = arith.constant 0 : index
    %56 = vector.load %arg5[%c0_38, %c0_39] : memref<8x1xf32, #tpu.memory_space<vmem>>, vector<8x1xf32>
    %57 = vector.broadcast %56 : vector<8x1xf32> to vector<8x430xf32>
    %58 = arith.addf %55, %57 : vector<8x430xf32>
    %59 = math.tanh %58 : vector<8x430xf32>
    %60 = vector.extract_strided_slice %59 {offsets = [0, 0], sizes = [8, 429], strides = [1, 1]} : vector<8x430xf32> to vector<8x429xf32>
    %61 = vector.extract_strided_slice %59 {offsets = [0, 1], sizes = [8, 429], strides = [1, 1]} : vector<8x430xf32> to vector<8x429xf32>
    %62 = arith.maximumf %60, %61 : vector<8x429xf32>
    %63 = vector.extract_strided_slice %62 {offsets = [0, 0], sizes = [8, 411], strides = [1, 1]} : vector<8x429xf32> to vector<8x411xf32>
    %64 = vector.extract_strided_slice %62 {offsets = [0, 18], sizes = [8, 411], strides = [1, 1]} : vector<8x429xf32> to vector<8x411xf32>
    %65 = arith.maximumf %63, %64 : vector<8x411xf32>
    %c0_40 = arith.constant 0 : index
    %c0_41 = arith.constant 0 : index
    %66 = vector.load %arg11[%c0_40, %c0_41] : memref<411x140xf32, #tpu.memory_space<vmem>>, vector<411x140xf32>
    %cst_42 = arith.constant dense<0.000000e+00> : vector<8x140xf32>
    %67 = tpu.matmul %65, %66, %cst_42 {dimension_numbers = #tpu.dot_dimension_numbers<[1], [0], [0], [1], [0, 0, 1, 1], [], []>} : vector<8x411xf32>, vector<411x140xf32>, vector<8x140xf32> -> vector<8x140xf32>
    %68 = vector.extract_strided_slice %67 {offsets = [0, 0], sizes = [8, 118], strides = [1, 1]} : vector<8x140xf32> to vector<8x118xf32>
    %c0_43 = arith.constant 0 : index
    %c0_44 = arith.constant 0 : index
    %69 = vector.load %arg20[%c0_43, %c0_44] : memref<72x118xf32, #tpu.memory_space<vmem>>, vector<8x118xf32>
    tpu.vector_store %arg20[%c0_43, %c0_44], %68 {strides = array<i32>} : memref<72x118xf32, #tpu.memory_space<vmem>>, vector<8x118xf32>,
    %70 = vector.extract_strided_slice %67 {offsets = [0, 1], sizes = [8, 118], strides = [1, 1]} : vector<8x140xf32> to vector<8x118xf32>
    %c8_45 = arith.constant 8 : index
    %c0_46 = arith.constant 0 : index
    %71 = vector.load %arg20[%c8_45, %c0_46] : memref<72x118xf32, #tpu.memory_space<vmem>>, vector<8x118xf32>
    tpu.vector_store %arg20[%c8_45, %c0_46], %70 {strides = array<i32>} : memref<72x118xf32, #tpu.memory_space<vmem>>, vector<8x118xf32>,
    %72 = vector.extract_strided_slice %67 {offsets = [0, 2], sizes = [8, 118], strides = [1, 1]} : vector<8x140xf32> to vector<8x118xf32>
    %c16_47 = arith.constant 16 : index
    %c0_48 = arith.constant 0 : index
    %73 = vector.load %arg20[%c16_47, %c0_48] : memref<72x118xf32, #tpu.memory_space<vmem>>, vector<8x118xf32>
    tpu.vector_store %arg20[%c16_47, %c0_48], %72 {strides = array<i32>} : memref<72x118xf32, #tpu.memory_space<vmem>>, vector<8x118xf32>,
    %74 = vector.extract_strided_slice %67 {offsets = [0, 10], sizes = [8, 118], strides = [1, 1]} : vector<8x140xf32> to vector<8x118xf32>
    %c24_49 = arith.constant 24 : index
    %c0_50 = arith.constant 0 : index
    %75 = vector.load %arg20[%c24_49, %c0_50] : memref<72x118xf32, #tpu.memory_space<vmem>>, vector<8x118xf32>
    tpu.vector_store %arg20[%c24_49, %c0_50], %74 {strides = array<i32>} : memref<72x118xf32, #tpu.memory_space<vmem>>, vector<8x118xf32>,
    %76 = vector.extract_strided_slice %67 {offsets = [0, 11], sizes = [8, 118], strides = [1, 1]} : vector<8x140xf32> to vector<8x118xf32>
    %c32_51 = arith.constant 32 : index
    %c0_52 = arith.constant 0 : index
    %77 = vector.load %arg20[%c32_51, %c0_52] : memref<72x118xf32, #tpu.memory_space<vmem>>, vector<8x118xf32>
    tpu.vector_store %arg20[%c32_51, %c0_52], %76 {strides = array<i32>} : memref<72x118xf32, #tpu.memory_space<vmem>>, vector<8x118xf32>,
    %78 = vector.extract_strided_slice %67 {offsets = [0, 12], sizes = [8, 118], strides = [1, 1]} : vector<8x140xf32> to vector<8x118xf32>
    %c40 = arith.constant 40 : index
    %c0_53 = arith.constant 0 : index
    %79 = vector.load %arg20[%c40, %c0_53] : memref<72x118xf32, #tpu.memory_space<vmem>>, vector<8x118xf32>
    tpu.vector_store %arg20[%c40, %c0_53], %78 {strides = array<i32>} : memref<72x118xf32, #tpu.memory_space<vmem>>, vector<8x118xf32>,
    %80 = vector.extract_strided_slice %67 {offsets = [0, 20], sizes = [8, 118], strides = [1, 1]} : vector<8x140xf32> to vector<8x118xf32>
    %c48 = arith.constant 48 : index
    %c0_54 = arith.constant 0 : index
    %81 = vector.load %arg20[%c48, %c0_54] : memref<72x118xf32, #tpu.memory_space<vmem>>, vector<8x118xf32>
    tpu.vector_store %arg20[%c48, %c0_54], %80 {strides = array<i32>} : memref<72x118xf32, #tpu.memory_space<vmem>>, vector<8x118xf32>,
    %82 = vector.extract_strided_slice %67 {offsets = [0, 21], sizes = [8, 118], strides = [1, 1]} : vector<8x140xf32> to vector<8x118xf32>
    %c56 = arith.constant 56 : index
    %c0_55 = arith.constant 0 : index
    %83 = vector.load %arg20[%c56, %c0_55] : memref<72x118xf32, #tpu.memory_space<vmem>>, vector<8x118xf32>
    tpu.vector_store %arg20[%c56, %c0_55], %82 {strides = array<i32>} : memref<72x118xf32, #tpu.memory_space<vmem>>, vector<8x118xf32>,
    %84 = vector.extract_strided_slice %67 {offsets = [0, 22], sizes = [8, 118], strides = [1, 1]} : vector<8x140xf32> to vector<8x118xf32>
    %c64 = arith.constant 64 : index
    %c0_56 = arith.constant 0 : index
    %85 = vector.load %arg20[%c64, %c0_56] : memref<72x118xf32, #tpu.memory_space<vmem>>, vector<8x118xf32>
    tpu.vector_store %arg20[%c64, %c0_56], %84 {strides = array<i32>} : memref<72x118xf32, #tpu.memory_space<vmem>>, vector<8x118xf32>,
    %c0_57 = arith.constant 0 : index
    %c0_58 = arith.constant 0 : index
    %86 = vector.load %arg6[%c0_57, %c0_58] : memref<16x72xf32, #tpu.memory_space<vmem>>, vector<16x72xf32>
    %c0_59 = arith.constant 0 : index
    %c0_60 = arith.constant 0 : index
    %87 = vector.load %arg20[%c0_59, %c0_60] : memref<72x118xf32, #tpu.memory_space<vmem>>, vector<72x118xf32>
    %cst_61 = arith.constant dense<0.000000e+00> : vector<16x118xf32>
    %88 = tpu.matmul %86, %87, %cst_61 {dimension_numbers = #tpu.dot_dimension_numbers<[1], [0], [0], [1], [0, 0, 1, 1], [], []>} : vector<16x72xf32>, vector<72x118xf32>, vector<16x118xf32> -> vector<16x118xf32>
    %c0_62 = arith.constant 0 : index
    %c0_63 = arith.constant 0 : index
    %89 = vector.load %arg7[%c0_62, %c0_63] : memref<16x1xf32, #tpu.memory_space<vmem>>, vector<16x1xf32>
    %90 = vector.broadcast %89 : vector<16x1xf32> to vector<16x118xf32>
    %91 = arith.addf %88, %90 : vector<16x118xf32>
    %92 = math.tanh %91 : vector<16x118xf32>
    %93 = vector.extract_strided_slice %92 {offsets = [0, 0], sizes = [16, 117], strides = [1, 1]} : vector<16x118xf32> to vector<16x117xf32>
    %94 = vector.extract_strided_slice %92 {offsets = [0, 1], sizes = [16, 117], strides = [1, 1]} : vector<16x118xf32> to vector<16x117xf32>
    %95 = arith.maximumf %93, %94 : vector<16x117xf32>
    %96 = vector.extract_strided_slice %95 {offsets = [0, 0], sizes = [16, 107], strides = [1, 1]} : vector<16x117xf32> to vector<16x107xf32>
    %97 = vector.extract_strided_slice %95 {offsets = [0, 10], sizes = [16, 107], strides = [1, 1]} : vector<16x117xf32> to vector<16x107xf32>
    %98 = arith.maximumf %96, %97 : vector<16x107xf32>
    %c0_64 = arith.constant 0 : index
    %c0_65 = arith.constant 0 : index
    %99 = vector.load %arg12[%c0_64, %c0_65] : memref<107x48xf32, #tpu.memory_space<vmem>>, vector<107x48xf32>
    %cst_66 = arith.constant dense<0.000000e+00> : vector<16x48xf32>
    %100 = tpu.matmul %98, %99, %cst_66 {dimension_numbers = #tpu.dot_dimension_numbers<[1], [0], [0], [1], [0, 0, 1, 1], [], []>} : vector<16x107xf32>, vector<107x48xf32>, vector<16x48xf32> -> vector<16x48xf32>
    %101 = vector.extract_strided_slice %100 {offsets = [0, 0], sizes = [16, 34], strides = [1, 1]} : vector<16x48xf32> to vector<16x34xf32>
    %c0_67 = arith.constant 0 : index
    %c0_68 = arith.constant 0 : index
    %102 = vector.load %arg21[%c0_67, %c0_68] : memref<144x34xf32, #tpu.memory_space<vmem>>, vector<16x34xf32>
    tpu.vector_store %arg21[%c0_67, %c0_68], %101 {strides = array<i32>} : memref<144x34xf32, #tpu.memory_space<vmem>>, vector<16x34xf32>,
    %103 = vector.extract_strided_slice %100 {offsets = [0, 1], sizes = [16, 34], strides = [1, 1]} : vector<16x48xf32> to vector<16x34xf32>
    %c16_69 = arith.constant 16 : index
    %c0_70 = arith.constant 0 : index
    %104 = vector.load %arg21[%c16_69, %c0_70] : memref<144x34xf32, #tpu.memory_space<vmem>>, vector<16x34xf32>
    tpu.vector_store %arg21[%c16_69, %c0_70], %103 {strides = array<i32>} : memref<144x34xf32, #tpu.memory_space<vmem>>, vector<16x34xf32>,
    %105 = vector.extract_strided_slice %100 {offsets = [0, 2], sizes = [16, 34], strides = [1, 1]} : vector<16x48xf32> to vector<16x34xf32>
    %c32_71 = arith.constant 32 : index
    %c0_72 = arith.constant 0 : index
    %106 = vector.load %arg21[%c32_71, %c0_72] : memref<144x34xf32, #tpu.memory_space<vmem>>, vector<16x34xf32>
    tpu.vector_store %arg21[%c32_71, %c0_72], %105 {strides = array<i32>} : memref<144x34xf32, #tpu.memory_space<vmem>>, vector<16x34xf32>,
    %107 = vector.extract_strided_slice %100 {offsets = [0, 6], sizes = [16, 34], strides = [1, 1]} : vector<16x48xf32> to vector<16x34xf32>
    %c48_73 = arith.constant 48 : index
    %c0_74 = arith.constant 0 : index
    %108 = vector.load %arg21[%c48_73, %c0_74] : memref<144x34xf32, #tpu.memory_space<vmem>>, vector<16x34xf32>
    tpu.vector_store %arg21[%c48_73, %c0_74], %107 {strides = array<i32>} : memref<144x34xf32, #tpu.memory_space<vmem>>, vector<16x34xf32>,
    %109 = vector.extract_strided_slice %100 {offsets = [0, 7], sizes = [16, 34], strides = [1, 1]} : vector<16x48xf32> to vector<16x34xf32>
    %c64_75 = arith.constant 64 : index
    %c0_76 = arith.constant 0 : index
    %110 = vector.load %arg21[%c64_75, %c0_76] : memref<144x34xf32, #tpu.memory_space<vmem>>, vector<16x34xf32>
    tpu.vector_store %arg21[%c64_75, %c0_76], %109 {strides = array<i32>} : memref<144x34xf32, #tpu.memory_space<vmem>>, vector<16x34xf32>,
    %111 = vector.extract_strided_slice %100 {offsets = [0, 8], sizes = [16, 34], strides = [1, 1]} : vector<16x48xf32> to vector<16x34xf32>
    %c80 = arith.constant 80 : index
    %c0_77 = arith.constant 0 : index
    %112 = vector.load %arg21[%c80, %c0_77] : memref<144x34xf32, #tpu.memory_space<vmem>>, vector<16x34xf32>
    tpu.vector_store %arg21[%c80, %c0_77], %111 {strides = array<i32>} : memref<144x34xf32, #tpu.memory_space<vmem>>, vector<16x34xf32>,
    %113 = vector.extract_strided_slice %100 {offsets = [0, 12], sizes = [16, 34], strides = [1, 1]} : vector<16x48xf32> to vector<16x34xf32>
    %c96 = arith.constant 96 : index
    %c0_78 = arith.constant 0 : index
    %114 = vector.load %arg21[%c96, %c0_78] : memref<144x34xf32, #tpu.memory_space<vmem>>, vector<16x34xf32>
    tpu.vector_store %arg21[%c96, %c0_78], %113 {strides = array<i32>} : memref<144x34xf32, #tpu.memory_space<vmem>>, vector<16x34xf32>,
    %115 = vector.extract_strided_slice %100 {offsets = [0, 13], sizes = [16, 34], strides = [1, 1]} : vector<16x48xf32> to vector<16x34xf32>
    %c112 = arith.constant 112 : index
    %c0_79 = arith.constant 0 : index
    %116 = vector.load %arg21[%c112, %c0_79] : memref<144x34xf32, #tpu.memory_space<vmem>>, vector<16x34xf32>
    tpu.vector_store %arg21[%c112, %c0_79], %115 {strides = array<i32>} : memref<144x34xf32, #tpu.memory_space<vmem>>, vector<16x34xf32>,
    %117 = vector.extract_strided_slice %100 {offsets = [0, 14], sizes = [16, 34], strides = [1, 1]} : vector<16x48xf32> to vector<16x34xf32>
    %c128 = arith.constant 128 : index
    %c0_80 = arith.constant 0 : index
    %118 = vector.load %arg21[%c128, %c0_80] : memref<144x34xf32, #tpu.memory_space<vmem>>, vector<16x34xf32>
    tpu.vector_store %arg21[%c128, %c0_80], %117 {strides = array<i32>} : memref<144x34xf32, #tpu.memory_space<vmem>>, vector<16x34xf32>,
    %c0_81 = arith.constant 0 : index
    %c0_82 = arith.constant 0 : index
    %119 = vector.load %arg8[%c0_81, %c0_82] : memref<32x144xf32, #tpu.memory_space<vmem>>, vector<32x144xf32>
    %c0_83 = arith.constant 0 : index
    %c0_84 = arith.constant 0 : index
    %120 = vector.load %arg21[%c0_83, %c0_84] : memref<144x34xf32, #tpu.memory_space<vmem>>, vector<144x34xf32>
    %cst_85 = arith.constant dense<0.000000e+00> : vector<32x34xf32>
    %121 = tpu.matmul %119, %120, %cst_85 {dimension_numbers = #tpu.dot_dimension_numbers<[1], [0], [0], [1], [0, 0, 1, 1], [], []>} : vector<32x144xf32>, vector<144x34xf32>, vector<32x34xf32> -> vector<32x34xf32>
    %c0_86 = arith.constant 0 : index
    %c0_87 = arith.constant 0 : index
    %122 = vector.load %arg9[%c0_86, %c0_87] : memref<32x1xf32, #tpu.memory_space<vmem>>, vector<32x1xf32>
    %123 = vector.broadcast %122 : vector<32x1xf32> to vector<32x34xf32>
    %124 = arith.addf %121, %123 : vector<32x34xf32>
    %125 = math.tanh %124 : vector<32x34xf32>
    %c0_88 = arith.constant 0 : index
    %c0_89 = arith.constant 0 : index
    %126 = vector.load %arg13[%c0_88, %c0_89] : memref<34x672xf32, #tpu.memory_space<vmem>>, vector<34x672xf32>
    %cst_90 = arith.constant dense<0.000000e+00> : vector<32x672xf32>
    %127 = tpu.matmul %125, %126, %cst_90 {dimension_numbers = #tpu.dot_dimension_numbers<[1], [0], [0], [1], [0, 0, 1, 1], [], []>} : vector<32x34xf32>, vector<34x672xf32>, vector<32x672xf32> -> vector<32x672xf32>
    %c0_91 = arith.constant 0 : index
    %c0_92 = arith.constant 0 : index
    %128 = vector.load %arg14[%c0_91, %c0_92] : memref<32x672xf32, #tpu.memory_space<vmem>>, vector<32x672xf32>
    %129 = arith.mulf %127, %128 : vector<32x672xf32>
    %cst_93 = arith.constant 1.000000e+00 : f32
    %130 = vector.broadcast %cst_93 : f32 to vector<1x32xf32>
    %cst_94 = arith.constant dense<0.000000e+00> : vector<1x672xf32>
    %131 = tpu.matmul %130, %129, %cst_94 {dimension_numbers = #tpu.dot_dimension_numbers<[1], [0], [0], [1], [0, 0, 1, 1], [], []>} : vector<1x32xf32>, vector<32x672xf32>, vector<1x672xf32> -> vector<1x672xf32>
    %c0_95 = arith.constant 0 : index
    %c0_96 = arith.constant 0 : index
    %132 = vector.load %arg15[%c0_95, %c0_96] : memref<672x128xf32, #tpu.memory_space<vmem>>, vector<672x128xf32>
    %cst_97 = arith.constant dense<0.000000e+00> : vector<1x128xf32>
    %133 = tpu.matmul %131, %132, %cst_97 {dimension_numbers = #tpu.dot_dimension_numbers<[1], [0], [0], [1], [0, 0, 1, 1], [], []>} : vector<1x672xf32>, vector<672x128xf32>, vector<1x128xf32> -> vector<1x128xf32>
    %c0_98 = arith.constant 0 : index
    %c0_99 = arith.constant 0 : index
    %134 = vector.load %arg16[%c0_98, %c0_99] : memref<1x128xf32, #tpu.memory_space<vmem>>, vector<1x128xf32>
    %135 = arith.addf %133, %134 : vector<1x128xf32>
    %c0_100 = arith.constant 0 : index
    %c0_101 = arith.constant 0 : index
    %c0_102 = arith.constant 0 : index
    %136 = vector.load %arg17[%c0_100, %c0_101, %c0_102] : memref<1x1x128xf32, #tpu.memory_space<vmem>>, vector<1x1x128xf32>
    %137 = vector.shape_cast %136 : vector<1x1x128xf32> to vector<1x128xf32>
    %138 = vector.shape_cast %135 : vector<1x128xf32> to vector<1x1x128xf32>
    tpu.vector_store %arg17[%c0_100, %c0_101, %c0_102], %138 {strides = array<i32>} : memref<1x1x128xf32, #tpu.memory_space<vmem>>, vector<1x1x128xf32>,
    return
  }
  func.func @transform_0(%arg0: i32) -> (i32, i32, i32) {
    %c0_i32 = arith.constant 0 : i32
    %c0_i32_0 = arith.constant 0 : i32
    %c0_i32_1 = arith.constant 0 : i32
    return %arg0, %c0_i32, %c0_i32_0 : i32, i32, i32
  }
  func.func @transform_1(%arg0: i32) -> (i32, i32) {
    %c0_i32 = arith.constant 0 : i32
    %c0_i32_0 = arith.constant 0 : i32
    %c0_i32_1 = arith.constant 0 : i32
    return %c0_i32, %c0_i32_0 : i32, i32
  }
  func.func @transform_2(%arg0: i32) -> (i32, i32) {
    %c0_i32 = arith.constant 0 : i32
    %c0_i32_0 = arith.constant 0 : i32
    %c0_i32_1 = arith.constant 0 : i32
    return %c0_i32, %c0_i32_0 : i32, i32
  }
  func.func @transform_3(%arg0: i32) -> (i32, i32) {
    %c0_i32 = arith.constant 0 : i32
    %c0_i32_0 = arith.constant 0 : i32
    %c0_i32_1 = arith.constant 0 : i32
    return %c0_i32, %c0_i32_0 : i32, i32
  }
  func.func @transform_4(%arg0: i32) -> (i32, i32) {
    %c0_i32 = arith.constant 0 : i32
    %c0_i32_0 = arith.constant 0 : i32
    %c0_i32_1 = arith.constant 0 : i32
    return %c0_i32, %c0_i32_0 : i32, i32
  }
  func.func @transform_5(%arg0: i32) -> (i32, i32) {
    %c0_i32 = arith.constant 0 : i32
    %c0_i32_0 = arith.constant 0 : i32
    %c0_i32_1 = arith.constant 0 : i32
    return %c0_i32, %c0_i32_0 : i32, i32
  }
  func.func @transform_6(%arg0: i32) -> (i32, i32) {
    %c0_i32 = arith.constant 0 : i32
    %c0_i32_0 = arith.constant 0 : i32
    %c0_i32_1 = arith.constant 0 : i32
    return %c0_i32, %c0_i32_0 : i32, i32
  }
  func.func @transform_7(%arg0: i32) -> (i32, i32) {
    %c0_i32 = arith.constant 0 : i32
    %c0_i32_0 = arith.constant 0 : i32
    %c0_i32_1 = arith.constant 0 : i32
    return %c0_i32, %c0_i32_0 : i32, i32
  }
  func.func @transform_8(%arg0: i32) -> (i32, i32) {
    %c0_i32 = arith.constant 0 : i32
    %c0_i32_0 = arith.constant 0 : i32
    %c0_i32_1 = arith.constant 0 : i32
    return %c0_i32, %c0_i32_0 : i32, i32
  }
  func.func @transform_9(%arg0: i32) -> (i32, i32) {
    %c0_i32 = arith.constant 0 : i32
    %c0_i32_0 = arith.constant 0 : i32
    %c0_i32_1 = arith.constant 0 : i32
    return %c0_i32, %c0_i32_0 : i32, i32
  }
  func.func @transform_10(%arg0: i32) -> (i32, i32) {
    %c0_i32 = arith.constant 0 : i32
    %c0_i32_0 = arith.constant 0 : i32
    %c0_i32_1 = arith.constant 0 : i32
    return %c0_i32, %c0_i32_0 : i32, i32
  }
  func.func @transform_11(%arg0: i32) -> (i32, i32) {
    %c0_i32 = arith.constant 0 : i32
    %c0_i32_0 = arith.constant 0 : i32
    %c0_i32_1 = arith.constant 0 : i32
    return %c0_i32, %c0_i32_0 : i32, i32
  }
  func.func @transform_12(%arg0: i32) -> (i32, i32) {
    %c0_i32 = arith.constant 0 : i32
    %c0_i32_0 = arith.constant 0 : i32
    %c0_i32_1 = arith.constant 0 : i32
    return %c0_i32, %c0_i32_0 : i32, i32
  }
  func.func @transform_13(%arg0: i32) -> (i32, i32) {
    %c0_i32 = arith.constant 0 : i32
    %c0_i32_0 = arith.constant 0 : i32
    %c0_i32_1 = arith.constant 0 : i32
    return %c0_i32, %c0_i32_0 : i32, i32
  }
  func.func @transform_14(%arg0: i32) -> (i32, i32) {
    %c0_i32 = arith.constant 0 : i32
    %c0_i32_0 = arith.constant 0 : i32
    %c0_i32_1 = arith.constant 0 : i32
    return %c0_i32, %c0_i32_0 : i32, i32
  }
  func.func @transform_15(%arg0: i32) -> (i32, i32) {
    %c0_i32 = arith.constant 0 : i32
    %c0_i32_0 = arith.constant 0 : i32
    %c0_i32_1 = arith.constant 0 : i32
    return %c0_i32, %c0_i32_0 : i32, i32
  }
  func.func @transform_16(%arg0: i32) -> (i32, i32, i32) {
    %c0_i32 = arith.constant 0 : i32
    %c0_i32_0 = arith.constant 0 : i32
    %c0_i32_1 = arith.constant 0 : i32
    return %arg0, %c0_i32, %c0_i32_0 : i32, i32, i32
  }
}

</mosaic_0001>

<bundles_post_ra>
// kernel: cnn_forward.1
= control target key start
LH: loop header
LB: loop body
LE: loop exit
PB: predicated region body
PF: predicated region fallthrough
CT: control target
= control target key end

     0   :  { %s11066_s0 = inlined_call_operand.vmem [shape: f32[2,1,1792], index: 0, kind: input, shape index: {}]   ;;  %s11067_s1 = inlined_call_operand.vmem [shape: f32[4,9], index: 1, kind: input, shape index: {}]   ;;  %s11068_s2 = inlined_call_operand.vmem [shape: f32[4,1], index: 2, kind: input, shape index: {}]   ;;  %s11069_s3 = inlined_call_operand.vmem [shape: f32[8,36], index: 3, kind: input, shape index: {}]   ;;  %s11070_s4 = inlined_call_operand.vmem [shape: f32[8,1], index: 4, kind: input, shape index: {}]   ;;  %s11071_s5 = inlined_call_operand.vmem [shape: f32[16,72], index: 5, kind: input, shape index: {}]   ;;  %s11072_s6 = inlined_call_operand.vmem [shape: f32[16,1], index: 6, kind: input, shape index: {}]   ;;  %s11073_s7 = inlined_call_operand.vmem [shape: f32[32,144], index: 7, kind: input, shape index: {}]   ;;  %s11074_s8 = inlined_call_operand.vmem [shape: f32[32,1], index: 8, kind: input, shape index: {}]   ;;  %s11075_s9 = inlined_call_operand.vmem [shape: f32[1595,468], index: 9, kind: input, shape index: {}]   ;;  %s11076_s10 = inlined_call_operand.vmem [shape: f32[411,140], index: 10, kind: input, shape index: {}]   ;;  %s11077_s11 = inlined_call_operand.vmem [shape: f32[107,48], index: 11, kind: input, shape index: {}]   ;;  %s11078_s12 = inlined_call_operand.vmem [shape: f32[34,672], index: 12, kind: input, shape index: {}]   ;;  %s11079_s13 = inlined_call_operand.vmem [shape: f32[32,672], index: 13, kind: input, shape index: {}]   ;;  %s11080_s14 = inlined_call_operand.vmem [shape: f32[672,128], index: 14, kind: input, shape index: {}]   ;;  %s11081_s15 = inlined_call_operand.vmem [shape: f32[1,128], index: 15, kind: input, shape index: {}]   ;;  %s11082_s16 = inlined_call_operand.hbm [shape: f32[2,1,128], index: 16, kind: output, shape index: {}]  }
   0x1   :  { %11100 = sst [smem:[#allocation14_spill]] %s11066_s0 }
   0x2   :  { %11101 = sst [smem:[#allocation15_spill]] %s11067_s1 }
   0x3   :  { %11102 = sst [smem:[#allocation16_spill]] %s11068_s2 }
   0x4   :  { %21 = vsyncpa [#allocation7], 0 }
   0x5   :  { %23 = vsyncpa [#allocation7 + $0x1], 0  ;;  %s7148_s21 = smov 0   ;;  %s7150_s22 = smov 0  }
   0x6   :  { %s7152_s23 = smov 0   ;;  %s7154_s24 = smov 0  }
   0x7 LB: > { %11103 = sst [smem:[#allocation9_spill]] %s7019_s21  ;;  %s7169_s25 = sadd.s32 4294967295, %s7031_s24   ;;  %s7031_s24 = sphi %s7154_s24, %s11127_s24   ;;  %s7027_s23 = sphi %s7152_s23, %s11129_s23   ;;  %s7023_s22 = sphi %s7150_s22, %s11131_s22   ;;  %s7019_s21 = sphi %s7148_s21, %s11130_s21  }
   0x8   : > { %11104 = sst [smem:[#allocation10_spill]] %s7027_s23  ;;  %s5348_s26 = sadd.s32 4294967294, %s7031_s24  }
   0x9   : > { %s7173_s27 = sadd.s32 1, %s7031_s24   ;;  %s377_s28 = sadd.s32 1, %s7027_s23 }
   0xa   : > { %11105 = sst [smem:[#allocation11_spill]] %s7173_s27  ;;  %s374_s29 = ssub.s32 %s7031_s24, %s7173_s27 }
   0xb   : > { %p387_p0 = scmp.ne.s32.totalorder %s7027_s23, %s7023_s22  ;;  %p375_p1 = scmp.eq.s32.totalorder %s374_s29, 0 }
   0xc   : > { %p388_p2 = scmp.eq.s32.totalorder %s7169_s25, 1  ;;  %p393_p3 = scmp.ne.s32.totalorder %s7023_s22, %s7019_s21 }
   0xd   : > { %p394_p4 = scmp.eq.s32.totalorder %s5348_s26, 1  ;;  %p5351_p7 = scmp.ge.s32.totalorder %s7031_s24, 1 }
   0xe   : > { %s7184_s30 = scalar_select %p375_p1, %s7027_s23, %s377_s28  }
   0xf   : > { %p7186_p5 = por %p388_p2, %p387_p0  ;;  %p7190_p6 = por %p394_p4, %p393_p3 }
  0x10   : > { %11106 = sst [smem:[#allocation12_spill]] %s7184_s30  ;;  %p464_p8 = scmp.lt.s32.totalorder %s7031_s24, 3 }
  0x11   : > { %s11108_s17 = scalar_select %p7190_p6, 1, 0 }
  0x12   : > { %p465_p9 = pnand %p5351_p7, %p464_p8 }
  0x13   : > { %11109 = sst [smem:[#allocation13_spill]] %s11108_s17  ;;  %p512_p10 = scmp.lt.s32.totalorder (!%p465_p9), %s7169_s25, 1  ;;  %v520_v0 = vlaneseq (!%p465_p9)  ;;  %v7041_v4 = vmov (!%p465_p9), 0.0   ;;  %v7042_v6 = vmov (!%p465_p9), 0   ;;  %vm535_vm1 = vcmask (!%p465_p9), 1046528  }
  0x14   : > { %468 = sbr.rel (%p465_p9) target bundleno = 4112 (0x1010), region = 84  ;;  %s11110_s28 = sld [smem:[#allocation14_spill]] (!%p465_p9)  ;;  %815 = vmatprep.mubr.f32.mxu0 (!%p465_p9), %v7041_v4  ;;  %886 = vmatprep.mubr.f32.mxu1 (!%p465_p9), %v7041_v4  ;;  %vm555_vm2 = vcmask (!%p465_p9), 1031168   ;;  %vm537_vm3 = vcmask (!%p465_p9), 1039360   ;;  %vm573_vm4 = vcmask (!%p465_p9), 769024   ;;  %vm591_vm5 = vcmask (!%p465_p9), 760832  }
  0x15   : > { %vm7201_vm0 = vcmp.lt.s32.totalorder (!%p465_p9), %v520_v0, 606  ;;  %s11084_s30 = smov (!%p465_p9), 126   ;;  %s11092_s23 = smov (!%p465_p9), 127   ;;  %6856 = vset.pattern.permute.xlu0 (!%p465_p9), %v7042_v6  ;;  %6912 = vset.pattern.permute.xlu1 (!%p465_p9), %v7042_v6  ;;  %vm609_vm6 = vcmask (!%p465_p9), 752640   ;;  %vm627_vm7 = vcmask (!%p465_p9), 490496   ;;  %vm645_vm8 = vcmask (!%p465_p9), 482304  }
  0x16   : > { %s11086_s20 = smov (!%p465_p9), 92   ;;  %s7038_s26 = smov (!%p465_p9), 60   ;;  %vm663_vm9 = vcmask (!%p465_p9), 474112   ;;  %vm711_vm10 = vcmask (!%p465_p9), 1040384   ;;  %vm7043_vm11 = vmmov (!%p465_p9), 1   ;;  %vm707_vm13 = vcmask (!%p465_p9), 72704  }
  0x17   : > { %s11113_s2 = sld [smem:[#allocation16_spill]] (!%p465_p9)  ;;  %vm7273_vm12 = vmpackc.low (!%p465_p9), %vm711_vm10, %vm7043_vm11  ;;  %s11116_s1 = sld [smem:[#allocation15_spill]] (!%p465_p9)  ;;  %vm7045_vm14 = vmmov (!%p465_p9), 0   ;;  %vm2217_vm15 = vcmask (!%p465_p9), 1042432   ;;  %vm3422_vm10 = vcmask (!%p465_p9), 293888  }
  0x18   : > { %s11121_s17 = smov (!%p465_p9), 126   ;;  %s7049_s21 = smov (!%p465_p9), 91  }
  0x19   : > { %s5418_s27 = sshll.u32 (!%p465_p9), %s7169_s25, 4 }
  0x1b   : > { %s513_s18 = scalar_select %p512_p10, %s7169_s25, 1 }
  0x1c   : > { %s7062_s25 = smov [#allocation6]  }
  0x1d   : > { %s6787_s19 = smul.u32 14, %s513_s18  ;;  %s11088_s18 = smov 94   ;;  %v701_v5 = vld [vmem:[%s11113_s2] sm:$0xf] }
  0x1e   : > { %s510_s2 = sand.u32 1, %s7023_s22  }
  0x1f   : > { %s515_s29 = scalar_lea.vmem %s11110_s28, %s6787_s19  ;;  %s7036_s19 = smov 93  }
  0x20   : > { %v516_v1 = vld [vmem:[%s515_s29] sm:$0xff]  ;;  %v517_v2 = vld [vmem:[%s515_s29 + $0x8] sm:$0x3f]  ;;  %s7039_s28 = smov 59   ;;  %s7040_s29 = smov 58  }
  0x21   : > { %548 = vrot.lane.b32.xlu1 %v516_v1, %s11084_s30  ;;  %518 = vst [vmem:[#allocation2] ss:$8 sm:$0xf] %v516_v1  ;;  %519 = vst [vmem:[#allocation2] ss:$8 sm:$0xf0] %v516_v1  ;;  %529 = vrot.lane.b32.xlu0 %v516_v1, %s11092_s23 }
  0x22   : > { %525 = vst.msk [vmem:[#allocation2 + $0x40] ss:$8 sm:$0xf] %vm7201_vm0, %v517_v2  ;;  %526 = vst.msk [vmem:[#allocation2 + $0x40] ss:$8 sm:$0x10] %vm7201_vm0, %v517_v2 }
  0x25   : > { %550 = vrot.lane.b32.xlu1 %v517_v2, %s11084_s30  ;;  %531 = vrot.lane.b32.xlu0 %v517_v2, %s11092_s23  ;;  %s7054_s30 = smov 107  }
  0x29   : > { %568 = vrot.lane.b32.xlu1 %v517_v2, %s11088_s18  ;;  %566 = vrot.lane.b32.xlu0 %v516_v1, %s11088_s18 }
  0x2d   : > { %586 = vrot.lane.b32.xlu1 %v517_v2, %s7036_s19  ;;  %584 = vrot.lane.b32.xlu0 %v516_v1, %s7036_s19  ;;  %s7047_s19 = smov 110  }
  0x31   : > { %604 = vrot.lane.b32.xlu1 %v517_v2, %s11086_s20  ;;  %602 = vrot.lane.b32.xlu0 %v516_v1, %s11086_s20  ;;  %s11096_s20 = smov 108  }
  0x35   : > { %622 = vrot.lane.b32.xlu1 %v517_v2, %s7038_s26  ;;  %620 = vrot.lane.b32.xlu0 %v516_v1, %s7038_s26  ;;  %s11118_s26 = smov 127  }
  0x39   : > { %640 = vrot.lane.b32.xlu1 %v517_v2, %s7039_s28  ;;  %638 = vrot.lane.b32.xlu0 %v516_v1, %s7039_s28  ;;  %s7046_s28 = smov 109  }
  0x3d   : > { %658 = vrot.lane.b32.xlu1 %v517_v2, %s7040_s29  ;;  %656 = vrot.lane.b32.xlu0 %v516_v1, %s7040_s29  ;;  %s11122_s29 = smov 92  }
  0x41   : > { %704 = vperm.xlu0 %6856, %v701_v5  }
  0x93   : > { %v549_v7 = vpop.permute.xlu1 %548  ;;  %v530_v8 = vpop.permute.xlu0 %529 }
  0x94   : > { %v552_v11 = vrot.slane %v549_v7, 1  ;;  %v533_v12 = vrot.slane %v530_v8, 1 }
  0x97   : > { %v551_v9 = vpop.permute.xlu1 %550  ;;  %v532_v10 = vpop.permute.xlu0 %531 }
  0x98   : > { %v553_v13 = vrot.slane %v551_v9, 1  ;;  %v534_v14 = vrot.slane %v532_v10, 1 }
  0x9a   : > { %v554_v15 = vsel %vm535_vm1, %v552_v11, %v553_v13  ;;  %v557_v16 = vsel %vm555_vm2, %v551_v9, %v553_v13  ;;  %v536_v17 = vsel %vm535_vm1, %v533_v12, %v534_v14  ;;  %v539_v18 = vsel %vm537_vm3, %v532_v10, %v534_v14 }
  0x9b   : > { %v556_v19 = vsel %vm555_vm2, %v549_v7, %v554_v15  ;;  %564 = vst.msk [vmem:[#allocation2 + $0x42] ss:$8 sm:$0xf] %vm7201_vm0, %v557_v16  ;;  %565 = vst.msk [vmem:[#allocation2 + $0x42] ss:$8 sm:$0x10] %vm7201_vm0, %v557_v16  ;;  %v538_v20 = vsel %vm537_vm3, %v530_v8, %v536_v17  ;;  %v569_v21 = vpop.permute.xlu1 %568  ;;  %v567_v22 = vpop.permute.xlu0 %566 }
  0x9c   : > { %546 = vst.msk [vmem:[#allocation2 + $0x41] ss:$8 sm:$0xf] %vm7201_vm0, %v539_v18  ;;  %547 = vst.msk [vmem:[#allocation2 + $0x41] ss:$8 sm:$0x10] %vm7201_vm0, %v539_v18 }
  0x9d   : > { %561 = vst [vmem:[#allocation2 + $0x2] ss:$8 sm:$0xf] %v556_v19  ;;  %562 = vst [vmem:[#allocation2 + $0x2] ss:$8 sm:$0xf0] %v556_v19 }
  0x9e   : > { %543 = vst [vmem:[#allocation2 + $0x1] ss:$8 sm:$0xf] %v538_v20  ;;  %544 = vst [vmem:[#allocation2 + $0x1] ss:$8 sm:$0xf0] %v538_v20 }
  0x9f   : > { %v571_v23 = vrot.slane %v569_v21, 1  ;;  %v570_v24 = vrot.slane %v567_v22, 1  ;;  %v587_v28 = vpop.permute.xlu1 %586  ;;  %v585_v29 = vpop.permute.xlu0 %584  ;;  %v674_v19 = vld [vmem:[%s11116_s1] sm:$0xf]  ;;  %s7055_s1 = smov 106  }
  0xa0   : > { %v589_v30 = vrot.slane %v587_v28, 1  ;;  %v588_v31 = vrot.slane %v585_v29, 1 }
  0xa1   : > { %v575_v25 = vsel %vm573_vm4, %v569_v21, %v571_v23  ;;  %v572_v26 = vsel %vm535_vm1, %v570_v24, %v571_v23 }
  0xa2   : > { %582 = vst.msk [vmem:[#allocation2 + $0x43] ss:$8 sm:$0xf] %vm7201_vm0, %v575_v25  ;;  %583 = vst.msk [vmem:[#allocation2 + $0x43] ss:$8 sm:$0x10] %vm7201_vm0, %v575_v25  ;;  %v574_v27 = vsel %vm573_vm4, %v567_v22, %v572_v26  ;;  %v593_v32 = vsel %vm591_vm5, %v587_v28, %v589_v30  ;;  %v590_v33 = vsel %vm535_vm1, %v588_v31, %v589_v30 }
  0xa3   : > { %579 = vst [vmem:[#allocation2 + $0x3] ss:$8 sm:$0xf] %v574_v27  ;;  %580 = vst [vmem:[#allocation2 + $0x3] ss:$8 sm:$0xf0] %v574_v27  ;;  %v592_v34 = vsel %vm591_vm5, %v585_v29, %v590_v33  ;;  %v605_v35 = vpop.permute.xlu1 %604  ;;  %v603_v36 = vpop.permute.xlu0 %602 }
  0xa4   : > { %600 = vst.msk [vmem:[#allocation2 + $0x44] ss:$8 sm:$0xf] %vm7201_vm0, %v593_v32  ;;  %601 = vst.msk [vmem:[#allocation2 + $0x44] ss:$8 sm:$0x10] %vm7201_vm0, %v593_v32 }
  0xa5   : > { %597 = vst [vmem:[#allocation2 + $0x4] ss:$8 sm:$0xf] %v592_v34  ;;  %598 = vst [vmem:[#allocation2 + $0x4] ss:$8 sm:$0xf0] %v592_v34 }
  0xa6   : > { %v607_v37 = vrot.slane %v605_v35, 1  ;;  %v606_v38 = vrot.slane %v603_v36, 1  ;;  %vm3284_vm5 = vcmask 900096  }
  0xa7   : > { %v623_v42 = vpop.permute.xlu1 %622  ;;  %v621_v43 = vpop.permute.xlu0 %620 }
  0xa8   : > { %v611_v39 = vsel %vm609_vm6, %v605_v35, %v607_v37  ;;  %v608_v40 = vsel %vm535_vm1, %v606_v38, %v607_v37  ;;  %v625_v44 = vrot.slane %v623_v42, 1  ;;  %v624_v45 = vrot.slane %v621_v43, 1 }
  0xa9   : > { %618 = vst.msk [vmem:[#allocation2 + $0x45] ss:$8 sm:$0xf] %vm7201_vm0, %v611_v39  ;;  %619 = vst.msk [vmem:[#allocation2 + $0x45] ss:$8 sm:$0x10] %vm7201_vm0, %v611_v39  ;;  %v610_v41 = vsel %vm609_vm6, %v603_v36, %v608_v40 }
  0xaa   : > { %615 = vst [vmem:[#allocation2 + $0x5] ss:$8 sm:$0xf] %v610_v41  ;;  %616 = vst [vmem:[#allocation2 + $0x5] ss:$8 sm:$0xf0] %v610_v41  ;;  %v629_v46 = vsel %vm627_vm7, %v623_v42, %v625_v44  ;;  %v626_v47 = vsel %vm535_vm1, %v624_v45, %v625_v44 }
  0xab   : > { %636 = vst.msk [vmem:[#allocation2 + $0x46] ss:$8 sm:$0xf] %vm7201_vm0, %v629_v46  ;;  %637 = vst.msk [vmem:[#allocation2 + $0x46] ss:$8 sm:$0x10] %vm7201_vm0, %v629_v46  ;;  %v628_v48 = vsel %vm627_vm7, %v621_v43, %v626_v47  ;;  %v641_v49 = vpop.permute.xlu1 %640  ;;  %v639_v50 = vpop.permute.xlu0 %638 }
  0xac   : > { %633 = vst [vmem:[#allocation2 + $0x6] ss:$8 sm:$0xf] %v628_v48  ;;  %634 = vst [vmem:[#allocation2 + $0x6] ss:$8 sm:$0xf0] %v628_v48 }
  0xad   : > { %v643_v51 = vrot.slane %v641_v49, 1  ;;  %v642_v52 = vrot.slane %v639_v50, 1  ;;  %v7044_v40 = vmov 0.0|0.0   ;;  %vm3363_vm7 = vcmask 744448  }
  0xaf   : > { %v647_v53 = vsel %vm645_vm8, %v641_v49, %v643_v51  ;;  %v644_v54 = vsel %vm535_vm1, %v642_v52, %v643_v51  ;;  %v659_v56 = vpop.permute.xlu1 %658  ;;  %v657_v57 = vpop.permute.xlu0 %656 }
  0xb0   : > { %654 = vst.msk [vmem:[#allocation2 + $0x47] ss:$8 sm:$0xf] %vm7201_vm0, %v647_v53  ;;  %655 = vst.msk [vmem:[#allocation2 + $0x47] ss:$8 sm:$0x10] %vm7201_vm0, %v647_v53  ;;  %v646_v55 = vsel %vm645_vm8, %v639_v50, %v644_v54 }
  0xb1   : > { %651 = vst [vmem:[#allocation2 + $0x7] ss:$8 sm:$0xf] %v646_v55  ;;  %652 = vst [vmem:[#allocation2 + $0x7] ss:$8 sm:$0xf0] %v646_v55 }
  0xb2   : > { %v661_v58 = vrot.slane %v659_v56, 1  ;;  %v660_v59 = vrot.slane %v657_v57, 1 }
  0xb4   : > { %v665_v60 = vsel %vm663_vm9, %v659_v56, %v661_v58  ;;  %v662_v61 = vsel %vm535_vm1, %v660_v59, %v661_v58  ;;  %vm3227_vm1 = vcmask 371712  }
  0xb5   : > { %672 = vst.msk [vmem:[#allocation2 + $0xa8] ss:$8 sm:$0xf] %vm7201_vm0, %v665_v60  ;;  %673 = vst.msk [vmem:[#allocation2 + $0xa8] ss:$8 sm:$0x10] %vm7201_vm0, %v665_v60  ;;  %v664_v62 = vsel %vm663_vm9, %v657_v57, %v662_v61 }
  0xb6   : > { %669 = vst [vmem:[#allocation2 + $0x68] ss:$8 sm:$0xf] %v664_v62  ;;  %670 = vst [vmem:[#allocation2 + $0x68] ss:$8 sm:$0xf0] %v664_v62 }
  0xb7   : > { %v684_v28 = vld [vmem:[#allocation2 + $0x48] sm:$0xff]  ;;  %v686_v29 = vld [vmem:[#allocation2 + $0x58] sm:$0xff]  ;;  %v683_v34 = vld [vmem:[#allocation2 + $0x40] sm:$0xff]  ;;  %vm3426_vm9 = vcmask 1043456  }
  0xb8   : > { %v676_v63 = vld [vmem:[#allocation2 + $0x8] sm:$0xff]  ;;  %v678_v1 = vld [vmem:[#allocation2 + $0x18] sm:$0xff]  ;;  %v675_v2 = vld [vmem:[#allocation2] sm:$0xff] }
  0xb9   : > { %v677_v5 = vld [vmem:[#allocation2 + $0x10] sm:$0xff]  ;;  %v680_v15 = vld [vmem:[#allocation2 + $0x28] sm:$0xff]  ;;  %v682_v16 = vld [vmem:[#allocation2 + $0x38] sm:$0xff] }
  0xba   : > { %v679_v24 = vld [vmem:[#allocation2 + $0x20] sm:$0xff]  ;;  %v681_v25 = vld [vmem:[#allocation2 + $0x30] sm:$0xff]  ;;  %vm9958_vm0 = vmpackc.low %vm2217_vm15, %vm7043_vm11  ;;  %vm3887_vm11 = vcmask 965632   ;;  %vm3930_vm15 = vcmask 875520  }
  0xbb   : > { %v685_v35 = vld [vmem:[#allocation2 + $0x50] sm:$0xff]  ;;  %v687_v39 = vld [vmem:[#allocation2 + $0x60] sm:$0xff] }
  0xbc   : > { %v697_v22 = vld [vmem:[#allocation2 + $0xb0] sm:$0x1]  ;;  %v699_v23 = vld [vmem:[#allocation2 + $0xc0] sm:$0x1]  ;;  %v696_v32 = vld [vmem:[#allocation2 + $0xa8] sm:$0x1] }
  0xbd   : > { %v689_v6 = vld [vmem:[#allocation2 + $0x70] sm:$0x1]  ;;  %v691_v7 = vld [vmem:[#allocation2 + $0x80] sm:$0x1]  ;;  %v688_v8 = vld [vmem:[#allocation2 + $0x68] sm:$0x1]  ;;  %v5604_v30 = vpack.c.bf16 %v697_v22, %v684_v28  ;;  %v5610_v31 = vpack.c.bf16 %v699_v23, %v686_v29  ;;  %v5607_v36 = vpack.c.bf16 %v696_v32, %v683_v34 }
  0xbe   : > { %v5580_v9 = vpack.c.bf16 %v689_v6, %v676_v63  ;;  %v5586_v3 = vpack.c.bf16 %v691_v7, %v678_v1  ;;  %v5583_v10 = vpack.c.bf16 %v688_v8, %v675_v2  ;;  %v690_v11 = vld [vmem:[#allocation2 + $0x78] sm:$0x1]  ;;  %v693_v12 = vld [vmem:[#allocation2 + $0x90] sm:$0x1]  ;;  %v695_v13 = vld [vmem:[#allocation2 + $0xa0] sm:$0x1] }
  0xbf   : > { %v5589_v14 = vpack.c.bf16 %v690_v11, %v677_v5  ;;  %v5592_v17 = vpack.c.bf16 %v693_v12, %v680_v15  ;;  %v5598_v18 = vpack.c.bf16 %v695_v13, %v682_v16  ;;  %v692_v20 = vld [vmem:[#allocation2 + $0x88] sm:$0x1]  ;;  %v694_v21 = vld [vmem:[#allocation2 + $0x98] sm:$0x1]  ;;  %v1416_v13 = vld [vmem:[%s11075_s9 + $0x10] sm:$0xff] }
  0xc0   : > { %5582 = vmatprep.subr.msk.bf16.mxu0 %vm7273_vm12, %v5580_v9  ;;  %5588 = vmatprep.subr.msk.bf16.mxu1 %vm7273_vm12, %v5586_v3  ;;  %v5595_v26 = vpack.c.bf16 %v692_v20, %v679_v24  ;;  %v5601_v27 = vpack.c.bf16 %v694_v21, %v681_v25  ;;  %v698_v33 = vld [vmem:[#allocation2 + $0xb8] sm:$0x1]  ;;  %v700_v38 = vld [vmem:[#allocation2 + $0xc8] sm:$0x1]  ;;  %v7319_v42 = vpop.permute.xlu0 %704  ;;  %v1414_v3 = vld [vmem:[%s11075_s9] sm:$0xff] }
  0xc1   : > { %5585 = vmatpush1.bf16.msk.msra.mxu0 %vm7273_vm12, %v5583_v10  ;;  %5591 = vmatpush1.bf16.msk.msra.mxu1 %vm7273_vm12, %v5589_v14  ;;  %v5613_v37 = vpack.c.bf16 %v698_v33, %v685_v35  ;;  %v5617_v41 = vpack.c.bf16 %v700_v38, %v687_v39  ;;  %v1415_v5 = vld [vmem:[%s11075_s9 + $0x8] sm:$0xff]  ;;  %v1417_v7 = vld [vmem:[%s11075_s9 + $0x18] sm:$0xff]  ;;  %v1418_v10 = vld [vmem:[%s11075_s9 + $0x20] sm:$0xff] }
  0xc2   : > { %5594 = vmatprep.subr.msk.bf16.mxu0 %vm7273_vm12, %v5592_v17  ;;  %5600 = vmatprep.subr.msk.bf16.mxu1 %vm7273_vm12, %v5598_v18  ;;  %v1419_v6 = vld [vmem:[%s11075_s9 + $0x28] sm:$0xff]  ;;  %v1421_v9 = vld [vmem:[%s11075_s9 + $0x38] sm:$0xff]  ;;  %v5622_v12 = vpack.c.bf16 %v1418_v10, %v1414_v3  ;;  %v1420_v14 = vld [vmem:[%s11075_s9 + $0x30] sm:$0xff] }
  0xc3   : > { %v5620_v8 = vpack.c.bf16 %v1419_v6, %v1415_v5  ;;  %v6022_v11 = vpack.c.bf16 %v1421_v9, %v1417_v7  ;;  %v1423_v15 = vld [vmem:[%s11075_s9 + $0x48] sm:$0xff]  ;;  %v6024_v16 = vpack.c.bf16 %v1420_v14, %v1416_v13  ;;  %v1425_v18 = vld [vmem:[%s11075_s9 + $0x58] sm:$0xff]  ;;  %v1422_v22 = vld [vmem:[%s11075_s9 + $0x40] sm:$0xff] }
  0xc4   : > { %5354 = vmatmul.mubr.msk.f32.vlgmr.msra.gmra.mrb[0].mxu0 %vm707_vm13, %v674_v19  ;;  %5357 = vmatmul.mubr.msk.f32.vlgmr.msra.gmra.mrb[0].mxu1 %vm707_vm13, %v674_v19  ;;  %v1427_v17 = vld [vmem:[%s11075_s9 + $0x68] sm:$0xff]  ;;  %v1426_v23 = vld [vmem:[%s11075_s9 + $0x60] sm:$0xff]  ;;  %v1424_v24 = vld [vmem:[%s11075_s9 + $0x50] sm:$0xff] }
  0xc5   : > { %5597 = vmatpush1.bf16.msk.msra.mxu0 %vm7273_vm12, %v5595_v26  ;;  %5603 = vmatpush1.bf16.msk.msra.mxu1 %vm7273_vm12, %v5601_v27  ;;  %v5624_v20 = vpack.c.bf16 %v1427_v17, %v1423_v15  ;;  %v5626_v25 = vpack.c.bf16 %v1426_v23, %v1422_v22  ;;  %v1428_v26 = vld [vmem:[%s11075_s9 + $0x70] sm:$0xff]  ;;  %v1431_v27 = vld [vmem:[%s11075_s9 + $0x88] sm:$0xff]  ;;  %v1437_v32 = vld [vmem:[%s11075_s9 + $0xb8] sm:$0xff] }
  0xc6   : > { %5606 = vmatprep.subr.msk.bf16.mxu0 %vm7273_vm12, %v5604_v30  ;;  %5612 = vmatprep.subr.msk.bf16.mxu1 %vm7273_vm12, %v5610_v31  ;;  %v1435_v28 = vld [vmem:[%s11075_s9 + $0xa8] sm:$0xff]  ;;  %v6028_v29 = vpack.c.bf16 %v1428_v26, %v1424_v24  ;;  %v1433_v31 = vld [vmem:[%s11075_s9 + $0x98] sm:$0xff]  ;;  %v1430_v33 = vld [vmem:[%s11075_s9 + $0x80] sm:$0xff] }
  0xc7   : > { %957 = vmatprep.mubr.f32.mxu0 %v7041_v4  ;;  %1028 = vmatprep.mubr.f32.mxu1 %v7041_v4  ;;  %v5628_v30 = vpack.c.bf16 %v1435_v28, %v1431_v27  ;;  %v6030_v34 = vpack.c.bf16 %v1437_v32, %v1433_v31  ;;  %v1434_v35 = vld [vmem:[%s11075_s9 + $0xa0] sm:$0xff]  ;;  %v1439_v39 = vld [vmem:[%s11075_s9 + $0xc8] sm:$0xff]  ;;  %v1449_v5 = vld [vmem:[%s11075_s9 + $0x118] sm:$0xff] }
  0xc8   : > { %5360 = vmatmul.mubr.msk.f32.vlgmr.msra.gmra.mrb[2].mxu0 %vm707_vm13, %v674_v19  ;;  %5363 = vmatmul.mubr.msk.f32.vlgmr.msra.gmra.mrb[2].mxu1 %vm707_vm13, %v674_v19  ;;  %v5630_v38 = vpack.c.bf16 %v1434_v35, %v1430_v33  ;;  %v1453_v6 = vld [vmem:[%s11075_s9 + $0x138] sm:$0xff]  ;;  %v1446_v3 = vld [vmem:[%s11075_s9 + $0x100] sm:$0xff]  ;;  %v1452_v13 = vld [vmem:[%s11075_s9 + $0x130] sm:$0xff] }
  0xc9   : > { %5609 = vmatpush1.bf16.msk.msra.mxu0 %vm7273_vm12, %v5607_v36  ;;  %5615 = vmatpush1.bf16.msk.msra.mxu1 %vm7273_vm12, %v5613_v37  ;;  %v1432_v36 = vld [vmem:[%s11075_s9 + $0x90] sm:$0xff]  ;;  %v1450_v10 = vld [vmem:[%s11075_s9 + $0x120] sm:$0xff]  ;;  %v1455_v14 = vld [vmem:[%s11075_s9 + $0x148] sm:$0xff] }
  0xca   : > { %1099 = vmatprep.mubr.f32.mxu0 %v7041_v4  ;;  %1170 = vmatprep.mubr.f32.mxu1 %v7041_v4  ;;  %v1436_v37 = vld [vmem:[%s11075_s9 + $0xb0] sm:$0xff]  ;;  %v1459_v15 = vld [vmem:[%s11075_s9 + $0x168] sm:$0xff]  ;;  %v1461_v17 = vld [vmem:[%s11075_s9 + $0x178] sm:$0xff] }
  0xcb   : > { %5616 = vmatprep.subr.bf16.mxu0 %v7044_v40  ;;  %5621 = vmatprep.subr.bf16.mxu1 %v5620_v8  ;;  %v1458_v22 = vld [vmem:[%s11075_s9 + $0x160] sm:$0xff]  ;;  %v1456_v23 = vld [vmem:[%s11075_s9 + $0x150] sm:$0xff]  ;;  %v1463_v26 = vld [vmem:[%s11075_s9 + $0x188] sm:$0xff] }
  0xcc   : > { %5366 = vmatmul.mubr.msk.f32.vlgmr.msra.gmra.mrb[4].mxu0 %vm707_vm13, %v674_v19  ;;  %5369 = vmatmul.mubr.msk.f32.vlgmr.msra.gmra.mrb[4].mxu1 %vm707_vm13, %v674_v19  ;;  %v1467_v27 = vld [vmem:[%s11075_s9 + $0x1a8] sm:$0xff]  ;;  %v1465_v28 = vld [vmem:[%s11075_s9 + $0x198] sm:$0xff]  ;;  %v1462_v33 = vld [vmem:[%s11075_s9 + $0x180] sm:$0xff] }
  0xcd   : > { %5619 = vmatpush3.bf16.msk.msra.mxu0 %vm7273_vm12, %v5617_v41  ;;  %5525 = vmatprep.mubr.msk.f32.mxu0 %vm7045_vm14, %v7041_v4  ;;  %v1443_v41 = vld [vmem:[%s11075_s9 + $0xe8] sm:$0xff]  ;;  %v5644_v32 = vpack.c.bf16 %v1467_v27, %v1463_v26  ;;  %v1464_v35 = vld [vmem:[%s11075_s9 + $0x190] sm:$0xff]  ;;  %vm3965_vm12 = vcmask 588800   ;;  %vm3915_vm14 = vcmask 949248  }
  0xce   : > { %6023 = vmatprep.subr.bf16.mxu0 %v6022_v11  ;;  %5623 = vmatpush1.bf16.msra.mxu1 %v5622_v12  ;;  %v1448_v11 = vld [vmem:[%s11075_s9 + $0x110] sm:$0xff]  ;;  %v6038_v12 = vpack.c.bf16 %v1453_v6, %v1449_v5  ;;  %v1481_v5 = vld [vmem:[%s11075_s9 + $0x218] sm:$0xff]  ;;  %v1495_v26 = vld [vmem:[%s11075_s9 + $0x288] sm:$0xff] }
  0xcf   : > { %5625 = vmatprep.subr.bf16.mxu1 %v5624_v20  ;;  %v5640_v20 = vpack.c.bf16 %v1459_v15, %v1455_v14  ;;  %v1485_v6 = vld [vmem:[%s11075_s9 + $0x238] sm:$0xff]  ;;  %v1487_v14 = vld [vmem:[%s11075_s9 + $0x248] sm:$0xff] }
  0xd0   : > { %5526 = vmatmul.mubr.msk.f32.vlgmr.msra.gmra.mrb[6].mxu0 %vm707_vm13, %v674_v19  ;;  %v1429_v19 = vld [vmem:[%s11075_s9 + $0x78] sm:$0xff]  ;;  %v1491_v15 = vld [vmem:[%s11075_s9 + $0x268] sm:$0xff]  ;;  %vm3907_vm13 = vcmask 957440  }
  0xd1   : > { %v6026_v21 = vpack.c.bf16 %v1429_v19, %v1425_v18  ;;  %6025 = vmatpush1.bf16.msra.mxu0 %v6024_v16  ;;  %v1457_v16 = vld [vmem:[%s11075_s9 + $0x158] sm:$0xff]  ;;  %v5638_v18 = vpack.c.bf16 %v1450_v10, %v1446_v3  ;;  %v6040_v19 = vpack.c.bf16 %v1452_v13, %v1448_v11  ;;  %v1478_v3 = vld [vmem:[%s11075_s9 + $0x200] sm:$0xff]  ;;  %v1480_v11 = vld [vmem:[%s11075_s9 + $0x210] sm:$0xff] }
  0xd2   : > { %5627 = vmatpush1.bf16.msra.mxu1 %v5626_v25  ;;  %v6042_v24 = vpack.c.bf16 %v1461_v17, %v1457_v16  ;;  %v1460_v25 = vld [vmem:[%s11075_s9 + $0x170] sm:$0xff]  ;;  %v1482_v10 = vld [vmem:[%s11075_s9 + $0x220] sm:$0xff]  ;;  %v1489_v16 = vld [vmem:[%s11075_s9 + $0x258] sm:$0xff] }
  0xd3   : > { %6027 = vmatprep.subr.bf16.mxu0 %v6026_v21  ;;  %5629 = vmatprep.subr.bf16.mxu1 %v5628_v30  ;;  %v1454_v21 = vld [vmem:[%s11075_s9 + $0x140] sm:$0xff]  ;;  %v6044_v31 = vpack.c.bf16 %v1460_v25, %v1456_v23  ;;  %v1484_v13 = vld [vmem:[%s11075_s9 + $0x230] sm:$0xff]  ;;  %v1493_v17 = vld [vmem:[%s11075_s9 + $0x278] sm:$0xff] }
  0xd4   : > { %v5642_v30 = vpack.c.bf16 %v1458_v22, %v1454_v21  ;;  %v1486_v21 = vld [vmem:[%s11075_s9 + $0x240] sm:$0xff]  ;;  %v1488_v23 = vld [vmem:[%s11075_s9 + $0x250] sm:$0xff]  ;;  %v1499_v27 = vld [vmem:[%s11075_s9 + $0x2a8] sm:$0xff] }
  0xd5   : > { %6029 = vmatpush1.bf16.msra.mxu0 %v6028_v29  ;;  %v1469_v29 = vld [vmem:[%s11075_s9 + $0x1b8] sm:$0xff]  ;;  %v1490_v22 = vld [vmem:[%s11075_s9 + $0x260] sm:$0xff]  ;;  %v1492_v25 = vld [vmem:[%s11075_s9 + $0x270] sm:$0xff] }
  0xd6   : > { %6031 = vmatprep.subr.bf16.mxu0 %v6030_v34  ;;  %5631 = vmatpush1.bf16.msra.mxu1 %v5630_v38  ;;  %v1466_v34 = vld [vmem:[%s11075_s9 + $0x1a0] sm:$0xff]  ;;  %v1471_v38 = vld [vmem:[%s11075_s9 + $0x1c8] sm:$0xff] }
 0x197   : > { %v817_v43 = vpop.f32.mrb[0].mxu0  ;;  %v888_v44 = vpop.f32.mrb[0].mxu1 }
 0x198   : > { %v889_v45 = vadd.f32 %v888_v44, %v7319_v42  ;;  %v819_v46 = vpop.f32.mrb[1].mxu0  ;;  %v890_v47 = vpop.f32.mrb[1].mxu1  ;;  %v818_v48 = vadd.f32 %v817_v43, %v7319_v42  ;;  %v1441_v43 = vld [vmem:[%s11075_s9 + $0xd8] sm:$0xff]  ;;  %v6032_v44 = vpack.c.bf16 %v1436_v37, %v1432_v36  ;;  %v6046_v36 = vpack.c.bf16 %v1469_v29, %v1465_v28  ;;  %v1468_v37 = vld [vmem:[%s11075_s9 + $0x1b0] sm:$0xff] }
 0x199   : > { %v820_v49 = vadd.f32 %v819_v46, %v7319_v42  ;;  %v891_v50 = vadd.f32 %v890_v47, %v7319_v42  ;;  %v1445_v46 = vld [vmem:[%s11075_s9 + $0xf8] sm:$0xff]  ;;  %v1438_v47 = vld [vmem:[%s11075_s9 + $0xc0] sm:$0xff] }
 0x19a   : > { %6923 = vtanh.f32 %v889_v45  ;;  %v5632_v45 = vpack.c.bf16 %v1443_v41, %v1439_v39  ;;  %6033 = vmatpush1.bf16.msra.mxu0 %v6032_v44  ;;  %v1475_v39 = vld [vmem:[%s11075_s9 + $0x1e8] sm:$0xff]  ;;  %v1473_v41 = vld [vmem:[%s11075_s9 + $0x1d8] sm:$0xff]  ;;  %v5646_v44 = vpack.c.bf16 %v1466_v34, %v1462_v33  ;;  %v1494_v33 = vld [vmem:[%s11075_s9 + $0x280] sm:$0xff] }
 0x19b   : > { %v7325_v51 = vpop.f32.mrb[2].mxu0  ;;  %v7327_v52 = vpop.f32.mrb[2].mxu1  ;;  %6925 = vtanh.f32 %v820_v49  ;;  %v6034_v49 = vpack.c.bf16 %v1445_v46, %v1441_v43  ;;  %v1477_v43 = vld [vmem:[%s11075_s9 + $0x1f8] sm:$0xff]  ;;  %v5648_v46 = vpack.c.bf16 %v1475_v39, %v1471_v38  ;;  %v1498_v34 = vld [vmem:[%s11075_s9 + $0x2a0] sm:$0xff]  ;;  %v1503_v38 = vld [vmem:[%s11075_s9 + $0x2c8] sm:$0xff] }
 0x19c   : > { %v7329_v53 = vpop.f32.mrb[3].mxu0  ;;  %v7331_v54 = vpop.f32.mrb[3].mxu1  ;;  %6927 = vtanh.f32 %v818_v48  ;;  %v1442_v48 = vld [vmem:[%s11075_s9 + $0xe0] sm:$0xff]  ;;  %5633 = vmatprep.subr.bf16.mxu1 %v5632_v45  ;;  %v6048_v45 = vpack.c.bf16 %v1468_v37, %v1464_v35  ;;  %v1497_v28 = vld [vmem:[%s11075_s9 + $0x298] sm:$0xff]  ;;  %v1496_v35 = vld [vmem:[%s11075_s9 + $0x290] sm:$0xff] }
 0x19d   : > { %6929 = vtanh.f32 %v891_v50  ;;  %v1440_v50 = vld [vmem:[%s11075_s9 + $0xd0] sm:$0xff]  ;;  %v5634_v7 = vpack.c.bf16 %v1442_v48, %v1438_v47  ;;  %6035 = vmatprep.subr.bf16.mxu0 %v6034_v49  ;;  %v1470_v47 = vld [vmem:[%s11075_s9 + $0x1c0] sm:$0xff]  ;;  %v1501_v29 = vld [vmem:[%s11075_s9 + $0x2b8] sm:$0xff] }
 0x19e   : > { %v1474_v48 = vld [vmem:[%s11075_s9 + $0x1e0] sm:$0xff]  ;;  %v1472_v49 = vld [vmem:[%s11075_s9 + $0x1d0] sm:$0xff]  ;;  %v1507_v39 = vld [vmem:[%s11075_s9 + $0x2e8] sm:$0xff] }
 0x19f   : > { %v7333_v55 = vpop.f32.mrb[4].mxu0  ;;  %v7335_v56 = vpop.f32.mrb[4].mxu1  ;;  %5635 = vmatpush1.bf16.msra.mxu1 %v5634_v7  ;;  %v5650_v7 = vpack.c.bf16 %v1474_v48, %v1470_v47  ;;  %v1500_v37 = vld [vmem:[%s11075_s9 + $0x2b0] sm:$0xff]  ;;  %v1502_v47 = vld [vmem:[%s11075_s9 + $0x2c0] sm:$0xff] }
 0x1a0   : > { %v7337_v57 = vpop.f32.mrb[5].mxu0  ;;  %v7339_v58 = vpop.f32.mrb[5].mxu1  ;;  %v1506_v48 = vld [vmem:[%s11075_s9 + $0x2e0] sm:$0xff] }
 0x1a3   : > { %v7341_v59 = vpop.f32.mrb[6].mxu0 }
 0x1a4   : > { %v5527_v60 = vpop.f32.mrb[7].mxu0  ;;  %v7343_v61 = vpop.eup %6923 }
 0x1a5   : > { %v7345_v62 = vpop.eup %6925  ;;  %v1444_v60 = vld [vmem:[%s11075_s9 + $0xf0] sm:$0xff] }
 0x1a6   : > { %v7347_v63 = vpop.eup %6927  ;;  %v6857_v0 = vpack.i.bf16 %v7343_v61, %v7345_v62  ;;  %v6036_v8 = vpack.c.bf16 %v1444_v60, %v1440_v50  ;;  %v6050_v50 = vpack.c.bf16 %v1477_v43, %v1473_v41  ;;  %v1476_v60 = vld [vmem:[%s11075_s9 + $0x1f0] sm:$0xff]  ;;  %v1505_v41 = vld [vmem:[%s11075_s9 + $0x2d8] sm:$0xff] }
 0x1a7   : > { %v7351_v1 = vpop.eup %6929  ;;  %v1509_v43 = vld [vmem:[%s11075_s9 + $0x2f8] sm:$0xff] }
 0x1a8   : > { %6858 = vrot.lane.b32.xlu1 %v6857_v0, %s11092_s23  ;;  %v6862_v2 = vpack.i.bf16 %v7347_v63, %v7351_v1  ;;  %v1447_v0 = vld [vmem:[%s11075_s9 + $0x108] sm:$0xff]  ;;  %6037 = vmatpush1.bf16.msra.mxu0 %v6036_v8  ;;  %v6052_v8 = vpack.c.bf16 %v1476_v60, %v1472_v49  ;;  %v1504_v49 = vld [vmem:[%s11075_s9 + $0x2d0] sm:$0xff] }
 0x1a9   : > { %6039 = vmatprep.subr.bf16.mxu0 %v6038_v12  ;;  %v6054_v12 = vpack.c.bf16 %v1485_v6, %v1481_v5  ;;  %v1508_v60 = vld [vmem:[%s11075_s9 + $0x2f0] sm:$0xff]  ;;  %v1513_v5 = vld [vmem:[%s11075_s9 + $0x318] sm:$0xff] }
 0x1aa   : > { %v1517_v6 = vld [vmem:[%s11075_s9 + $0x338] sm:$0xff] }
 0x1ac   : > { %6863 = vrot.lane.b32.xlu1 %v6862_v2, %s11092_s23  ;;  %v1451_v2 = vld [vmem:[%s11075_s9 + $0x128] sm:$0xff]  ;;  %6041 = vmatpush1.bf16.msra.mxu0 %v6040_v19  ;;  %v6056_v19 = vpack.c.bf16 %v1484_v13, %v1480_v11  ;;  %v1512_v11 = vld [vmem:[%s11075_s9 + $0x310] sm:$0xff]  ;;  %s11117_s23 = smov 94  }
 0x1ad   : > { %v5636_v9 = vpack.c.bf16 %v1451_v2, %v1447_v0  ;;  %6043 = vmatprep.subr.bf16.mxu0 %v6042_v24  ;;  %v1479_v0 = vld [vmem:[%s11075_s9 + $0x208] sm:$0xff]  ;;  %v6058_v24 = vpack.c.bf16 %v1493_v17, %v1489_v16  ;;  %v1516_v13 = vld [vmem:[%s11075_s9 + $0x330] sm:$0xff]  ;;  %v1521_v16 = vld [vmem:[%s11075_s9 + $0x358] sm:$0xff] }
 0x1ae   : > { %v1483_v2 = vld [vmem:[%s11075_s9 + $0x228] sm:$0xff]  ;;  %v1525_v17 = vld [vmem:[%s11075_s9 + $0x378] sm:$0xff] }
 0x1af   : > { %5637 = vmatprep.subr.bf16.mxu1 %v5636_v9  ;;  %v5652_v9 = vpack.c.bf16 %v1483_v2, %v1479_v0  ;;  %v1511_v0 = vld [vmem:[%s11075_s9 + $0x308] sm:$0xff] }
 0x1b0   : > { %5639 = vmatpush1.bf16.msra.mxu1 %v5638_v18  ;;  %6045 = vmatpush1.bf16.msra.mxu0 %v6044_v31  ;;  %v5654_v18 = vpack.c.bf16 %v1482_v10, %v1478_v3  ;;  %v6060_v31 = vpack.c.bf16 %v1492_v25, %v1488_v23  ;;  %v1515_v2 = vld [vmem:[%s11075_s9 + $0x328] sm:$0xff]  ;;  %v1510_v3 = vld [vmem:[%s11075_s9 + $0x300] sm:$0xff]  ;;  %v6074_v23 = vpack.c.bf16 %v1525_v17, %v1521_v16  ;;  %v1524_v25 = vld [vmem:[%s11075_s9 + $0x370] sm:$0xff] }
 0x1b1   : > { %5641 = vmatprep.subr.bf16.mxu1 %v5640_v20  ;;  %6047 = vmatprep.subr.bf16.mxu0 %v6046_v36  ;;  %v5656_v20 = vpack.c.bf16 %v1491_v15, %v1487_v14  ;;  %v6062_v36 = vpack.c.bf16 %v1501_v29, %v1497_v28  ;;  %v1514_v10 = vld [vmem:[%s11075_s9 + $0x320] sm:$0xff]  ;;  %v1519_v14 = vld [vmem:[%s11075_s9 + $0x348] sm:$0xff]  ;;  %v960_v28 = vadd.f32 %v7325_v51, %v7319_v42  ;;  %v1533_v51 = vld [vmem:[%s11075_s9 + $0x3b8] sm:$0xff] }
 0x1b2   : > { %v1523_v15 = vld [vmem:[%s11075_s9 + $0x368] sm:$0xff]  ;;  %v1175_v17 = vadd.f32 %v7339_v58, %v7319_v42  ;;  %v1244_v58 = vadd.f32 %v7341_v59, %v7319_v42 }
 0x1b3   : > { %v1527_v29 = vld [vmem:[%s11075_s9 + $0x388] sm:$0xff]  ;;  %6931 = vtanh.f32 %v960_v28 }
 0x1b4   : > { %5643 = vmatpush1.bf16.msra.mxu1 %v5642_v30  ;;  %6049 = vmatpush1.bf16.msra.mxu0 %v6048_v45  ;;  %v5658_v30 = vpack.c.bf16 %v1490_v22, %v1486_v21  ;;  %v6064_v45 = vpack.c.bf16 %v1500_v37, %v1496_v35  ;;  %v1518_v21 = vld [vmem:[%s11075_s9 + $0x340] sm:$0xff]  ;;  %v1543_v59 = vld [vmem:[%s11075_s9 + $0x408] sm:$0xff] }
 0x1b5   : > { %5645 = vmatprep.subr.bf16.mxu1 %v5644_v32  ;;  %6051 = vmatprep.subr.bf16.mxu0 %v6050_v50  ;;  %v5660_v32 = vpack.c.bf16 %v1499_v27, %v1495_v26  ;;  %v6066_v50 = vpack.c.bf16 %v1509_v43, %v1505_v41  ;;  %v1522_v22 = vld [vmem:[%s11075_s9 + $0x360] sm:$0xff]  ;;  %v1033_v43 = vadd.f32 %v7331_v54, %v7319_v42 }
 0x1b6   : > { %v5674_v26 = vpack.c.bf16 %v1522_v22, %v1518_v21  ;;  %v1530_v35 = vld [vmem:[%s11075_s9 + $0x3a0] sm:$0xff]  ;;  %v1102_v54 = vadd.f32 %v7333_v55, %v7319_v42 }
 0x1b8   : > { %5647 = vmatpush1.bf16.msra.mxu1 %v5646_v44  ;;  %6053 = vmatpush1.bf16.msra.mxu0 %v6052_v8  ;;  %v5662_v44 = vpack.c.bf16 %v1498_v34, %v1494_v33  ;;  %v6068_v8 = vpack.c.bf16 %v1508_v60, %v1504_v49  ;;  %v1526_v34 = vld [vmem:[%s11075_s9 + $0x380] sm:$0xff] }
 0x1b9   : > { %5649 = vmatprep.subr.bf16.mxu1 %v5648_v46  ;;  %6055 = vmatprep.subr.bf16.mxu0 %v6054_v12  ;;  %v5664_v46 = vpack.c.bf16 %v1507_v39, %v1503_v38  ;;  %v6070_v12 = vpack.c.bf16 %v1517_v6, %v1513_v5  ;;  %v5678_v37 = vpack.c.bf16 %v1530_v35, %v1526_v34  ;;  %v1528_v38 = vld [vmem:[%s11075_s9 + $0x390] sm:$0xff]  ;;  %v1534_v60 = vld [vmem:[%s11075_s9 + $0x3c0] sm:$0xff] }
 0x1ba   : > { %v1031_v39 = vadd.f32 %v7327_v52, %v7319_v42  ;;  %v1539_v52 = vld [vmem:[%s11075_s9 + $0x3e8] sm:$0xff] }
 0x1bc   : > { %5651 = vmatpush1.bf16.msra.mxu1 %v5650_v7  ;;  %6057 = vmatpush1.bf16.msra.mxu0 %v6056_v19  ;;  %v5666_v7 = vpack.c.bf16 %v1506_v48, %v1502_v47  ;;  %v6072_v19 = vpack.c.bf16 %v1516_v13, %v1512_v11  ;;  %v1535_v47 = vld [vmem:[%s11075_s9 + $0x3c8] sm:$0xff]  ;;  %v1537_v48 = vld [vmem:[%s11075_s9 + $0x3d8] sm:$0xff]  ;;  %v1173_v11 = vadd.f32 %v7335_v56, %v7319_v42 }
 0x1bd   : > { %5653 = vmatprep.subr.bf16.mxu1 %v5652_v9  ;;  %6059 = vmatprep.subr.bf16.mxu0 %v6058_v24  ;;  %v5668_v9 = vpack.c.bf16 %v1515_v2, %v1511_v0  ;;  %v1520_v24 = vld [vmem:[%s11075_s9 + $0x350] sm:$0xff]  ;;  %v5680_v49 = vpack.c.bf16 %v1539_v52, %v1535_v47  ;;  %v1538_v0 = vld [vmem:[%s11075_s9 + $0x3e0] sm:$0xff]  ;;  %v1104_v2 = vadd.f32 %v7337_v57, %v7319_v42  ;;  %v7771_v56 = vpop.eup %6931 }
 0x1be   : > { %v6076_v27 = vpack.c.bf16 %v1524_v25, %v1520_v24  ;;  %v5682_v6 = vpack.c.bf16 %v1538_v0, %v1534_v60 }
 0x1c0   : > { %5655 = vmatpush1.bf16.msra.mxu1 %v5654_v18  ;;  %6061 = vmatpush1.bf16.msra.mxu0 %v6060_v31  ;;  %v5670_v18 = vpack.c.bf16 %v1514_v10, %v1510_v3  ;;  %v1529_v31 = vld [vmem:[%s11075_s9 + $0x398] sm:$0xff] }
 0x1c1   : > { %5657 = vmatprep.subr.bf16.mxu1 %v5656_v20  ;;  %6063 = vmatprep.subr.bf16.mxu0 %v6062_v36  ;;  %v5672_v20 = vpack.c.bf16 %v1523_v15, %v1519_v14  ;;  %v6078_v36 = vpack.c.bf16 %v1533_v51, %v1529_v31  ;;  %v1546_v51 = vld [vmem:[%s11075_s9 + $0x420] sm:$0xff] }
 0x1c4   : > { %5659 = vmatpush1.bf16.msra.mxu1 %v5658_v30  ;;  %6065 = vmatpush1.bf16.msra.mxu0 %v6064_v45  ;;  %v1531_v30 = vld [vmem:[%s11075_s9 + $0x3a8] sm:$0xff] }
 0x1c5   : > { %5661 = vmatprep.subr.bf16.mxu1 %v5660_v32  ;;  %6067 = vmatprep.subr.bf16.mxu0 %v6066_v50  ;;  %v962_v32 = vadd.f32 %v7329_v53, %v7319_v42  ;;  %v5676_v33 = vpack.c.bf16 %v1531_v30, %v1527_v29  ;;  %v1532_v53 = vld [vmem:[%s11075_s9 + $0x3b0] sm:$0xff]  ;;  %v1541_v50 = vld [vmem:[%s11075_s9 + $0x3f8] sm:$0xff] }
 0x1c6   : > { %v6080_v41 = vpack.c.bf16 %v1532_v53, %v1528_v38  ;;  %v6082_v55 = vpack.c.bf16 %v1541_v50, %v1537_v48  ;;  %v1549_v29 = vld [vmem:[%s11075_s9 + $0x438] sm:$0xff]  ;;  %v1551_v38 = vld [vmem:[%s11075_s9 + $0x448] sm:$0xff] }
 0x1c7   : > { %6933 = vtanh.f32 %v962_v32 }
 0x1c8   : > { %5663 = vmatpush1.bf16.msra.mxu1 %v5662_v44  ;;  %6069 = vmatpush1.bf16.msra.mxu0 %v6068_v8  ;;  %6935 = vtanh.f32 %v1031_v39  ;;  %v1540_v8 = vld [vmem:[%s11075_s9 + $0x3f0] sm:$0xff]  ;;  %v1555_v39 = vld [vmem:[%s11075_s9 + $0x468] sm:$0xff] }
 0x1c9   : > { %5665 = vmatprep.subr.bf16.mxu1 %v5664_v46  ;;  %6071 = vmatprep.subr.bf16.mxu0 %v6070_v12  ;;  %6937 = vtanh.f32 %v1033_v43  ;;  %v1557_v43 = vld [vmem:[%s11075_s9 + $0x478] sm:$0xff]  ;;  %v5688_v60 = vpack.c.bf16 %v1555_v39, %v1551_v38 }
 0x1ca   : > { %6939 = vtanh.f32 %v1102_v54 }
 0x1cb   : > { %6941 = vtanh.f32 %v1104_v2  ;;  %v1550_v2 = vld [vmem:[%s11075_s9 + $0x440] sm:$0xff] }
 0x1cc   : > { %5667 = vmatpush1.bf16.msra.mxu1 %v5666_v7  ;;  %6073 = vmatpush1.bf16.msra.mxu0 %v6072_v19  ;;  %v1536_v7 = vld [vmem:[%s11075_s9 + $0x3d0] sm:$0xff]  ;;  %6943 = vtanh.f32 %v1173_v11  ;;  %v1561_v11 = vld [vmem:[%s11075_s9 + $0x498] sm:$0xff] }
 0x1cd   : > { %5669 = vmatprep.subr.bf16.mxu1 %v5668_v9  ;;  %6075 = vmatprep.subr.bf16.mxu0 %v6074_v23  ;;  %v6084_v57 = vpack.c.bf16 %v1540_v8, %v1536_v7  ;;  %6945 = vtanh.f32 %v1175_v17  ;;  %v1556_v7 = vld [vmem:[%s11075_s9 + $0x470] sm:$0xff]  ;;  %v1559_v8 = vld [vmem:[%s11075_s9 + $0x488] sm:$0xff] }
 0x1ce   : > { %6947 = vtanh.f32 %v1244_v58  ;;  %v1558_v58 = vld [vmem:[%s11075_s9 + $0x480] sm:$0xff] }
 0x1d0   : > { %5671 = vmatpush1.bf16.msra.mxu1 %v5670_v18  ;;  %6077 = vmatpush1.bf16.msra.mxu0 %v6076_v27  ;;  %v1545_v27 = vld [vmem:[%s11075_s9 + $0x418] sm:$0xff] }
 0x1d1   : > { %5673 = vmatprep.subr.bf16.mxu1 %v5672_v20  ;;  %6079 = vmatprep.subr.bf16.mxu0 %v6078_v36  ;;  %v7775_v19 = vpop.eup %6933  ;;  %v6086_v30 = vpack.c.bf16 %v1549_v29, %v1545_v27  ;;  %v1544_v36 = vld [vmem:[%s11075_s9 + $0x410] sm:$0xff]  ;;  %v1569_v29 = vld [vmem:[%s11075_s9 + $0x4d8] sm:$0xff] }
 0x1d4   : > { %5675 = vmatpush1.bf16.msra.mxu1 %v5674_v26  ;;  %6081 = vmatpush1.bf16.msra.mxu0 %v6080_v41  ;;  %v1547_v26 = vld [vmem:[%s11075_s9 + $0x428] sm:$0xff]  ;;  %v1553_v41 = vld [vmem:[%s11075_s9 + $0x458] sm:$0xff] }
 0x1d5   : > { %5677 = vmatprep.subr.bf16.mxu1 %v5676_v33  ;;  %6083 = vmatprep.subr.bf16.mxu0 %v6082_v55  ;;  %v5684_v28 = vpack.c.bf16 %v1547_v26, %v1543_v59  ;;  %v1542_v33 = vld [vmem:[%s11075_s9 + $0x400] sm:$0xff]  ;;  %v6090_v0 = vpack.c.bf16 %v1557_v43, %v1553_v41  ;;  %v1567_v59 = vld [vmem:[%s11075_s9 + $0x4c8] sm:$0xff] }
 0x1d6   : > { %v5686_v48 = vpack.c.bf16 %v1546_v51, %v1542_v33  ;;  %v1554_v55 = vld [vmem:[%s11075_s9 + $0x460] sm:$0xff]  ;;  %v1571_v26 = vld [vmem:[%s11075_s9 + $0x4e8] sm:$0xff] }
 0x1d7   : > { %v5696_v39 = vpack.c.bf16 %v1571_v26, %v1567_v59  ;;  %v1566_v41 = vld [vmem:[%s11075_s9 + $0x4c0] sm:$0xff] }
 0x1d8   : > { %5679 = vmatpush1.bf16.msra.mxu1 %v5678_v37  ;;  %6085 = vmatpush1.bf16.msra.mxu0 %v6084_v57  ;;  %v1548_v37 = vld [vmem:[%s11075_s9 + $0x430] sm:$0xff]  ;;  %v1582_v59 = vld [vmem:[%s11075_s9 + $0x540] sm:$0xff] }
 0x1d9   : > { %5681 = vmatprep.subr.bf16.mxu1 %v5680_v49  ;;  %6087 = vmatprep.subr.bf16.mxu0 %v6086_v30  ;;  %v6088_v54 = vpack.c.bf16 %v1548_v37, %v1544_v36  ;;  %v1573_v30 = vld [vmem:[%s11075_s9 + $0x4f8] sm:$0xff] }
 0x1dc   : > { %5683 = vmatpush1.bf16.msra.mxu1 %v5682_v6  ;;  %v1552_v6 = vld [vmem:[%s11075_s9 + $0x450] sm:$0xff] }
 0x1dd   : > { %5685 = vmatprep.subr.bf16.mxu1 %v5684_v28 }
 0x21a   : > { %v6859_v44 = vpop.permute.xlu1 %6858 }
 0x21b   : > { %v6861_v45 = vunpack.i.h.bf16 %v6859_v44  ;;  %v6860_v46 = vunpack.i.l.bf16 %v6859_v44 }
 0x21d   : > { %v1300_v9 = vsel %vm537_vm3, %v6860_v46, %v6861_v45 }
 0x21e   : > { %v7747_v5 = vpop.permute.xlu1 %6863  ;;  %v1325_v15 = vmax.f32 %v7345_v62, %v1300_v9  ;;  %v6872_v62 = vpack.i.bf16 %v7775_v19, %v7771_v56  ;;  %v1563_v9 = vld [vmem:[%s11075_s9 + $0x4a8] sm:$0xff] }
 0x21f   : > { %v6866_v3 = vunpack.i.h.bf16 %v7747_v5  ;;  %v6865_v10 = vunpack.i.l.bf16 %v7747_v5 }
 0x221   : > { %v1301_v12 = vsel %vm537_vm3, %v6861_v45, %v6865_v10  ;;  %v1299_v13 = vsel %vm537_vm3, %v6866_v3, %v6860_v46 }
 0x222   : > { %v1324_v14 = vmax.f32 %v7347_v63, %v1299_v13  ;;  %v7767_v16 = vmax.f32 %v7343_v61, %v1301_v12  ;;  %v7778_v63 = vpop.eup %6935  ;;  %v1565_v12 = vld [vmem:[%s11075_s9 + $0x4b8] sm:$0xff] }
 0x223   : > { %v7780_v61 = vpop.eup %6937 }
 0x224   : > { %1350 = vrot.lane.b32.xlu1 %v1324_v14, %s11117_s23  ;;  %v6867_v18 = vpack.i.bf16 %v7767_v16, %v1325_v15  ;;  %v7787_v20 = vpop.eup %6939  ;;  %v6882_v21 = vpack.i.bf16 %v7780_v61, %v7778_v63 }
 0x225   : > { %v7791_v22 = vpop.eup %6941 }
 0x226   : > { %6868 = vrot.lane.b32.xlu0 %v6867_v18, %s11117_s23  ;;  %v7794_v23 = vpop.eup %6943  ;;  %v6892_v24 = vpack.i.bf16 %v7791_v22, %v7787_v20  ;;  %v6092_v18 = vpack.c.bf16 %v1556_v7, %v1552_v6 }
 0x227   : > { %v7798_v25 = vpop.eup %6945 }
 0x228   : > { %v6902_v42 = vpack.i.bf16 %v7798_v25, %v7794_v23  ;;  %v7816_v31 = vpop.eup %6947 }
 0x22a   : > { %6873 = vrot.lane.b32.xlu0 %v6872_v62, %s11118_s26  ;;  %v5692_v62 = vpack.c.bf16 %v1563_v9, %v1559_v8  ;;  %v1574_v9 = vld [vmem:[%s11075_s9 + $0x500] sm:$0xff] }
 0x22e   : > { %6883 = vrot.lane.b32.xlu0 %v6882_v21, %s11118_s26 }
 0x232   : > { %6893 = vrot.lane.b32.xlu0 %v6892_v24, %s11118_s26  ;;  %v6094_v24 = vpack.c.bf16 %v1565_v12, %v1561_v11  ;;  %v1580_v11 = vld [vmem:[%s11075_s9 + $0x530] sm:$0xff]  ;;  %v1583_v12 = vld [vmem:[%s11075_s9 + $0x548] sm:$0xff] }
 0x236   : > { %6903 = vrot.lane.b32.xlu0 %v6902_v42, %s11118_s26  ;;  %v1564_v42 = vld [vmem:[%s11075_s9 + $0x4b0] sm:$0xff] }
 0x23a   : > { %1297 = vrot.lane.b32.xlu0 %v7816_v31, %s11118_s26 }
 0x296   : > { %v1351_v53 = vpop.permute.xlu1 %1350 }
 0x298   : > { %v7820_v32 = vpop.permute.xlu0 %6868 }
 0x299   : > { %v6871_v34 = vunpack.i.h.bf16 %v7820_v32  ;;  %v6870_v35 = vunpack.i.l.bf16 %v7820_v32  ;;  %v1682_v32 = vld [vmem:[%s11075_s9 + $0x860] sm:$0xff] }
 0x29b   : > { %v1376_v44 = vsel %vm573_vm4, %v1351_v53, %v6870_v35  ;;  %v1377_v45 = vsel %vm573_vm4, %v6870_v35, %v6871_v34 }
 0x29c   : > { %v1401_v46 = vmax.f32 %v1324_v14, %v1376_v44  ;;  %v6874_v47 = vpop.permute.xlu0 %6873  ;;  %v1402_v52 = vmax.f32 %v1325_v15, %v1377_v45  ;;  %v6098_v44 = vpack.c.bf16 %v1573_v30, %v1569_v29  ;;  %v1572_v45 = vld [vmem:[%s11075_s9 + $0x4f0] sm:$0xff]  ;;  %v1595_v29 = vld [vmem:[%s11075_s9 + $0x5a8] sm:$0xff] }
 0x29d   : > { %v6876_v49 = vunpack.i.h.bf16 %v6874_v47  ;;  %v6875_v50 = vunpack.i.l.bf16 %v6874_v47  ;;  %v1579_v47 = vld [vmem:[%s11075_s9 + $0x528] sm:$0xff] }
 0x29e   : > { %2294 = vmatprep.mubr.f32.mxu1 %v1402_v52  ;;  %2791 = vmatprep.mubr.f32.mxu0 %v1402_v52 }
 0x29f   : > { %v1302_v3 = vsel %vm537_vm3, %v6865_v10, %v6875_v50  ;;  %v1303_v57 = vsel %vm537_vm3, %v6875_v50, %v6876_v49  ;;  %2295 = vmatmul.mubr.f32.vlgmr.msra.gmra.mrb[6].mxu1 %v1401_v46  ;;  %2792 = vmatmul.mubr.f32.vlgmr.msra.gmra.mrb[8].mxu0 %v1401_v46  ;;  %v5690_v10 = vpack.c.bf16 %v1554_v55, %v1550_v2  ;;  %v1575_v46 = vld [vmem:[%s11075_s9 + $0x508] sm:$0xff] }
 0x2a0   : > { %v6884_v13 = vpop.permute.xlu0 %6883  ;;  %v7881_v14 = vmax.f32 %v7351_v1, %v1302_v3  ;;  %v7884_v5 = vmax.f32 %v7771_v56, %v1303_v57  ;;  %5687 = vmatpush1.bf16.msra.mxu1 %v5686_v48  ;;  %6089 = vmatpush1.bf16.msra.mxu0 %v6088_v54  ;;  %v1562_v1 = vld [vmem:[%s11075_s9 + $0x4a0] sm:$0xff]  ;;  %v1560_v56 = vld [vmem:[%s11075_s9 + $0x490] sm:$0xff]  ;;  %v1577_v54 = vld [vmem:[%s11075_s9 + $0x518] sm:$0xff]  ;;  %v5700_v8 = vpack.c.bf16 %v1579_v47, %v1575_v46 }
 0x2a1   : > { %v6886_v15 = vunpack.i.h.bf16 %v6884_v13  ;;  %v6885_v17 = vunpack.i.l.bf16 %v6884_v13  ;;  %5689 = vmatprep.subr.bf16.mxu1 %v5688_v60  ;;  %6091 = vmatprep.subr.bf16.mxu0 %v6090_v0  ;;  %v5694_v36 = vpack.c.bf16 %v1562_v1, %v1558_v58  ;;  %v6096_v53 = vpack.c.bf16 %v1564_v42, %v1560_v56  ;;  %v1587_v13 = vld [vmem:[%s11075_s9 + $0x568] sm:$0xff]  ;;  %v1601_v47 = vld [vmem:[%s11075_s9 + $0x5d8] sm:$0xff] }
 0x2a2   : > { %v6877_v21 = vpack.i.bf16 %v7884_v5, %v7881_v14  ;;  %v5704_v42 = vpack.c.bf16 %v1587_v13, %v1583_v12  ;;  %v1603_v46 = vld [vmem:[%s11075_s9 + $0x5e8] sm:$0xff]  ;;  %v1610_v12 = vld [vmem:[%s11075_s9 + $0x620] sm:$0xff]  ;;  %v1608_v13 = vld [vmem:[%s11075_s9 + $0x610] sm:$0xff] }
 0x2a3   : > { %v1304_v27 = vsel %vm537_vm3, %v6876_v49, %v6885_v17  ;;  %v1305_v28 = vsel %vm537_vm3, %v6885_v17, %v6886_v15  ;;  %v1581_v49 = vld [vmem:[%s11075_s9 + $0x538] sm:$0xff] }
 0x2a4   : > { %v6894_v33 = vpop.permute.xlu0 %6893  ;;  %6878 = vrot.lane.b32.xlu1 %v6877_v21, %s11117_s23  ;;  %v7916_v51 = vmax.f32 %v7775_v19, %v1304_v27  ;;  %v7919_v35 = vmax.f32 %v7778_v63, %v1305_v28  ;;  %5691 = vmatpush1.bf16.msra.mxu1 %v5690_v10  ;;  %v1570_v19 = vld [vmem:[%s11075_s9 + $0x4e0] sm:$0xff]  ;;  %v1568_v63 = vld [vmem:[%s11075_s9 + $0x4d0] sm:$0xff]  ;;  %v6102_v57 = vpack.c.bf16 %v1581_v49, %v1577_v54  ;;  %v1585_v17 = vld [vmem:[%s11075_s9 + $0x558] sm:$0xff] }
 0x2a5   : > { %v6896_v37 = vunpack.i.h.bf16 %v6894_v33  ;;  %v6895_v38 = vunpack.i.l.bf16 %v6894_v33  ;;  %6093 = vmatpush1.bf16.msra.mxu0 %v6092_v18  ;;  %5693 = vmatprep.subr.bf16.mxu1 %v5692_v62  ;;  %v5698_v2 = vpack.c.bf16 %v1570_v19, %v1566_v41  ;;  %v6100_v7 = vpack.c.bf16 %v1572_v45, %v1568_v63  ;;  %v1589_v18 = vld [vmem:[%s11075_s9 + $0x578] sm:$0xff]  ;;  %v1588_v27 = vld [vmem:[%s11075_s9 + $0x570] sm:$0xff]  ;;  %v1591_v28 = vld [vmem:[%s11075_s9 + $0x588] sm:$0xff] }
 0x2a6   : > { %v6887_v43 = vpack.i.bf16 %v7919_v35, %v7916_v51  ;;  %6095 = vmatprep.subr.bf16.mxu0 %v6094_v24  ;;  %v6106_v26 = vpack.c.bf16 %v1589_v18, %v1585_v17  ;;  %v1593_v33 = vld [vmem:[%s11075_s9 + $0x598] sm:$0xff]  ;;  %v1594_v41 = vld [vmem:[%s11075_s9 + $0x5a0] sm:$0xff]  ;;  %v1592_v19 = vld [vmem:[%s11075_s9 + $0x590] sm:$0xff] }
 0x2a7   : > { %v1306_v52 = vsel %vm537_vm3, %v6886_v15, %v6895_v38  ;;  %v1307_v48 = vsel %vm537_vm3, %v6895_v38, %v6896_v37  ;;  %v1599_v45 = vld [vmem:[%s11075_s9 + $0x5c8] sm:$0xff]  ;;  %v1598_v49 = vld [vmem:[%s11075_s9 + $0x5c0] sm:$0xff] }
 0x2a8   : > { %v6904_v50 = vpop.permute.xlu0 %6903  ;;  %6888 = vrot.lane.b32.xlu1 %v6887_v43, %s11117_s23  ;;  %v7951_v60 = vmax.f32 %v7780_v61, %v1306_v52  ;;  %v7954_v0 = vmax.f32 %v7787_v20, %v1307_v48  ;;  %5695 = vmatpush1.bf16.msra.mxu1 %v5694_v36  ;;  %v1578_v61 = vld [vmem:[%s11075_s9 + $0x520] sm:$0xff]  ;;  %v1576_v20 = vld [vmem:[%s11075_s9 + $0x510] sm:$0xff]  ;;  %v1597_v36 = vld [vmem:[%s11075_s9 + $0x5b8] sm:$0xff]  ;;  %v5712_v54 = vpack.c.bf16 %v1603_v46, %v1599_v45 }
 0x2a9   : > { %v6906_v55 = vunpack.i.h.bf16 %v6904_v50  ;;  %v6905_v6 = vunpack.i.l.bf16 %v6904_v50  ;;  %6097 = vmatpush1.bf16.msra.mxu0 %v6096_v53  ;;  %5697 = vmatprep.subr.bf16.mxu1 %v5696_v39  ;;  %v5702_v56 = vpack.c.bf16 %v1578_v61, %v1574_v9  ;;  %v6104_v24 = vpack.c.bf16 %v1580_v11, %v1576_v20  ;;  %v1590_v39 = vld [vmem:[%s11075_s9 + $0x580] sm:$0xff]  ;;  %v1609_v9 = vld [vmem:[%s11075_s9 + $0x618] sm:$0xff]  ;;  %v1615_v17 = vld [vmem:[%s11075_s9 + $0x648] sm:$0xff] }
 0x2aa   : > { %v6897_v3 = vpack.i.bf16 %v7954_v0, %v7951_v60  ;;  %6099 = vmatprep.subr.bf16.mxu0 %v6098_v44  ;;  %v5708_v53 = vpack.c.bf16 %v1595_v29, %v1591_v28  ;;  %v6110_v43 = vpack.c.bf16 %v1597_v36, %v1593_v33  ;;  %v1596_v44 = vld [vmem:[%s11075_s9 + $0x5b0] sm:$0xff]  ;;  %v5710_v52 = vpack.c.bf16 %v1594_v41, %v1590_v39  ;;  %v1602_v50 = vld [vmem:[%s11075_s9 + $0x5e0] sm:$0xff]  ;;  %v1613_v61 = vld [vmem:[%s11075_s9 + $0x638] sm:$0xff] }
 0x2ab   : > { %v1308_v10 = vsel %vm537_vm3, %v6896_v37, %v6905_v6  ;;  %v1309_v15 = vsel %vm537_vm3, %v6905_v6, %v6906_v55  ;;  %v6112_v48 = vpack.c.bf16 %v1596_v44, %v1592_v19  ;;  %v1604_v6 = vld [vmem:[%s11075_s9 + $0x5f0] sm:$0xff]  ;;  %v5714_v20 = vpack.c.bf16 %v1602_v50, %v1598_v49  ;;  %v1606_v11 = vld [vmem:[%s11075_s9 + $0x600] sm:$0xff]  ;;  %v1619_v18 = vld [vmem:[%s11075_s9 + $0x668] sm:$0xff] }
 0x2ac   : > { %v1298_v62 = vpop.permute.xlu0 %1297  ;;  %6898 = vrot.lane.b32.xlu1 %v6897_v3, %s11117_s23  ;;  %v7986_v58 = vmax.f32 %v7791_v22, %v1308_v10  ;;  %v7989_v1 = vmax.f32 %v7794_v23, %v1309_v15  ;;  %5699 = vmatpush1.bf16.msra.mxu1 %v5698_v2  ;;  %v1586_v22 = vld [vmem:[%s11075_s9 + $0x560] sm:$0xff]  ;;  %v1584_v23 = vld [vmem:[%s11075_s9 + $0x550] sm:$0xff]  ;;  %v6118_v10 = vpack.c.bf16 %v1613_v61, %v1609_v9  ;;  %v1623_v28 = vld [vmem:[%s11075_s9 + $0x688] sm:$0xff] }
 0x2ad   : > { %v7992_v21 = vmax.f32 %v7816_v31, %v1298_v62  ;;  %6101 = vmatpush1.bf16.msra.mxu0 %v6100_v7  ;;  %5701 = vmatprep.subr.bf16.mxu1 %v5700_v8  ;;  %v1310_v30 = vsel %vm537_vm3, %v6906_v55, %v1298_v62  ;;  %v5706_v37 = vpack.c.bf16 %v1586_v22, %v1582_v59  ;;  %v1600_v2 = vld [vmem:[%s11075_s9 + $0x5d0] sm:$0xff]  ;;  %v1607_v7 = vld [vmem:[%s11075_s9 + $0x608] sm:$0xff]  ;;  %v1617_v62 = vld [vmem:[%s11075_s9 + $0x658] sm:$0xff] }
 0x2ae   : > { %v6907_v31 = vpack.i.bf16 %v7989_v1, %v7986_v58  ;;  %6103 = vmatprep.subr.bf16.mxu0 %v6102_v57  ;;  %v6108_v38 = vpack.c.bf16 %v1588_v27, %v1584_v23  ;;  %v8034_v63 = vmax.f32 %v7798_v25, %v1310_v30  ;;  %v1605_v25 = vld [vmem:[%s11075_s9 + $0x5f8] sm:$0xff]  ;;  %v1611_v8 = vld [vmem:[%s11075_s9 + $0x628] sm:$0xff]  ;;  %v6116_v3 = vpack.c.bf16 %v1604_v6, %v1600_v2  ;;  %v1612_v15 = vld [vmem:[%s11075_s9 + $0x630] sm:$0xff] }
 0x2af   : > { %1374 = vrot.lane.b32.xlu0 %v7992_v21, %s11117_s23  ;;  %v6114_v55 = vpack.c.bf16 %v1605_v25, %v1601_v47  ;;  %v5716_v57 = vpack.c.bf16 %v1611_v8, %v1607_v7  ;;  %v5720_v59 = vpack.c.bf16 %v1619_v18, %v1615_v17  ;;  %v1614_v22 = vld [vmem:[%s11075_s9 + $0x640] sm:$0xff]  ;;  %v1620_v27 = vld [vmem:[%s11075_s9 + $0x670] sm:$0xff]  ;;  %v1627_v29 = vld [vmem:[%s11075_s9 + $0x6a8] sm:$0xff] }
 0x2b0   : > { %6908 = vrot.lane.b32.xlu1 %v6907_v31, %s11117_s23  ;;  %5703 = vmatpush1.bf16.msra.mxu1 %v5702_v56  ;;  %v1621_v56 = vld [vmem:[%s11075_s9 + $0x678] sm:$0xff]  ;;  %v1618_v23 = vld [vmem:[%s11075_s9 + $0x660] sm:$0xff]  ;;  %v1616_v31 = vld [vmem:[%s11075_s9 + $0x650] sm:$0xff] }
 0x2b1   : > { %6105 = vmatpush1.bf16.msra.mxu0 %v6104_v24  ;;  %5705 = vmatprep.subr.bf16.mxu1 %v5704_v42  ;;  %v5718_v24 = vpack.c.bf16 %v1610_v12, %v1606_v11  ;;  %v6120_v42 = vpack.c.bf16 %v1612_v15, %v1608_v13  ;;  %v1625_v30 = vld [vmem:[%s11075_s9 + $0x698] sm:$0xff]  ;;  %v5722_v36 = vpack.c.bf16 %v1618_v23, %v1614_v22  ;;  %v1626_v39 = vld [vmem:[%s11075_s9 + $0x6a0] sm:$0xff]  ;;  %v1624_v41 = vld [vmem:[%s11075_s9 + $0x690] sm:$0xff] }
 0x2b2   : > { %6107 = vmatprep.subr.bf16.mxu0 %v6106_v26  ;;  %v6122_v26 = vpack.c.bf16 %v1621_v56, %v1617_v62  ;;  %v1629_v33 = vld [vmem:[%s11075_s9 + $0x6b8] sm:$0xff]  ;;  %v1631_v44 = vld [vmem:[%s11075_s9 + $0x6c8] sm:$0xff]  ;;  %v1634_v49 = vld [vmem:[%s11075_s9 + $0x6e0] sm:$0xff] }
 0x2b3   : > { %v6126_v19 = vpack.c.bf16 %v1629_v33, %v1625_v30  ;;  %v1635_v45 = vld [vmem:[%s11075_s9 + $0x6e8] sm:$0xff]  ;;  %v1633_v46 = vld [vmem:[%s11075_s9 + $0x6d8] sm:$0xff]  ;;  %v1632_v50 = vld [vmem:[%s11075_s9 + $0x6d0] sm:$0xff] }
 0x2b4   : > { %1372 = vrot.lane.b32.xlu1 %v8034_v63, %s11117_s23  ;;  %5707 = vmatpush1.bf16.msra.mxu1 %v5706_v37  ;;  %v6124_v37 = vpack.c.bf16 %v1620_v27, %v1616_v31  ;;  %v1637_v47 = vld [vmem:[%s11075_s9 + $0x6f8] sm:$0xff]  ;;  %v1639_v6 = vld [vmem:[%s11075_s9 + $0x708] sm:$0xff]  ;;  %v1642_v11 = vld [vmem:[%s11075_s9 + $0x720] sm:$0xff]  ;;  %s7050_s23 = smov 90  }
 0x2b5   : > { %6109 = vmatpush1.bf16.msra.mxu0 %v6108_v38  ;;  %5709 = vmatprep.subr.bf16.mxu1 %v5708_v53  ;;  %v5724_v38 = vpack.c.bf16 %v1627_v29, %v1623_v28  ;;  %v1622_v53 = vld [vmem:[%s11075_s9 + $0x680] sm:$0xff]  ;;  %v6130_v2 = vpack.c.bf16 %v1637_v47, %v1633_v46  ;;  %v1643_v7 = vld [vmem:[%s11075_s9 + $0x728] sm:$0xff]  ;;  %v1641_v8 = vld [vmem:[%s11075_s9 + $0x718] sm:$0xff] }
 0x2b6   : > { %6111 = vmatprep.subr.bf16.mxu0 %v6110_v43  ;;  %v1628_v43 = vld [vmem:[%s11075_s9 + $0x6b0] sm:$0xff]  ;;  %v5726_v25 = vpack.c.bf16 %v1626_v39, %v1622_v53  ;;  %v1645_v9 = vld [vmem:[%s11075_s9 + $0x738] sm:$0xff]  ;;  %v1647_v15 = vld [vmem:[%s11075_s9 + $0x748] sm:$0xff] }
 0x2b7   : > { %v1640_v12 = vld [vmem:[%s11075_s9 + $0x710] sm:$0xff]  ;;  %v6134_v13 = vpack.c.bf16 %v1645_v9, %v1641_v8  ;;  %v1651_v17 = vld [vmem:[%s11075_s9 + $0x768] sm:$0xff]  ;;  %v1649_v18 = vld [vmem:[%s11075_s9 + $0x758] sm:$0xff] }
 0x2b8   : > { %5711 = vmatpush1.bf16.msra.mxu1 %v5710_v52  ;;  %v6128_v52 = vpack.c.bf16 %v1628_v43, %v1624_v41  ;;  %v1653_v62 = vld [vmem:[%s11075_s9 + $0x778] sm:$0xff]  ;;  %v1650_v22 = vld [vmem:[%s11075_s9 + $0x760] sm:$0xff]  ;;  %v1648_v23 = vld [vmem:[%s11075_s9 + $0x750] sm:$0xff] }
 0x2b9   : > { %6113 = vmatpush1.bf16.msra.mxu0 %v6112_v48  ;;  %5713 = vmatprep.subr.bf16.mxu1 %v5712_v54  ;;  %v5728_v48 = vpack.c.bf16 %v1635_v45, %v1631_v44  ;;  %v1630_v54 = vld [vmem:[%s11075_s9 + $0x6c0] sm:$0xff]  ;;  %v6138_v31 = vpack.c.bf16 %v1653_v62, %v1649_v18  ;;  %v1655_v27 = vld [vmem:[%s11075_s9 + $0x788] sm:$0xff]  ;;  %v1657_v29 = vld [vmem:[%s11075_s9 + $0x798] sm:$0xff] }
 0x2ba   : > { %6115 = vmatprep.subr.bf16.mxu0 %v6114_v55  ;;  %v1636_v55 = vld [vmem:[%s11075_s9 + $0x6f0] sm:$0xff]  ;;  %v5730_v61 = vpack.c.bf16 %v1634_v49, %v1630_v54  ;;  %v1659_v28 = vld [vmem:[%s11075_s9 + $0x7a8] sm:$0xff]  ;;  %v1661_v30 = vld [vmem:[%s11075_s9 + $0x7b8] sm:$0xff] }
 0x2bb   : > { %v1658_v53 = vld [vmem:[%s11075_s9 + $0x7a0] sm:$0xff]  ;;  %v1656_v39 = vld [vmem:[%s11075_s9 + $0x790] sm:$0xff]  ;;  %v6142_v41 = vpack.c.bf16 %v1661_v30, %v1657_v29  ;;  %v1663_v43 = vld [vmem:[%s11075_s9 + $0x7c8] sm:$0xff] }
 0x2bc   : > { %5715 = vmatpush1.bf16.msra.mxu1 %v5714_v20  ;;  %v6132_v20 = vpack.c.bf16 %v1636_v55, %v1632_v50  ;;  %v1667_v44 = vld [vmem:[%s11075_s9 + $0x7e8] sm:$0xff]  ;;  %v1665_v45 = vld [vmem:[%s11075_s9 + $0x7d8] sm:$0xff]  ;;  %v1666_v54 = vld [vmem:[%s11075_s9 + $0x7e0] sm:$0xff] }
 0x2bd   : > { %6117 = vmatpush1.bf16.msra.mxu0 %v6116_v3  ;;  %5717 = vmatprep.subr.bf16.mxu1 %v5716_v57  ;;  %v5732_v3 = vpack.c.bf16 %v1643_v7, %v1639_v6  ;;  %v1638_v57 = vld [vmem:[%s11075_s9 + $0x700] sm:$0xff]  ;;  %v1669_v46 = vld [vmem:[%s11075_s9 + $0x7f8] sm:$0xff]  ;;  %v1664_v49 = vld [vmem:[%s11075_s9 + $0x7d0] sm:$0xff] }
 0x2be   : > { %6119 = vmatprep.subr.bf16.mxu0 %v6118_v10  ;;  %v1644_v10 = vld [vmem:[%s11075_s9 + $0x730] sm:$0xff]  ;;  %v5734_v56 = vpack.c.bf16 %v1642_v11, %v1638_v57  ;;  %v6146_v50 = vpack.c.bf16 %v1669_v46, %v1665_v45  ;;  %v1671_v55 = vld [vmem:[%s11075_s9 + $0x808] sm:$0xff]  ;;  %v1673_v7 = vld [vmem:[%s11075_s9 + $0x818] sm:$0xff] }
 0x2bf   : > { %v1675_v6 = vld [vmem:[%s11075_s9 + $0x828] sm:$0xff]  ;;  %v1677_v8 = vld [vmem:[%s11075_s9 + $0x838] sm:$0xff]  ;;  %v1670_v11 = vld [vmem:[%s11075_s9 + $0x800] sm:$0xff] }
 0x2c0   : > { %5719 = vmatpush1.bf16.msra.mxu1 %v5718_v24  ;;  %v6136_v24 = vpack.c.bf16 %v1644_v10, %v1640_v12  ;;  %v1674_v12 = vld [vmem:[%s11075_s9 + $0x820] sm:$0xff]  ;;  %v1679_v18 = vld [vmem:[%s11075_s9 + $0x848] sm:$0xff] }
 0x2c1   : > { %6121 = vmatpush1.bf16.msra.mxu0 %v6120_v42  ;;  %5721 = vmatprep.subr.bf16.mxu1 %v5720_v59  ;;  %v5736_v42 = vpack.c.bf16 %v1651_v17, %v1647_v15  ;;  %v1646_v59 = vld [vmem:[%s11075_s9 + $0x740] sm:$0xff]  ;;  %v1672_v15 = vld [vmem:[%s11075_s9 + $0x810] sm:$0xff]  ;;  %v1683_v62 = vld [vmem:[%s11075_s9 + $0x868] sm:$0xff] }
 0x2c2   : > { %6123 = vmatprep.subr.bf16.mxu0 %v6122_v26  ;;  %v1652_v26 = vld [vmem:[%s11075_s9 + $0x770] sm:$0xff]  ;;  %v5738_v33 = vpack.c.bf16 %v1650_v22, %v1646_v59  ;;  %v5752_v30 = vpack.c.bf16 %v1683_v62, %v1679_v18  ;;  %v1686_v45 = vld [vmem:[%s11075_s9 + $0x880] sm:$0xff] }
 0x2c3   : > { %v1676_v17 = vld [vmem:[%s11075_s9 + $0x830] sm:$0xff]  ;;  %v1690_v46 = vld [vmem:[%s11075_s9 + $0x8a0] sm:$0xff] }
 0x2c4   : > { %5723 = vmatpush1.bf16.msra.mxu1 %v5722_v36  ;;  %v6140_v36 = vpack.c.bf16 %v1652_v26, %v1648_v23  ;;  %v5750_v26 = vpack.c.bf16 %v1674_v12, %v1670_v11  ;;  %v1700_v11 = vld [vmem:[%s11075_s9 + $0x8f0] sm:$0xff]  ;;  %v1703_v12 = vld [vmem:[%s11075_s9 + $0x908] sm:$0xff] }
 0x2c5   : > { %6125 = vmatpush1.bf16.msra.mxu0 %v6124_v37  ;;  %5725 = vmatprep.subr.bf16.mxu1 %v5724_v38  ;;  %v5740_v37 = vpack.c.bf16 %v1659_v28, %v1655_v27  ;;  %v1654_v38 = vld [vmem:[%s11075_s9 + $0x780] sm:$0xff]  ;;  %v6152_v27 = vpack.c.bf16 %v1676_v17, %v1672_v15  ;;  %v1705_v15 = vld [vmem:[%s11075_s9 + $0x918] sm:$0xff] }
 0x2c6   : > { %6127 = vmatprep.subr.bf16.mxu0 %v6126_v19  ;;  %v1660_v19 = vld [vmem:[%s11075_s9 + $0x7b0] sm:$0xff]  ;;  %v5742_v47 = vpack.c.bf16 %v1658_v53, %v1654_v38  ;;  %v1678_v28 = vld [vmem:[%s11075_s9 + $0x840] sm:$0xff]  ;;  %v1689_v38 = vld [vmem:[%s11075_s9 + $0x898] sm:$0xff] }
 0x2c7   : > { %v1693_v53 = vld [vmem:[%s11075_s9 + $0x8b8] sm:$0xff] }
 0x2c8   : > { %5727 = vmatpush1.bf16.msra.mxu1 %v5726_v25  ;;  %v6144_v25 = vpack.c.bf16 %v1660_v19, %v1656_v39  ;;  %v1709_v17 = vld [vmem:[%s11075_s9 + $0x938] sm:$0xff] }
 0x2c9   : > { %6129 = vmatpush1.bf16.msra.mxu0 %v6128_v52  ;;  %5729 = vmatprep.subr.bf16.mxu1 %v5728_v48  ;;  %v5744_v52 = vpack.c.bf16 %v1667_v44, %v1663_v43  ;;  %v1662_v48 = vld [vmem:[%s11075_s9 + $0x7c0] sm:$0xff]  ;;  %v5754_v43 = vpack.c.bf16 %v1682_v32, %v1678_v28  ;;  %v1713_v28 = vld [vmem:[%s11075_s9 + $0x958] sm:$0xff] }
 0x2ca   : > { %6131 = vmatprep.subr.bf16.mxu0 %v6130_v2  ;;  %v1668_v2 = vld [vmem:[%s11075_s9 + $0x7f0] sm:$0xff]  ;;  %v5746_v9 = vpack.c.bf16 %v1666_v54, %v1662_v48  ;;  %v1695_v54 = vld [vmem:[%s11075_s9 + $0x8c8] sm:$0xff]  ;;  %v1717_v32 = vld [vmem:[%s11075_s9 + $0x978] sm:$0xff] }
 0x2cb   : > { %v1692_v48 = vld [vmem:[%s11075_s9 + $0x8b0] sm:$0xff] }
 0x2cc   : > { %5731 = vmatpush1.bf16.msra.mxu1 %v5730_v61  ;;  %v6148_v61 = vpack.c.bf16 %v1668_v2, %v1664_v49  ;;  %v1699_v49 = vld [vmem:[%s11075_s9 + $0x8e8] sm:$0xff]  ;;  %v1701_v2 = vld [vmem:[%s11075_s9 + $0x8f8] sm:$0xff] }
 0x2cd   : > { %6133 = vmatpush1.bf16.msra.mxu0 %v6132_v20  ;;  %5733 = vmatprep.subr.bf16.mxu1 %v5732_v3  ;;  %v5748_v20 = vpack.c.bf16 %v1675_v6, %v1671_v55  ;;  %v6150_v3 = vpack.c.bf16 %v1677_v8, %v1673_v7  ;;  %v5758_v6 = vpack.c.bf16 %v1690_v46, %v1686_v45  ;;  %v1694_v8 = vld [vmem:[%s11075_s9 + $0x8c0] sm:$0xff] }
 0x2ce   : > { %6135 = vmatprep.subr.bf16.mxu0 %v6134_v13  ;;  %v1718_v46 = vld [vmem:[%s11075_s9 + $0x980] sm:$0xff] }
 0x2d0   : > { %5735 = vmatpush1.bf16.msra.mxu1 %v5734_v56  ;;  %v1681_v56 = vld [vmem:[%s11075_s9 + $0x858] sm:$0xff] }
 0x2d1   : > { %6137 = vmatpush1.bf16.msra.mxu0 %v6136_v24  ;;  %5737 = vmatprep.subr.bf16.mxu1 %v5736_v42  ;;  %v1685_v24 = vld [vmem:[%s11075_s9 + $0x878] sm:$0xff] }
 0x2d2   : > { %6139 = vmatprep.subr.bf16.mxu0 %v6138_v31 }
 0x2d4   : > { %5739 = vmatpush1.bf16.msra.mxu1 %v5738_v33  ;;  %v1684_v33 = vld [vmem:[%s11075_s9 + $0x870] sm:$0xff] }
 0x2d5   : > { %6141 = vmatpush1.bf16.msra.mxu0 %v6140_v36  ;;  %5741 = vmatprep.subr.bf16.mxu1 %v5740_v37  ;;  %v1687_v36 = vld [vmem:[%s11075_s9 + $0x888] sm:$0xff] }
 0x2d6   : > { %6143 = vmatprep.subr.bf16.mxu0 %v6142_v41  ;;  %v1691_v37 = vld [vmem:[%s11075_s9 + $0x8a8] sm:$0xff] }
 0x2d8   : > { %5743 = vmatpush1.bf16.msra.mxu1 %v5742_v47 }
 0x2d9   : > { %6145 = vmatpush1.bf16.msra.mxu0 %v6144_v25  ;;  %5745 = vmatprep.subr.bf16.mxu1 %v5744_v52  ;;  %v5756_v25 = vpack.c.bf16 %v1691_v37, %v1687_v36  ;;  %v6158_v52 = vpack.c.bf16 %v1693_v53, %v1689_v38  ;;  %v6170_v36 = vpack.c.bf16 %v1717_v32, %v1713_v28  ;;  %v1712_v37 = vld [vmem:[%s11075_s9 + $0x950] sm:$0xff]  ;;  %v1719_v53 = vld [vmem:[%s11075_s9 + $0x988] sm:$0xff]  ;;  %v1745_v32 = vld [vmem:[%s11075_s9 + $0xa58] sm:$0xff] }
 0x2da   : > { %6147 = vmatprep.subr.bf16.mxu0 %v6146_v50  ;;  %v1697_v50 = vld [vmem:[%s11075_s9 + $0x8d8] sm:$0xff]  ;;  %v1716_v38 = vld [vmem:[%s11075_s9 + $0x970] sm:$0xff]  ;;  %v1747_v28 = vld [vmem:[%s11075_s9 + $0xa68] sm:$0xff] }
 0x2db   : > { %v6172_v45 = vpack.c.bf16 %v1716_v38, %v1712_v37  ;;  %v1744_v38 = vld [vmem:[%s11075_s9 + $0xa50] sm:$0xff] }
 0x2dc   : > { %5747 = vmatpush1.bf16.msra.mxu1 %v5746_v9  ;;  %v1698_v9 = vld [vmem:[%s11075_s9 + $0x8e0] sm:$0xff] }
 0x2dd   : > { %6149 = vmatpush1.bf16.msra.mxu0 %v6148_v61  ;;  %5749 = vmatprep.subr.bf16.mxu1 %v5748_v20  ;;  %v5760_v61 = vpack.c.bf16 %v1699_v49, %v1695_v54  ;;  %v6162_v20 = vpack.c.bf16 %v1701_v2, %v1697_v50  ;;  %v5762_v18 = vpack.c.bf16 %v1698_v9, %v1694_v8  ;;  %v1724_v54 = vld [vmem:[%s11075_s9 + $0x9b0] sm:$0xff]  ;;  %v1727_v49 = vld [vmem:[%s11075_s9 + $0x9c8] sm:$0xff]  ;;  %v1729_v2 = vld [vmem:[%s11075_s9 + $0x9d8] sm:$0xff] }
 0x2de   : > { %6151 = vmatprep.subr.bf16.mxu0 %v6150_v3  ;;  %v1696_v3 = vld [vmem:[%s11075_s9 + $0x8d0] sm:$0xff]  ;;  %v1731_v50 = vld [vmem:[%s11075_s9 + $0x9e8] sm:$0xff]  ;;  %v1726_v9 = vld [vmem:[%s11075_s9 + $0x9c0] sm:$0xff] }
 0x2df   : > { %v6164_v62 = vpack.c.bf16 %v1700_v11, %v1696_v3  ;;  %v1728_v11 = vld [vmem:[%s11075_s9 + $0x9d0] sm:$0xff] }
 0x316   : > { %v8269_v57 = vpop.permute.xlu1 %6878 }
 0x317   : > { %v6881_v13 = vunpack.i.h.bf16 %v8269_v57  ;;  %v6880_v10 = vunpack.i.l.bf16 %v8269_v57 }
 0x319   : > { %v1378_v42 = vsel %vm573_vm4, %v6871_v34, %v6880_v10  ;;  %v1379_v59 = vsel %vm573_vm4, %v6880_v10, %v6881_v13  ;;  %v1707_v10 = vld [vmem:[%s11075_s9 + $0x928] sm:$0xff] }
 0x31a   : > { %v1403_v22 = vmax.f32 %v7767_v16, %v1378_v42  ;;  %v8304_v23 = vpop.permute.xlu1 %6888  ;;  %v1404_v31 = vmax.f32 %v7881_v14, %v1379_v59  ;;  %v6154_v16 = vpack.c.bf16 %v1685_v24, %v1681_v56  ;;  %v1680_v14 = vld [vmem:[%s11075_s9 + $0x850] sm:$0xff]  ;;  %v1702_v56 = vld [vmem:[%s11075_s9 + $0x900] sm:$0xff]  ;;  %v5764_v42 = vpack.c.bf16 %v1707_v10, %v1703_v12  ;;  %v1735_v10 = vld [vmem:[%s11075_s9 + $0xa08] sm:$0xff] }
 0x31b   : > { %v6891_v34 = vunpack.i.h.bf16 %v8304_v23  ;;  %v6890_v29 = vunpack.i.l.bf16 %v8304_v23  ;;  %v6156_v44 = vpack.c.bf16 %v1684_v33, %v1680_v14  ;;  %v1706_v24 = vld [vmem:[%s11075_s9 + $0x920] sm:$0xff]  ;;  %v6166_v59 = vpack.c.bf16 %v1709_v17, %v1705_v15  ;;  %v1732_v12 = vld [vmem:[%s11075_s9 + $0x9f0] sm:$0xff]  ;;  %v1739_v15 = vld [vmem:[%s11075_s9 + $0xa28] sm:$0xff] }
 0x31c   : > { %2365 = vmatprep.mubr.f32.mxu1 %v1404_v31  ;;  %2862 = vmatprep.mubr.f32.mxu0 %v1404_v31  ;;  %v1708_v31 = vld [vmem:[%s11075_s9 + $0x930] sm:$0xff]  ;;  %v1714_v14 = vld [vmem:[%s11075_s9 + $0x960] sm:$0xff]  ;;  %v1737_v17 = vld [vmem:[%s11075_s9 + $0xa18] sm:$0xff] }
 0x31d   : > { %2366 = vmatmul.mubr.f32.vlgmr.msra.gmra.mrb[6].mxu1 %v1403_v22  ;;  %2863 = vmatmul.mubr.f32.vlgmr.msra.gmra.mrb[8].mxu0 %v1403_v22  ;;  %v1381_v39 = vsel %vm573_vm4, %v6890_v29, %v6891_v34  ;;  %v1704_v22 = vld [vmem:[%s11075_s9 + $0x910] sm:$0xff]  ;;  %v1809_v23 = vld [vmem:[%s11075_s9 + $0xc58] sm:$0xff] }
 0x31e   : > { %5751 = vmatpush1.bf16.msra.mxu1 %v5750_v26  ;;  %6153 = vmatpush1.bf16.msra.mxu0 %v6152_v27  ;;  %v8336_v41 = vpop.permute.xlu1 %6898  ;;  %v1406_v19 = vmax.f32 %v7916_v51, %v1381_v39  ;;  %v1688_v51 = vld [vmem:[%s11075_s9 + $0x890] sm:$0xff]  ;;  %v1711_v26 = vld [vmem:[%s11075_s9 + $0x948] sm:$0xff] }
 0x31f   : > { %v6900_v47 = vunpack.i.l.bf16 %v8336_v41  ;;  %5753 = vmatprep.subr.bf16.mxu1 %v5752_v30  ;;  %6155 = vmatprep.subr.bf16.mxu0 %v6154_v16  ;;  %v6160_v7 = vpack.c.bf16 %v1692_v48, %v1688_v51  ;;  %v1715_v27 = vld [vmem:[%s11075_s9 + $0x968] sm:$0xff]  ;;  %v6168_v30 = vpack.c.bf16 %v1708_v31, %v1704_v22  ;;  %v1710_v16 = vld [vmem:[%s11075_s9 + $0x940] sm:$0xff]  ;;  %v1720_v48 = vld [vmem:[%s11075_s9 + $0x990] sm:$0xff] }
 0x320   : > { %2436 = vmatprep.mubr.f32.mxu1 %v1406_v19  ;;  %2933 = vmatprep.mubr.f32.mxu0 %v1406_v19  ;;  %v5768_v33 = vpack.c.bf16 %v1715_v27, %v1711_v26  ;;  %v1723_v39 = vld [vmem:[%s11075_s9 + $0x9a8] sm:$0xff]  ;;  %v1721_v19 = vld [vmem:[%s11075_s9 + $0x998] sm:$0xff]  ;;  %v6176_v8 = vpack.c.bf16 %v1724_v54, %v1720_v48  ;;  %v1736_v31 = vld [vmem:[%s11075_s9 + $0xa10] sm:$0xff] }
 0x321   : > { %v8367_v55 = vsel %vm573_vm4, %v6891_v34, %v6900_v47  ;;  %v5766_v34 = vpack.c.bf16 %v1706_v24, %v1702_v56  ;;  %v6180_v56 = vpack.c.bf16 %v1732_v12, %v1728_v11  ;;  %v1734_v24 = vld [vmem:[%s11075_s9 + $0xa00] sm:$0xff]  ;;  %v1740_v26 = vld [vmem:[%s11075_s9 + $0xa30] sm:$0xff]  ;;  %v1743_v27 = vld [vmem:[%s11075_s9 + $0xa48] sm:$0xff] }
 0x322   : > { %5755 = vmatpush1.bf16.msra.mxu1 %v5754_v43  ;;  %6157 = vmatpush1.bf16.msra.mxu0 %v6156_v44  ;;  %v1725_v43 = vld [vmem:[%s11075_s9 + $0x9b8] sm:$0xff]  ;;  %v5770_v44 = vpack.c.bf16 %v1714_v14, %v1710_v16  ;;  %v6184_v16 = vpack.c.bf16 %v1740_v26, %v1736_v31  ;;  %v1742_v14 = vld [vmem:[%s11075_s9 + $0xa40] sm:$0xff]  ;;  %v1752_v54 = vld [vmem:[%s11075_s9 + $0xa90] sm:$0xff] }
 0x323   : > { %5757 = vmatprep.subr.bf16.mxu1 %v5756_v25  ;;  %6159 = vmatprep.subr.bf16.mxu0 %v6158_v52  ;;  %v1722_v25 = vld [vmem:[%s11075_s9 + $0x9a0] sm:$0xff]  ;;  %v5772_v52 = vpack.c.bf16 %v1723_v39, %v1719_v53  ;;  %v6174_v51 = vpack.c.bf16 %v1725_v43, %v1721_v19  ;;  %v1748_v53 = vld [vmem:[%s11075_s9 + $0xa70] sm:$0xff]  ;;  %v1751_v39 = vld [vmem:[%s11075_s9 + $0xa88] sm:$0xff] }
 0x324   : > { %v1755_v19 = vld [vmem:[%s11075_s9 + $0xaa8] sm:$0xff]  ;;  %v1753_v43 = vld [vmem:[%s11075_s9 + $0xa98] sm:$0xff]  ;;  %v1760_v12 = vld [vmem:[%s11075_s9 + $0xad0] sm:$0xff] }
 0x325   : > { %v1768_v26 = vld [vmem:[%s11075_s9 + $0xb10] sm:$0xff] }
 0x326   : > { %5759 = vmatpush1.bf16.msra.mxu1 %v5758_v6  ;;  %6161 = vmatpush1.bf16.msra.mxu0 %v6160_v7  ;;  %v1733_v6 = vld [vmem:[%s11075_s9 + $0x9f8] sm:$0xff]  ;;  %v5774_v7 = vpack.c.bf16 %v1722_v25, %v1718_v46  ;;  %v6188_v46 = vpack.c.bf16 %v1748_v53, %v1744_v38  ;;  %v1750_v25 = vld [vmem:[%s11075_s9 + $0xa80] sm:$0xff]  ;;  %v1776_v53 = vld [vmem:[%s11075_s9 + $0xb50] sm:$0xff] }
 0x327   : > { %5761 = vmatprep.subr.bf16.mxu1 %v5760_v61  ;;  %6163 = vmatprep.subr.bf16.mxu0 %v6162_v20  ;;  %v1730_v61 = vld [vmem:[%s11075_s9 + $0x9e0] sm:$0xff]  ;;  %v5776_v20 = vpack.c.bf16 %v1731_v50, %v1727_v49  ;;  %v6178_v3 = vpack.c.bf16 %v1733_v6, %v1729_v2  ;;  %v1756_v49 = vld [vmem:[%s11075_s9 + $0xab0] sm:$0xff]  ;;  %v1759_v50 = vld [vmem:[%s11075_s9 + $0xac8] sm:$0xff] }
 0x328   : > { %v1763_v2 = vld [vmem:[%s11075_s9 + $0xae8] sm:$0xff]  ;;  %v1761_v6 = vld [vmem:[%s11075_s9 + $0xad8] sm:$0xff] }
 0x32a   : > { %5763 = vmatpush1.bf16.msra.mxu1 %v5762_v18  ;;  %6165 = vmatpush1.bf16.msra.mxu0 %v6164_v62  ;;  %v1741_v18 = vld [vmem:[%s11075_s9 + $0xa38] sm:$0xff]  ;;  %v5778_v62 = vpack.c.bf16 %v1730_v61, %v1726_v9  ;;  %v6192_v9 = vpack.c.bf16 %v1756_v49, %v1752_v54  ;;  %v1758_v61 = vld [vmem:[%s11075_s9 + $0xac0] sm:$0xff]  ;;  %v1784_v49 = vld [vmem:[%s11075_s9 + $0xb90] sm:$0xff] }
 0x32b   : > { %5765 = vmatprep.subr.bf16.mxu1 %v5764_v42  ;;  %6167 = vmatprep.subr.bf16.mxu0 %v6166_v59  ;;  %v1738_v42 = vld [vmem:[%s11075_s9 + $0xa20] sm:$0xff]  ;;  %v5780_v59 = vpack.c.bf16 %v1739_v15, %v1735_v10  ;;  %v6182_v22 = vpack.c.bf16 %v1741_v18, %v1737_v17  ;;  %v1764_v10 = vld [vmem:[%s11075_s9 + $0xaf0] sm:$0xff]  ;;  %v1767_v15 = vld [vmem:[%s11075_s9 + $0xb08] sm:$0xff] }
 0x32c   : > { %v1771_v17 = vld [vmem:[%s11075_s9 + $0xb28] sm:$0xff]  ;;  %v1769_v18 = vld [vmem:[%s11075_s9 + $0xb18] sm:$0xff] }
 0x32e   : > { %5767 = vmatpush1.bf16.msra.mxu1 %v5766_v34  ;;  %6169 = vmatpush1.bf16.msra.mxu0 %v6168_v30  ;;  %v1749_v34 = vld [vmem:[%s11075_s9 + $0xa78] sm:$0xff]  ;;  %v5782_v30 = vpack.c.bf16 %v1738_v42, %v1734_v24  ;;  %v6196_v24 = vpack.c.bf16 %v1764_v10, %v1760_v12  ;;  %v1766_v42 = vld [vmem:[%s11075_s9 + $0xb00] sm:$0xff]  ;;  %v1792_v10 = vld [vmem:[%s11075_s9 + $0xbd0] sm:$0xff] }
 0x32f   : > { %5769 = vmatprep.subr.bf16.mxu1 %v5768_v33  ;;  %6171 = vmatprep.subr.bf16.mxu0 %v6170_v36  ;;  %v1746_v33 = vld [vmem:[%s11075_s9 + $0xa60] sm:$0xff]  ;;  %v5784_v36 = vpack.c.bf16 %v1747_v28, %v1743_v27  ;;  %v6186_v37 = vpack.c.bf16 %v1749_v34, %v1745_v32  ;;  %v1772_v27 = vld [vmem:[%s11075_s9 + $0xb30] sm:$0xff]  ;;  %v1775_v28 = vld [vmem:[%s11075_s9 + $0xb48] sm:$0xff] }
 0x330   : > { %v1779_v32 = vld [vmem:[%s11075_s9 + $0xb68] sm:$0xff]  ;;  %v1777_v34 = vld [vmem:[%s11075_s9 + $0xb58] sm:$0xff] }
 0x332   : > { %5771 = vmatpush1.bf16.msra.mxu1 %v5770_v44  ;;  %6173 = vmatpush1.bf16.msra.mxu0 %v6172_v45  ;;  %v1757_v44 = vld [vmem:[%s11075_s9 + $0xab8] sm:$0xff]  ;;  %v5786_v45 = vpack.c.bf16 %v1746_v33, %v1742_v14  ;;  %v6200_v14 = vpack.c.bf16 %v1772_v27, %v1768_v26  ;;  %v1774_v33 = vld [vmem:[%s11075_s9 + $0xb40] sm:$0xff] }
 0x333   : > { %5773 = vmatprep.subr.bf16.mxu1 %v5772_v52  ;;  %6175 = vmatprep.subr.bf16.mxu0 %v6174_v51  ;;  %v1754_v52 = vld [vmem:[%s11075_s9 + $0xaa0] sm:$0xff]  ;;  %v5788_v51 = vpack.c.bf16 %v1755_v19, %v1751_v39  ;;  %v6190_v48 = vpack.c.bf16 %v1757_v44, %v1753_v43  ;;  %v1780_v39 = vld [vmem:[%s11075_s9 + $0xb70] sm:$0xff]  ;;  %v1783_v19 = vld [vmem:[%s11075_s9 + $0xb88] sm:$0xff] }
 0x334   : > { %v1787_v43 = vld [vmem:[%s11075_s9 + $0xba8] sm:$0xff]  ;;  %v1785_v44 = vld [vmem:[%s11075_s9 + $0xb98] sm:$0xff]  ;;  %v1798_v26 = vld [vmem:[%s11075_s9 + $0xc00] sm:$0xff] }
 0x335   : > { %v1802_v27 = vld [vmem:[%s11075_s9 + $0xc20] sm:$0xff] }
 0x336   : > { %5775 = vmatpush1.bf16.msra.mxu1 %v5774_v7  ;;  %6177 = vmatpush1.bf16.msra.mxu0 %v6176_v8  ;;  %v1765_v7 = vld [vmem:[%s11075_s9 + $0xaf8] sm:$0xff]  ;;  %v5790_v8 = vpack.c.bf16 %v1754_v52, %v1750_v25  ;;  %v6204_v25 = vpack.c.bf16 %v1780_v39, %v1776_v53  ;;  %v1782_v52 = vld [vmem:[%s11075_s9 + $0xb80] sm:$0xff] }
 0x337   : > { %5777 = vmatprep.subr.bf16.mxu1 %v5776_v20  ;;  %6179 = vmatprep.subr.bf16.mxu0 %v6178_v3  ;;  %v1762_v20 = vld [vmem:[%s11075_s9 + $0xae0] sm:$0xff]  ;;  %v5792_v3 = vpack.c.bf16 %v1763_v2, %v1759_v50  ;;  %v6194_v11 = vpack.c.bf16 %v1765_v7, %v1761_v6  ;;  %v1788_v50 = vld [vmem:[%s11075_s9 + $0xbb0] sm:$0xff]  ;;  %v1791_v2 = vld [vmem:[%s11075_s9 + $0xbc8] sm:$0xff] }
 0x338   : > { %v1795_v6 = vld [vmem:[%s11075_s9 + $0xbe8] sm:$0xff]  ;;  %v1793_v7 = vld [vmem:[%s11075_s9 + $0xbd8] sm:$0xff] }
 0x33a   : > { %5779 = vmatpush1.bf16.msra.mxu1 %v5778_v62  ;;  %6181 = vmatpush1.bf16.msra.mxu0 %v6180_v56  ;;  %v1773_v62 = vld [vmem:[%s11075_s9 + $0xb38] sm:$0xff]  ;;  %v5794_v56 = vpack.c.bf16 %v1762_v20, %v1758_v61  ;;  %v6208_v61 = vpack.c.bf16 %v1788_v50, %v1784_v49  ;;  %v1790_v20 = vld [vmem:[%s11075_s9 + $0xbc0] sm:$0xff]  ;;  %v1820_v49 = vld [vmem:[%s11075_s9 + $0xcb0] sm:$0xff] }
 0x33b   : > { %5781 = vmatprep.subr.bf16.mxu1 %v5780_v59  ;;  %6183 = vmatprep.subr.bf16.mxu0 %v6182_v22  ;;  %v1770_v59 = vld [vmem:[%s11075_s9 + $0xb20] sm:$0xff]  ;;  %v5796_v22 = vpack.c.bf16 %v1771_v17, %v1767_v15  ;;  %v6198_v31 = vpack.c.bf16 %v1773_v62, %v1769_v18  ;;  %v1796_v15 = vld [vmem:[%s11075_s9 + $0xbf0] sm:$0xff]  ;;  %v1799_v17 = vld [vmem:[%s11075_s9 + $0xc08] sm:$0xff] }
 0x33c   : > { %v1803_v18 = vld [vmem:[%s11075_s9 + $0xc28] sm:$0xff]  ;;  %v1801_v62 = vld [vmem:[%s11075_s9 + $0xc18] sm:$0xff] }
 0x33d   : > { %v1823_v50 = vld [vmem:[%s11075_s9 + $0xcc8] sm:$0xff] }
 0x33e   : > { %5783 = vmatpush1.bf16.msra.mxu1 %v5782_v30  ;;  %6185 = vmatpush1.bf16.msra.mxu0 %v6184_v16  ;;  %v1781_v30 = vld [vmem:[%s11075_s9 + $0xb78] sm:$0xff]  ;;  %v5798_v16 = vpack.c.bf16 %v1770_v59, %v1766_v42  ;;  %v6212_v59 = vpack.c.bf16 %v1796_v15, %v1792_v10  ;;  %v1828_v10 = vld [vmem:[%s11075_s9 + $0xcf0] sm:$0xff]  ;;  %v1831_v15 = vld [vmem:[%s11075_s9 + $0xd08] sm:$0xff] }
 0x33f   : > { %5785 = vmatprep.subr.bf16.mxu1 %v5784_v36  ;;  %6187 = vmatprep.subr.bf16.mxu0 %v6186_v37  ;;  %v1778_v36 = vld [vmem:[%s11075_s9 + $0xb60] sm:$0xff]  ;;  %v5800_v37 = vpack.c.bf16 %v1779_v32, %v1775_v28  ;;  %v6202_v38 = vpack.c.bf16 %v1781_v30, %v1777_v34  ;;  %v1380_v28 = vsel %vm573_vm4, %v6881_v13, %v6890_v29  ;;  %v1800_v32 = vld [vmem:[%s11075_s9 + $0xc10] sm:$0xff]  ;;  %v1807_v30 = vld [vmem:[%s11075_s9 + $0xc48] sm:$0xff] }
 0x340   : > { %v1804_v34 = vld [vmem:[%s11075_s9 + $0xc30] sm:$0xff]  ;;  %v1811_v13 = vld [vmem:[%s11075_s9 + $0xc68] sm:$0xff]  ;;  %v1813_v29 = vld [vmem:[%s11075_s9 + $0xc78] sm:$0xff] }
 0x341   : > { %v5816_v53 = vpack.c.bf16 %v1811_v13, %v1807_v30  ;;  %v6218_v39 = vpack.c.bf16 %v1813_v29, %v1809_v23  ;;  %v1841_v30 = vld [vmem:[%s11075_s9 + $0xd58] sm:$0xff] }
 0x342   : > { %5787 = vmatpush1.bf16.msra.mxu1 %v5786_v45  ;;  %6189 = vmatpush1.bf16.msra.mxu0 %v6188_v46  ;;  %v1789_v45 = vld [vmem:[%s11075_s9 + $0xbb8] sm:$0xff]  ;;  %v5802_v46 = vpack.c.bf16 %v1778_v36, %v1774_v33  ;;  %v1806_v33 = vld [vmem:[%s11075_s9 + $0xc40] sm:$0xff] }
 0x343   : > { %5789 = vmatprep.subr.bf16.mxu1 %v5788_v51  ;;  %6191 = vmatprep.subr.bf16.mxu0 %v6190_v48  ;;  %v1786_v51 = vld [vmem:[%s11075_s9 + $0xba0] sm:$0xff]  ;;  %v5804_v48 = vpack.c.bf16 %v1787_v43, %v1783_v19  ;;  %v6206_v54 = vpack.c.bf16 %v1789_v45, %v1785_v44  ;;  %v1815_v19 = vld [vmem:[%s11075_s9 + $0xc88] sm:$0xff]  ;;  %v1821_v44 = vld [vmem:[%s11075_s9 + $0xcb8] sm:$0xff] }
 0x344   : > { %v1810_v36 = vld [vmem:[%s11075_s9 + $0xc60] sm:$0xff]  ;;  %v1819_v43 = vld [vmem:[%s11075_s9 + $0xca8] sm:$0xff] }
 0x345   : > { %v5818_v45 = vpack.c.bf16 %v1810_v36, %v1806_v33  ;;  %v1844_v36 = vld [vmem:[%s11075_s9 + $0xd70] sm:$0xff] }
 0x346   : > { %5791 = vmatpush1.bf16.msra.mxu1 %v5790_v8  ;;  %6193 = vmatpush1.bf16.msra.mxu0 %v6192_v9  ;;  %v1797_v8 = vld [vmem:[%s11075_s9 + $0xbf8] sm:$0xff]  ;;  %v5806_v9 = vpack.c.bf16 %v1786_v51, %v1782_v52  ;;  %v1814_v52 = vld [vmem:[%s11075_s9 + $0xc80] sm:$0xff] }
 0x347   : > { %5793 = vmatprep.subr.bf16.mxu1 %v5792_v3  ;;  %6195 = vmatprep.subr.bf16.mxu0 %v6194_v11  ;;  %v1794_v3 = vld [vmem:[%s11075_s9 + $0xbe0] sm:$0xff]  ;;  %v5808_v11 = vpack.c.bf16 %v1795_v6, %v1791_v2  ;;  %v6210_v12 = vpack.c.bf16 %v1797_v8, %v1793_v7  ;;  %v1827_v2 = vld [vmem:[%s11075_s9 + $0xce8] sm:$0xff]  ;;  %v1825_v6 = vld [vmem:[%s11075_s9 + $0xcd8] sm:$0xff] }
 0x348   : > { %v5810_v42 = vpack.c.bf16 %v1794_v3, %v1790_v20  ;;  %v1818_v51 = vld [vmem:[%s11075_s9 + $0xca0] sm:$0xff]  ;;  %v1829_v7 = vld [vmem:[%s11075_s9 + $0xcf8] sm:$0xff] }
 0x349   : > { %v5822_v8 = vpack.c.bf16 %v1818_v51, %v1814_v52  ;;  %v1822_v20 = vld [vmem:[%s11075_s9 + $0xcc0] sm:$0xff]  ;;  %v1855_v52 = vld [vmem:[%s11075_s9 + $0xdc8] sm:$0xff] }
 0x34a   : > { %5795 = vmatpush1.bf16.msra.mxu1 %v5794_v56  ;;  %6197 = vmatpush1.bf16.msra.mxu0 %v6196_v24  ;;  %v1805_v56 = vld [vmem:[%s11075_s9 + $0xc38] sm:$0xff]  ;;  %v6901_v24 = vunpack.i.h.bf16 %v8336_v41  ;;  %v1826_v3 = vld [vmem:[%s11075_s9 + $0xce0] sm:$0xff]  ;;  %v1859_v51 = vld [vmem:[%s11075_s9 + $0xde8] sm:$0xff] }
 0x34b   : > { %5797 = vmatprep.subr.bf16.mxu1 %v5796_v22  ;;  %6199 = vmatprep.subr.bf16.mxu0 %v6198_v31  ;;  %v5812_v22 = vpack.c.bf16 %v1803_v18, %v1799_v17  ;;  %v6214_v31 = vpack.c.bf16 %v1805_v56, %v1801_v62  ;;  %v1835_v17 = vld [vmem:[%s11075_s9 + $0xd28] sm:$0xff]  ;;  %v1833_v18 = vld [vmem:[%s11075_s9 + $0xd18] sm:$0xff]  ;;  %v5826_v56 = vpack.c.bf16 %v1826_v3, %v1822_v20 }
 0x34c   : > { %v1383_v57 = vsel %vm573_vm4, %v6900_v47, %v6901_v24  ;;  %v6216_v47 = vpack.c.bf16 %v1804_v34, %v1800_v32  ;;  %v1837_v62 = vld [vmem:[%s11075_s9 + $0xd38] sm:$0xff]  ;;  %v1839_v32 = vld [vmem:[%s11075_s9 + $0xd48] sm:$0xff] }
 0x34d   : > { %v1843_v34 = vld [vmem:[%s11075_s9 + $0xd68] sm:$0xff] }
 0x34e   : > { %5799 = vmatpush1.bf16.msra.mxu1 %v5798_v16  ;;  %6201 = vmatpush1.bf16.msra.mxu0 %v6200_v14  ;;  %v5814_v16 = vpack.c.bf16 %v1802_v27, %v1798_v26  ;;  %v1405_v14 = vmax.f32 %v7884_v5, %v1380_v28  ;;  %v1812_v5 = vld [vmem:[%s11075_s9 + $0xc70] sm:$0xff]  ;;  %v6230_v27 = vpack.c.bf16 %v1837_v62, %v1833_v18  ;;  %v1863_v20 = vld [vmem:[%s11075_s9 + $0xe08] sm:$0xff]  ;;  %v1862_v18 = vld [vmem:[%s11075_s9 + $0xe00] sm:$0xff] }
 0x34f   : > { %5801 = vmatprep.subr.bf16.mxu1 %v5800_v37  ;;  %6203 = vmatprep.subr.bf16.mxu0 %v6202_v38  ;;  %v1808_v37 = vld [vmem:[%s11075_s9 + $0xc50] sm:$0xff]  ;;  %v1408_v38 = vmax.f32 %v7951_v60, %v1383_v57  ;;  %v1817_v60 = vld [vmem:[%s11075_s9 + $0xc98] sm:$0xff]  ;;  %v5832_v29 = vpack.c.bf16 %v1843_v34, %v1839_v32  ;;  %v1867_v3 = vld [vmem:[%s11075_s9 + $0xe28] sm:$0xff] }
 0x350   : > { %v1832_v26 = vld [vmem:[%s11075_s9 + $0xd10] sm:$0xff]  ;;  %v1845_v57 = vld [vmem:[%s11075_s9 + $0xd78] sm:$0xff]  ;;  %v1866_v62 = vld [vmem:[%s11075_s9 + $0xe20] sm:$0xff] }
 0x351   : > { %v1836_v28 = vld [vmem:[%s11075_s9 + $0xd30] sm:$0xff]  ;;  %v6234_v33 = vpack.c.bf16 %v1845_v57, %v1841_v30  ;;  %v1870_v30 = vld [vmem:[%s11075_s9 + $0xe40] sm:$0xff]  ;;  %v2067_v41 = vld [vmem:[%s11075_s9 + $0x1468] sm:$0xff] }
 0x352   : > { %5803 = vmatpush1.bf16.msra.mxu1 %v5802_v46  ;;  %6205 = vmatpush1.bf16.msra.mxu0 %v6204_v25  ;;  %v6220_v46 = vpack.c.bf16 %v1812_v5, %v1808_v37  ;;  %v5820_v25 = vpack.c.bf16 %v1819_v43, %v1815_v19  ;;  %v6232_v23 = vpack.c.bf16 %v1836_v28, %v1832_v26  ;;  %v1847_v37 = vld [vmem:[%s11075_s9 + $0xd88] sm:$0xff]  ;;  %v1873_v26 = vld [vmem:[%s11075_s9 + $0xe58] sm:$0xff]  ;;  %v1874_v57 = vld [vmem:[%s11075_s9 + $0xe60] sm:$0xff] }
 0x353   : > { %5805 = vmatprep.subr.bf16.mxu1 %v5804_v48  ;;  %6207 = vmatprep.subr.bf16.mxu0 %v6206_v54  ;;  %v1816_v48 = vld [vmem:[%s11075_s9 + $0xc90] sm:$0xff]  ;;  %v6222_v54 = vpack.c.bf16 %v1821_v44, %v1817_v60  ;;  %v1846_v60 = vld [vmem:[%s11075_s9 + $0xd80] sm:$0xff]  ;;  %v5846_v28 = vpack.c.bf16 %v1866_v62, %v1862_v18  ;;  %v1903_v18 = vld [vmem:[%s11075_s9 + $0xf48] sm:$0xff] }
 0x354   : > { %v1850_v44 = vld [vmem:[%s11075_s9 + $0xda0] sm:$0xff]  ;;  %v1907_v62 = vld [vmem:[%s11075_s9 + $0xf68] sm:$0xff] }
 0x356   : > { %5807 = vmatpush1.bf16.msra.mxu1 %v5806_v9  ;;  %6209 = vmatpush1.bf16.msra.mxu0 %v6208_v61  ;;  %v6224_v9 = vpack.c.bf16 %v1820_v49, %v1816_v48  ;;  %v5824_v61 = vpack.c.bf16 %v1827_v2, %v1823_v50  ;;  %v1857_v48 = vld [vmem:[%s11075_s9 + $0xdd8] sm:$0xff]  ;;  %v5838_v49 = vpack.c.bf16 %v1850_v44, %v1846_v60  ;;  %v1887_v60 = vld [vmem:[%s11075_s9 + $0xec8] sm:$0xff] }
 0x357   : > { %5809 = vmatprep.subr.bf16.mxu1 %v5808_v11  ;;  %6211 = vmatprep.subr.bf16.mxu0 %v6210_v12  ;;  %v1824_v11 = vld [vmem:[%s11075_s9 + $0xcd0] sm:$0xff]  ;;  %v6226_v12 = vpack.c.bf16 %v1829_v7, %v1825_v6  ;;  %v5840_v2 = vpack.c.bf16 %v1859_v51, %v1855_v52  ;;  %v1854_v6 = vld [vmem:[%s11075_s9 + $0xdc0] sm:$0xff]  ;;  %v1891_v44 = vld [vmem:[%s11075_s9 + $0xee8] sm:$0xff] }
 0x358   : > { %v1858_v7 = vld [vmem:[%s11075_s9 + $0xde0] sm:$0xff]  ;;  %v5856_v51 = vpack.c.bf16 %v1891_v44, %v1887_v60  ;;  %v9054_v60 = vpop.permute.xlu1 %6908 }
 0x35a   : > { %5811 = vmatpush1.bf16.msra.mxu1 %v5810_v42  ;;  %6213 = vmatpush1.bf16.msra.mxu0 %v6212_v59  ;;  %v6228_v42 = vpack.c.bf16 %v1828_v10, %v1824_v11  ;;  %v5828_v59 = vpack.c.bf16 %v1835_v17, %v1831_v15  ;;  %v1865_v11 = vld [vmem:[%s11075_s9 + $0xe18] sm:$0xff]  ;;  %v5842_v10 = vpack.c.bf16 %v1858_v7, %v1854_v6  ;;  %v1895_v6 = vld [vmem:[%s11075_s9 + $0xf08] sm:$0xff] }
 0x35b   : > { %5813 = vmatprep.subr.bf16.mxu1 %v5812_v22  ;;  %6215 = vmatprep.subr.bf16.mxu0 %v6214_v31  ;;  %v1830_v22 = vld [vmem:[%s11075_s9 + $0xd00] sm:$0xff]  ;;  %v5844_v17 = vpack.c.bf16 %v1867_v3, %v1863_v20  ;;  %v1899_v7 = vld [vmem:[%s11075_s9 + $0xf28] sm:$0xff] }
 0x35c   : > { %v1834_v31 = vld [vmem:[%s11075_s9 + $0xd20] sm:$0xff]  ;;  %v5860_v3 = vpack.c.bf16 %v1899_v7, %v1895_v6  ;;  %v6911_v6 = vunpack.i.h.bf16 %v9054_v60  ;;  %v6910_v7 = vunpack.i.l.bf16 %v9054_v60  ;;  %v2193_v60 = vld [vmem:[%s11075_s9 + $0x1858] sm:$0xff] }
 0x35d   : > { %2437 = vmatmul.mubr.f32.vlgmr.msra.gmra.mrb[6].mxu1 %v1405_v14  ;;  %2934 = vmatmul.mubr.f32.vlgmr.msra.gmra.mrb[8].mxu0 %v1405_v14  ;;  %v5830_v13 = vpack.c.bf16 %v1834_v31, %v1830_v22  ;;  %v1842_v14 = vld [vmem:[%s11075_s9 + $0xd60] sm:$0xff]  ;;  %v1871_v22 = vld [vmem:[%s11075_s9 + $0xe48] sm:$0xff] }
 0x35e   : > { %5815 = vmatpush1.bf16.msra.mxu1 %v5814_v16  ;;  %2507 = vmatprep.mubr.f32.mxu1 %v1408_v38  ;;  %v1838_v16 = vld [vmem:[%s11075_s9 + $0xd40] sm:$0xff]  ;;  %v1875_v31 = vld [vmem:[%s11075_s9 + $0xe68] sm:$0xff] }
 0x35f   : > { %6217 = vmatpush1.bf16.msra.mxu0 %v6216_v47  ;;  %3004 = vmatprep.mubr.f32.mxu0 %v1408_v38  ;;  %v1840_v47 = vld [vmem:[%s11075_s9 + $0xd50] sm:$0xff]  ;;  %v1851_v38 = vld [vmem:[%s11075_s9 + $0xda8] sm:$0xff]  ;;  %v5834_v5 = vpack.c.bf16 %v1842_v14, %v1838_v16  ;;  %v5848_v34 = vpack.c.bf16 %v1875_v31, %v1871_v22  ;;  %v5864_v31 = vpack.c.bf16 %v1907_v62, %v1903_v18 }
 0x360   : > { %5817 = vmatprep.subr.bf16.mxu1 %v5816_v53  ;;  %6219 = vmatprep.subr.bf16.mxu0 %v6218_v39  ;;  %v1849_v53 = vld [vmem:[%s11075_s9 + $0xd98] sm:$0xff]  ;;  %v6236_v19 = vpack.c.bf16 %v1844_v36, %v1840_v47  ;;  %v5836_v43 = vpack.c.bf16 %v1851_v38, %v1847_v37  ;;  %v1879_v16 = vld [vmem:[%s11075_s9 + $0xe88] sm:$0xff]  ;;  %v5850_v36 = vpack.c.bf16 %v1874_v57, %v1870_v30 }
 0x361   : > { %v1853_v39 = vld [vmem:[%s11075_s9 + $0xdb8] sm:$0xff]  ;;  %v1883_v14 = vld [vmem:[%s11075_s9 + $0xea8] sm:$0xff]  ;;  %v1385_v62 = vsel %vm573_vm4, %v6910_v7, %v6911_v6 }
 0x362   : > { %5819 = vmatpush1.bf16.msra.mxu1 %v5818_v45  ;;  %v1848_v45 = vld [vmem:[%s11075_s9 + $0xd90] sm:$0xff]  ;;  %v1881_v47 = vld [vmem:[%s11075_s9 + $0xe98] sm:$0xff]  ;;  %v5852_v38 = vpack.c.bf16 %v1883_v14, %v1879_v16  ;;  %v1911_v30 = vld [vmem:[%s11075_s9 + $0xf88] sm:$0xff] }
 0x363   : > { %6221 = vmatpush1.bf16.msra.mxu0 %v6220_v46  ;;  %5821 = vmatprep.subr.bf16.mxu1 %v5820_v25  ;;  %v6238_v46 = vpack.c.bf16 %v1853_v39, %v1849_v53  ;;  %v1852_v25 = vld [vmem:[%s11075_s9 + $0xdb0] sm:$0xff]  ;;  %v1878_v53 = vld [vmem:[%s11075_s9 + $0xe80] sm:$0xff]  ;;  %v1915_v57 = vld [vmem:[%s11075_s9 + $0xfa8] sm:$0xff] }
 0x364   : > { %6223 = vmatprep.subr.bf16.mxu0 %v6222_v54  ;;  %v1861_v54 = vld [vmem:[%s11075_s9 + $0xdf8] sm:$0xff]  ;;  %v6240_v50 = vpack.c.bf16 %v1852_v25, %v1848_v45  ;;  %v1882_v39 = vld [vmem:[%s11075_s9 + $0xea0] sm:$0xff]  ;;  %v5868_v14 = vpack.c.bf16 %v1915_v57, %v1911_v30 }
 0x365   : > { %v1889_v45 = vld [vmem:[%s11075_s9 + $0xed8] sm:$0xff]  ;;  %v5854_v25 = vpack.c.bf16 %v1882_v39, %v1878_v53  ;;  %v1919_v53 = vld [vmem:[%s11075_s9 + $0xfc8] sm:$0xff] }
 0x366   : > { %5823 = vmatpush1.bf16.msra.mxu1 %v5822_v8  ;;  %v1856_v8 = vld [vmem:[%s11075_s9 + $0xdd0] sm:$0xff]  ;;  %v1923_v39 = vld [vmem:[%s11075_s9 + $0xfe8] sm:$0xff]  ;;  %v1945_v57 = vld [vmem:[%s11075_s9 + $0x1098] sm:$0xff] }
 0x367   : > { %6225 = vmatpush1.bf16.msra.mxu0 %v6224_v9  ;;  %5825 = vmatprep.subr.bf16.mxu1 %v5824_v61  ;;  %v6242_v9 = vpack.c.bf16 %v1861_v54, %v1857_v48  ;;  %v1860_v61 = vld [vmem:[%s11075_s9 + $0xdf0] sm:$0xff]  ;;  %v1886_v48 = vld [vmem:[%s11075_s9 + $0xec0] sm:$0xff] }
 0x368   : > { %6227 = vmatprep.subr.bf16.mxu0 %v6226_v12  ;;  %v1869_v12 = vld [vmem:[%s11075_s9 + $0xe38] sm:$0xff]  ;;  %v6244_v15 = vpack.c.bf16 %v1860_v61, %v1856_v8  ;;  %v1890_v54 = vld [vmem:[%s11075_s9 + $0xee0] sm:$0xff] }
 0x369   : > { %v1897_v8 = vld [vmem:[%s11075_s9 + $0xf18] sm:$0xff]  ;;  %v5858_v61 = vpack.c.bf16 %v1890_v54, %v1886_v48  ;;  %v1924_v48 = vld [vmem:[%s11075_s9 + $0xff0] sm:$0xff]  ;;  %v1927_v54 = vld [vmem:[%s11075_s9 + $0x1008] sm:$0xff] }
 0x36a   : > { %5827 = vmatpush1.bf16.msra.mxu1 %v5826_v56  ;;  %v1864_v56 = vld [vmem:[%s11075_s9 + $0xe10] sm:$0xff] }
 0x36b   : > { %6229 = vmatpush1.bf16.msra.mxu0 %v6228_v42  ;;  %5829 = vmatprep.subr.bf16.mxu1 %v5828_v59  ;;  %v6246_v42 = vpack.c.bf16 %v1869_v12, %v1865_v11  ;;  %v1868_v59 = vld [vmem:[%s11075_s9 + $0xe30] sm:$0xff]  ;;  %v1894_v11 = vld [vmem:[%s11075_s9 + $0xf00] sm:$0xff] }
 0x36c   : > { %6231 = vmatprep.subr.bf16.mxu0 %v6230_v27  ;;  %v1877_v27 = vld [vmem:[%s11075_s9 + $0xe78] sm:$0xff]  ;;  %v6248_v32 = vpack.c.bf16 %v1868_v59, %v1864_v56  ;;  %v1898_v12 = vld [vmem:[%s11075_s9 + $0xf20] sm:$0xff] }
 0x36d   : > { %v1905_v56 = vld [vmem:[%s11075_s9 + $0xf58] sm:$0xff]  ;;  %v5862_v59 = vpack.c.bf16 %v1898_v12, %v1894_v11  ;;  %v1928_v12 = vld [vmem:[%s11075_s9 + $0x1010] sm:$0xff] }
 0x36e   : > { %5831 = vmatpush1.bf16.msra.mxu1 %v5830_v13  ;;  %v1872_v13 = vld [vmem:[%s11075_s9 + $0xe50] sm:$0xff] }
 0x36f   : > { %6233 = vmatpush1.bf16.msra.mxu0 %v6232_v23  ;;  %5833 = vmatprep.subr.bf16.mxu1 %v5832_v29  ;;  %v6250_v23 = vpack.c.bf16 %v1877_v27, %v1873_v26  ;;  %v1876_v29 = vld [vmem:[%s11075_s9 + $0xe70] sm:$0xff]  ;;  %v1902_v26 = vld [vmem:[%s11075_s9 + $0xf40] sm:$0xff] }
 0x370   : > { %6235 = vmatprep.subr.bf16.mxu0 %v6234_v33  ;;  %v1885_v33 = vld [vmem:[%s11075_s9 + $0xeb8] sm:$0xff]  ;;  %v6252_v37 = vpack.c.bf16 %v1876_v29, %v1872_v13  ;;  %v1906_v27 = vld [vmem:[%s11075_s9 + $0xf60] sm:$0xff] }
 0x371   : > { %v1913_v13 = vld [vmem:[%s11075_s9 + $0xf98] sm:$0xff]  ;;  %v5866_v29 = vpack.c.bf16 %v1906_v27, %v1902_v26  ;;  %v1938_v26 = vld [vmem:[%s11075_s9 + $0x1060] sm:$0xff]  ;;  %v1936_v27 = vld [vmem:[%s11075_s9 + $0x1050] sm:$0xff] }
 0x372   : > { %5835 = vmatpush1.bf16.msra.mxu1 %v5834_v5  ;;  %v1880_v5 = vld [vmem:[%s11075_s9 + $0xe90] sm:$0xff] }
 0x373   : > { %6237 = vmatpush1.bf16.msra.mxu0 %v6236_v19  ;;  %5837 = vmatprep.subr.bf16.mxu1 %v5836_v43  ;;  %v6254_v19 = vpack.c.bf16 %v1885_v33, %v1881_v47  ;;  %v1884_v43 = vld [vmem:[%s11075_s9 + $0xeb0] sm:$0xff]  ;;  %v1910_v47 = vld [vmem:[%s11075_s9 + $0xf80] sm:$0xff] }
 0x374   : > { %6239 = vmatprep.subr.bf16.mxu0 %v6238_v46  ;;  %v1893_v46 = vld [vmem:[%s11075_s9 + $0xef8] sm:$0xff]  ;;  %v6256_v52 = vpack.c.bf16 %v1884_v43, %v1880_v5  ;;  %v1914_v33 = vld [vmem:[%s11075_s9 + $0xfa0] sm:$0xff] }
 0x375   : > { %v1921_v5 = vld [vmem:[%s11075_s9 + $0xfd8] sm:$0xff]  ;;  %v5870_v43 = vpack.c.bf16 %v1914_v33, %v1910_v47  ;;  %v1944_v47 = vld [vmem:[%s11075_s9 + $0x1090] sm:$0xff] }
 0x376   : > { %5839 = vmatpush1.bf16.msra.mxu1 %v5838_v49  ;;  %v1888_v49 = vld [vmem:[%s11075_s9 + $0xed0] sm:$0xff] }
 0x377   : > { %6241 = vmatpush1.bf16.msra.mxu0 %v6240_v50  ;;  %5841 = vmatprep.subr.bf16.mxu1 %v5840_v2  ;;  %v6258_v50 = vpack.c.bf16 %v1893_v46, %v1889_v45  ;;  %v1892_v2 = vld [vmem:[%s11075_s9 + $0xef0] sm:$0xff]  ;;  %v5872_v45 = vpack.c.bf16 %v1923_v39, %v1919_v53  ;;  %v1918_v46 = vld [vmem:[%s11075_s9 + $0xfc0] sm:$0xff]  ;;  %v1953_v53 = vld [vmem:[%s11075_s9 + $0x10d8] sm:$0xff] }
 0x378   : > { %6243 = vmatprep.subr.bf16.mxu0 %v6242_v9  ;;  %v1901_v9 = vld [vmem:[%s11075_s9 + $0xf38] sm:$0xff]  ;;  %v6260_v20 = vpack.c.bf16 %v1892_v2, %v1888_v49  ;;  %v1931_v49 = vld [vmem:[%s11075_s9 + $0x1028] sm:$0xff] }
 0x379   : > { %v1933_v2 = vld [vmem:[%s11075_s9 + $0x1038] sm:$0xff] }
 0x37a   : > { %5843 = vmatpush1.bf16.msra.mxu1 %v5842_v10  ;;  %v1896_v10 = vld [vmem:[%s11075_s9 + $0xf10] sm:$0xff]  ;;  %v1957_v39 = vld [vmem:[%s11075_s9 + $0x10f8] sm:$0xff] }
 0x37b   : > { %6245 = vmatpush1.bf16.msra.mxu0 %v6244_v15  ;;  %5845 = vmatprep.subr.bf16.mxu1 %v5844_v17  ;;  %v6262_v15 = vpack.c.bf16 %v1901_v9, %v1897_v8  ;;  %v1900_v17 = vld [vmem:[%s11075_s9 + $0xf30] sm:$0xff] }
 0x37c   : > { %6247 = vmatprep.subr.bf16.mxu0 %v6246_v42  ;;  %v1909_v42 = vld [vmem:[%s11075_s9 + $0xf78] sm:$0xff]  ;;  %v6264_v22 = vpack.c.bf16 %v1900_v17, %v1896_v10  ;;  %v1932_v10 = vld [vmem:[%s11075_s9 + $0x1030] sm:$0xff]  ;;  %v1939_v17 = vld [vmem:[%s11075_s9 + $0x1068] sm:$0xff] }
 0x37e   : > { %5847 = vmatpush1.bf16.msra.mxu1 %v5846_v28  ;;  %v1904_v28 = vld [vmem:[%s11075_s9 + $0xf50] sm:$0xff] }
 0x37f   : > { %6249 = vmatpush1.bf16.msra.mxu0 %v6248_v32  ;;  %5849 = vmatprep.subr.bf16.mxu1 %v5848_v34  ;;  %v6266_v32 = vpack.c.bf16 %v1909_v42, %v1905_v56  ;;  %v1908_v34 = vld [vmem:[%s11075_s9 + $0xf70] sm:$0xff]  ;;  %v1937_v56 = vld [vmem:[%s11075_s9 + $0x1058] sm:$0xff] }
 0x380   : > { %6251 = vmatprep.subr.bf16.mxu0 %v6250_v23  ;;  %v1917_v23 = vld [vmem:[%s11075_s9 + $0xfb8] sm:$0xff]  ;;  %v6268_v16 = vpack.c.bf16 %v1908_v34, %v1904_v28  ;;  %v1410_v34 = vmax.f32 %v7986_v58, %v1385_v62  ;;  %v1942_v58 = vld [vmem:[%s11075_s9 + $0x1080] sm:$0xff] }
 0x381   : > { %v1941_v42 = vld [vmem:[%s11075_s9 + $0x1078] sm:$0xff] }
 0x382   : > { %5851 = vmatpush1.bf16.msra.mxu1 %v5850_v36  ;;  %v1912_v36 = vld [vmem:[%s11075_s9 + $0xf90] sm:$0xff]  ;;  %v6282_v30 = vpack.c.bf16 %v1941_v42, %v1937_v56  ;;  %v1966_v42 = vld [vmem:[%s11075_s9 + $0x1140] sm:$0xff] }
 0x383   : > { %6253 = vmatpush1.bf16.msra.mxu0 %v6252_v37  ;;  %5853 = vmatprep.subr.bf16.mxu1 %v5852_v38  ;;  %v6270_v37 = vpack.c.bf16 %v1917_v23, %v1913_v13  ;;  %v1916_v38 = vld [vmem:[%s11075_s9 + $0xfb0] sm:$0xff]  ;;  %v1949_v13 = vld [vmem:[%s11075_s9 + $0x10b8] sm:$0xff] }
 0x384   : > { %6255 = vmatprep.subr.bf16.mxu0 %v6254_v19  ;;  %v1925_v19 = vld [vmem:[%s11075_s9 + $0xff8] sm:$0xff]  ;;  %v6272_v44 = vpack.c.bf16 %v1916_v38, %v1912_v36  ;;  %v6286_v33 = vpack.c.bf16 %v1949_v13, %v1945_v57  ;;  %v1948_v36 = vld [vmem:[%s11075_s9 + $0x10b0] sm:$0xff]  ;;  %v1955_v38 = vld [vmem:[%s11075_s9 + $0x10e8] sm:$0xff] }
 0x385   : > { %v1974_v57 = vld [vmem:[%s11075_s9 + $0x1180] sm:$0xff] }
 0x386   : > { %5855 = vmatpush1.bf16.msra.mxu1 %v5854_v25  ;;  %v1922_v25 = vld [vmem:[%s11075_s9 + $0xfe0] sm:$0xff] }
 0x387   : > { %6257 = vmatpush1.bf16.msra.mxu0 %v6256_v52  ;;  %5857 = vmatprep.subr.bf16.mxu1 %v5856_v51  ;;  %v1920_v52 = vld [vmem:[%s11075_s9 + $0xfd0] sm:$0xff]  ;;  %v6274_v51 = vpack.c.bf16 %v1925_v19, %v1921_v5  ;;  %v5874_v8 = vpack.c.bf16 %v1922_v25, %v1918_v46  ;;  %v6288_v19 = vpack.c.bf16 %v1948_v36, %v1944_v47  ;;  %v1978_v13 = vld [vmem:[%s11075_s9 + $0x11a0] sm:$0xff]  ;;  %v1985_v47 = vld [vmem:[%s11075_s9 + $0x11d8] sm:$0xff] }
 0x388   : > { %6259 = vmatprep.subr.bf16.mxu0 %v6258_v50  ;;  %v1929_v50 = vld [vmem:[%s11075_s9 + $0x1018] sm:$0xff]  ;;  %v6276_v9 = vpack.c.bf16 %v1924_v48, %v1920_v52  ;;  %v1952_v46 = vld [vmem:[%s11075_s9 + $0x10d0] sm:$0xff]  ;;  %v6290_v25 = vpack.c.bf16 %v1957_v39, %v1953_v53  ;;  %v1963_v48 = vld [vmem:[%s11075_s9 + $0x1128] sm:$0xff]  ;;  %v5902_v36 = vpack.c.bf16 %v1978_v13, %v1974_v57 }
 0x389   : > { %v6278_v11 = vpack.c.bf16 %v1933_v2, %v1929_v50  ;;  %v1956_v52 = vld [vmem:[%s11075_s9 + $0x10f0] sm:$0xff]  ;;  %v1982_v53 = vld [vmem:[%s11075_s9 + $0x11c0] sm:$0xff]  ;;  %v2015_v57 = vld [vmem:[%s11075_s9 + $0x12c8] sm:$0xff] }
 0x38a   : > { %5859 = vmatpush1.bf16.msra.mxu1 %v5858_v61  ;;  %v5876_v61 = vpack.c.bf16 %v1931_v49, %v1927_v54  ;;  %v1961_v54 = vld [vmem:[%s11075_s9 + $0x1118] sm:$0xff]  ;;  %v6292_v2 = vpack.c.bf16 %v1956_v52, %v1952_v46  ;;  %v1986_v39 = vld [vmem:[%s11075_s9 + $0x11e0] sm:$0xff]  ;;  %v2019_v13 = vld [vmem:[%s11075_s9 + $0x12e8] sm:$0xff] }
 0x38b   : > { %6261 = vmatpush1.bf16.msra.mxu0 %v6260_v20  ;;  %5861 = vmatprep.subr.bf16.mxu1 %v5860_v3  ;;  %v1926_v20 = vld [vmem:[%s11075_s9 + $0x1000] sm:$0xff]  ;;  %v1965_v49 = vld [vmem:[%s11075_s9 + $0x1138] sm:$0xff]  ;;  %v5906_v52 = vpack.c.bf16 %v1986_v39, %v1982_v53  ;;  %v2023_v53 = vld [vmem:[%s11075_s9 + $0x1308] sm:$0xff] }
 0x38c   : > { %6263 = vmatprep.subr.bf16.mxu0 %v6262_v15  ;;  %v1930_v3 = vld [vmem:[%s11075_s9 + $0x1020] sm:$0xff]  ;;  %v1935_v15 = vld [vmem:[%s11075_s9 + $0x1048] sm:$0xff]  ;;  %v1993_v46 = vld [vmem:[%s11075_s9 + $0x1218] sm:$0xff] }
 0x38d   : > { %v5878_v18 = vpack.c.bf16 %v1930_v3, %v1926_v20  ;;  %v5880_v28 = vpack.c.bf16 %v1939_v17, %v1935_v15  ;;  %v1960_v20 = vld [vmem:[%s11075_s9 + $0x1110] sm:$0xff]  ;;  %v6294_v3 = vpack.c.bf16 %v1965_v49, %v1961_v54  ;;  %v1969_v15 = vld [vmem:[%s11075_s9 + $0x1158] sm:$0xff]  ;;  %v1990_v54 = vld [vmem:[%s11075_s9 + $0x1200] sm:$0xff] }
 0x38e   : > { %5863 = vmatpush1.bf16.msra.mxu1 %v5862_v59  ;;  %v1407_v59 = vmax.f32 %v7919_v35, %v8367_v55  ;;  %v1940_v35 = vld [vmem:[%s11075_s9 + $0x1070] sm:$0xff]  ;;  %v1943_v55 = vld [vmem:[%s11075_s9 + $0x1088] sm:$0xff]  ;;  %v1973_v17 = vld [vmem:[%s11075_s9 + $0x1178] sm:$0xff] }
 0x38f   : > { %6265 = vmatpush1.bf16.msra.mxu0 %v6264_v22  ;;  %5865 = vmatprep.subr.bf16.mxu1 %v5864_v31  ;;  %v6280_v22 = vpack.c.bf16 %v1932_v10, %v1928_v12  ;;  %v1934_v31 = vld [vmem:[%s11075_s9 + $0x1040] sm:$0xff]  ;;  %v1967_v12 = vld [vmem:[%s11075_s9 + $0x1148] sm:$0xff] }
 0x390   : > { %6267 = vmatprep.subr.bf16.mxu0 %v6266_v32  ;;  %v1947_v32 = vld [vmem:[%s11075_s9 + $0x10a8] sm:$0xff]  ;;  %v5882_v23 = vpack.c.bf16 %v1938_v26, %v1934_v31  ;;  %v6298_v31 = vpack.c.bf16 %v1973_v17, %v1969_v15  ;;  %v1972_v26 = vld [vmem:[%s11075_s9 + $0x1170] sm:$0xff]  ;;  %v1994_v49 = vld [vmem:[%s11075_s9 + $0x1220] sm:$0xff] }
 0x391   : > { %v1971_v10 = vld [vmem:[%s11075_s9 + $0x1168] sm:$0xff]  ;;  %v1998_v15 = vld [vmem:[%s11075_s9 + $0x1240] sm:$0xff] }
 0x392   : > { %5867 = vmatpush1.bf16.msra.mxu1 %v5866_v29  ;;  %v6284_v29 = vpack.c.bf16 %v1940_v35, %v1936_v27  ;;  %v5896_v56 = vpack.c.bf16 %v1971_v10, %v1967_v12  ;;  %v1975_v27 = vld [vmem:[%s11075_s9 + $0x1188] sm:$0xff]  ;;  %v1977_v35 = vld [vmem:[%s11075_s9 + $0x1198] sm:$0xff]  ;;  %v2002_v17 = vld [vmem:[%s11075_s9 + $0x1260] sm:$0xff] }
 0x393   : > { %6269 = vmatpush1.bf16.msra.mxu0 %v6268_v16  ;;  %5869 = vmatprep.subr.bf16.mxu1 %v5868_v14  ;;  %v5884_v16 = vpack.c.bf16 %v1947_v32, %v1943_v55  ;;  %v1946_v14 = vld [vmem:[%s11075_s9 + $0x10a0] sm:$0xff]  ;;  %v1981_v55 = vld [vmem:[%s11075_s9 + $0x11b8] sm:$0xff]  ;;  %v2027_v39 = vld [vmem:[%s11075_s9 + $0x1328] sm:$0xff] }
 0x394   : > { %6271 = vmatprep.subr.bf16.mxu0 %v6270_v37  ;;  %v1951_v37 = vld [vmem:[%s11075_s9 + $0x10c8] sm:$0xff]  ;;  %v5886_v5 = vpack.c.bf16 %v1946_v14, %v1942_v58 }
 0x395   : > { %v1983_v58 = vld [vmem:[%s11075_s9 + $0x11c8] sm:$0xff] }
 0x396   : > { %5871 = vmatpush1.bf16.msra.mxu1 %v5870_v43  ;;  %v5888_v43 = vpack.c.bf16 %v1955_v38, %v1951_v37  ;;  %v1987_v14 = vld [vmem:[%s11075_s9 + $0x11e8] sm:$0xff] }
 0x397   : > { %6273 = vmatpush1.bf16.msra.mxu0 %v6272_v44  ;;  %5873 = vmatprep.subr.bf16.mxu1 %v5872_v45  ;;  %v1950_v44 = vld [vmem:[%s11075_s9 + $0x10c0] sm:$0xff]  ;;  %v5904_v38 = vpack.c.bf16 %v1987_v14, %v1983_v58  ;;  %v5920_v14 = vpack.c.bf16 %v2019_v13, %v2015_v57 }
 0x398   : > { %6275 = vmatprep.subr.bf16.mxu0 %v6274_v51  ;;  %v1954_v45 = vld [vmem:[%s11075_s9 + $0x10e0] sm:$0xff]  ;;  %v1959_v51 = vld [vmem:[%s11075_s9 + $0x1108] sm:$0xff] }
 0x399   : > { %v5890_v50 = vpack.c.bf16 %v1954_v45, %v1950_v44  ;;  %v1991_v44 = vld [vmem:[%s11075_s9 + $0x1208] sm:$0xff] }
 0x39a   : > { %5875 = vmatpush1.bf16.msra.mxu1 %v5874_v8  ;;  %v5892_v8 = vpack.c.bf16 %v1963_v48, %v1959_v51  ;;  %v1995_v45 = vld [vmem:[%s11075_s9 + $0x1228] sm:$0xff] }
 0x39b   : > { %6277 = vmatpush1.bf16.msra.mxu0 %v6276_v9  ;;  %5877 = vmatprep.subr.bf16.mxu1 %v5876_v61  ;;  %v1958_v9 = vld [vmem:[%s11075_s9 + $0x1100] sm:$0xff]  ;;  %v5908_v48 = vpack.c.bf16 %v1995_v45, %v1991_v44  ;;  %v5924_v45 = vpack.c.bf16 %v2027_v39, %v2023_v53  ;;  %v9474_v53 = vpop.permute.xlu1 %1372 }
 0x39c   : > { %6279 = vmatprep.subr.bf16.mxu0 %v6278_v11  ;;  %v1962_v61 = vld [vmem:[%s11075_s9 + $0x1120] sm:$0xff]  ;;  %v1964_v11 = vld [vmem:[%s11075_s9 + $0x1130] sm:$0xff] }
 0x39d   : > { %2508 = vmatmul.mubr.f32.vlgmr.msra.gmra.mrb[6].mxu1 %v1407_v59  ;;  %v6296_v62 = vpack.c.bf16 %v1964_v11, %v1960_v20  ;;  %v2001_v20 = vld [vmem:[%s11075_s9 + $0x1258] sm:$0xff]  ;;  %v5910_v11 = vpack.c.bf16 %v1994_v49, %v1990_v54  ;;  %v2031_v54 = vld [vmem:[%s11075_s9 + $0x1348] sm:$0xff] }
 0x39e   : > { %3005 = vmatmul.mubr.f32.vlgmr.msra.gmra.mrb[8].mxu0 %v1407_v59  ;;  %5879 = vmatpush1.bf16.msra.mxu1 %v5878_v18  ;;  %v5894_v18 = vpack.c.bf16 %v1962_v61, %v1958_v9  ;;  %v1970_v59 = vld [vmem:[%s11075_s9 + $0x1160] sm:$0xff]  ;;  %v1999_v9 = vld [vmem:[%s11075_s9 + $0x1248] sm:$0xff] }
 0x39f   : > { %2578 = vmatprep.mubr.f32.mxu1 %v1410_v34  ;;  %6281 = vmatpush1.bf16.msra.mxu0 %v6280_v22  ;;  %v1968_v22 = vld [vmem:[%s11075_s9 + $0x1150] sm:$0xff]  ;;  %v5898_v32 = vpack.c.bf16 %v1970_v59, %v1966_v42  ;;  %v2003_v61 = vld [vmem:[%s11075_s9 + $0x1268] sm:$0xff] }
 0x3a0   : > { %3075 = vmatprep.mubr.f32.mxu0 %v1410_v34  ;;  %5881 = vmatprep.subr.bf16.mxu1 %v5880_v28  ;;  %v1979_v28 = vld [vmem:[%s11075_s9 + $0x11a8] sm:$0xff]  ;;  %v6300_v34 = vpack.c.bf16 %v1972_v26, %v1968_v22  ;;  %v5912_v10 = vpack.c.bf16 %v2003_v61, %v1999_v9  ;;  %v2009_v22 = vld [vmem:[%s11075_s9 + $0x1298] sm:$0xff]  ;;  %v5914_v26 = vpack.c.bf16 %v2002_v17, %v1998_v15 }
 0x3a1   : > { %6283 = vmatprep.subr.bf16.mxu0 %v6282_v30  ;;  %v5900_v30 = vpack.c.bf16 %v1979_v28, %v1975_v27  ;;  %v2007_v42 = vld [vmem:[%s11075_s9 + $0x1288] sm:$0xff] }
 0x3a2   : > { %5883 = vmatpush1.bf16.msra.mxu1 %v5882_v23  ;;  %v1976_v23 = vld [vmem:[%s11075_s9 + $0x1190] sm:$0xff]  ;;  %v2011_v59 = vld [vmem:[%s11075_s9 + $0x12a8] sm:$0xff] }
 0x3a3   : > { %6285 = vmatpush1.bf16.msra.mxu0 %v6284_v29  ;;  %5885 = vmatprep.subr.bf16.mxu1 %v5884_v16  ;;  %v6302_v29 = vpack.c.bf16 %v1981_v55, %v1977_v35  ;;  %v1980_v16 = vld [vmem:[%s11075_s9 + $0x11b0] sm:$0xff]  ;;  %v5916_v28 = vpack.c.bf16 %v2011_v59, %v2007_v42  ;;  %v2006_v35 = vld [vmem:[%s11075_s9 + $0x1280] sm:$0xff]  ;;  %v2035_v49 = vld [vmem:[%s11075_s9 + $0x1368] sm:$0xff] }
 0x3a4   : > { %6287 = vmatprep.subr.bf16.mxu0 %v6286_v33  ;;  %v1989_v33 = vld [vmem:[%s11075_s9 + $0x11f8] sm:$0xff]  ;;  %v6304_v37 = vpack.c.bf16 %v1980_v16, %v1976_v23  ;;  %v2010_v55 = vld [vmem:[%s11075_s9 + $0x12a0] sm:$0xff]  ;;  %v5928_v61 = vpack.c.bf16 %v2035_v49, %v2031_v54  ;;  %v2039_v15 = vld [vmem:[%s11075_s9 + $0x1388] sm:$0xff] }
 0x3a5   : > { %v2017_v23 = vld [vmem:[%s11075_s9 + $0x12d8] sm:$0xff]  ;;  %v5918_v16 = vpack.c.bf16 %v2010_v55, %v2006_v35  ;;  %v2043_v17 = vld [vmem:[%s11075_s9 + $0x13a8] sm:$0xff] }
 0x3a6   : > { %5887 = vmatpush1.bf16.msra.mxu1 %v5886_v5  ;;  %v1984_v5 = vld [vmem:[%s11075_s9 + $0x11d0] sm:$0xff]  ;;  %v5932_v59 = vpack.c.bf16 %v2043_v17, %v2039_v15  ;;  %v2047_v35 = vld [vmem:[%s11075_s9 + $0x13c8] sm:$0xff]  ;;  %v2069_v54 = vld [vmem:[%s11075_s9 + $0x1478] sm:$0xff] }
 0x3a7   : > { %6289 = vmatpush1.bf16.msra.mxu0 %v6288_v19  ;;  %5889 = vmatprep.subr.bf16.mxu1 %v5888_v43  ;;  %v6306_v19 = vpack.c.bf16 %v1989_v33, %v1985_v47  ;;  %v1988_v43 = vld [vmem:[%s11075_s9 + $0x11f0] sm:$0xff]  ;;  %v2014_v47 = vld [vmem:[%s11075_s9 + $0x12c0] sm:$0xff]  ;;  %v2051_v55 = vld [vmem:[%s11075_s9 + $0x13e8] sm:$0xff] }
 0x3a8   : > { %6291 = vmatprep.subr.bf16.mxu0 %v6290_v25  ;;  %v1997_v25 = vld [vmem:[%s11075_s9 + $0x1238] sm:$0xff]  ;;  %v6308_v51 = vpack.c.bf16 %v1988_v43, %v1984_v5  ;;  %v2018_v33 = vld [vmem:[%s11075_s9 + $0x12e0] sm:$0xff]  ;;  %v5936_v13 = vpack.c.bf16 %v2051_v55, %v2047_v35 }
 0x3a9   : > { %v2025_v5 = vld [vmem:[%s11075_s9 + $0x1318] sm:$0xff]  ;;  %v5922_v43 = vpack.c.bf16 %v2018_v33, %v2014_v47  ;;  %v2055_v47 = vld [vmem:[%s11075_s9 + $0x1408] sm:$0xff] }
 0x3aa   : > { %5891 = vmatpush1.bf16.msra.mxu1 %v5890_v50  ;;  %v1992_v50 = vld [vmem:[%s11075_s9 + $0x1210] sm:$0xff]  ;;  %v2059_v33 = vld [vmem:[%s11075_s9 + $0x1428] sm:$0xff]  ;;  %v2077_v15 = vld [vmem:[%s11075_s9 + $0x14b8] sm:$0xff] }
 0x3ab   : > { %6293 = vmatpush1.bf16.msra.mxu0 %v6292_v2  ;;  %5893 = vmatprep.subr.bf16.mxu1 %v5892_v8  ;;  %v6310_v2 = vpack.c.bf16 %v1997_v25, %v1993_v46  ;;  %v1996_v8 = vld [vmem:[%s11075_s9 + $0x1230] sm:$0xff]  ;;  %v2022_v46 = vld [vmem:[%s11075_s9 + $0x1300] sm:$0xff] }
 0x3ac   : > { %6295 = vmatprep.subr.bf16.mxu0 %v6294_v3  ;;  %v2005_v3 = vld [vmem:[%s11075_s9 + $0x1278] sm:$0xff]  ;;  %v6312_v12 = vpack.c.bf16 %v1996_v8, %v1992_v50  ;;  %v2026_v25 = vld [vmem:[%s11075_s9 + $0x1320] sm:$0xff] }
 0x3ad   : > { %v2033_v50 = vld [vmem:[%s11075_s9 + $0x1358] sm:$0xff]  ;;  %v5926_v8 = vpack.c.bf16 %v2026_v25, %v2022_v46  ;;  %v2056_v46 = vld [vmem:[%s11075_s9 + $0x1410] sm:$0xff] }
 0x3ae   : > { %5895 = vmatpush1.bf16.msra.mxu1 %v5894_v18  ;;  %v2000_v18 = vld [vmem:[%s11075_s9 + $0x1250] sm:$0xff] }
 0x3af   : > { %6297 = vmatpush1.bf16.msra.mxu0 %v6296_v62  ;;  %5897 = vmatprep.subr.bf16.mxu1 %v5896_v56  ;;  %v6314_v62 = vpack.c.bf16 %v2005_v3, %v2001_v20  ;;  %v2004_v56 = vld [vmem:[%s11075_s9 + $0x1270] sm:$0xff]  ;;  %v2030_v20 = vld [vmem:[%s11075_s9 + $0x1340] sm:$0xff] }
 0x3b0   : > { %6299 = vmatprep.subr.bf16.mxu0 %v6298_v31  ;;  %v2013_v31 = vld [vmem:[%s11075_s9 + $0x12b8] sm:$0xff]  ;;  %v6316_v27 = vpack.c.bf16 %v2004_v56, %v2000_v18  ;;  %v2034_v3 = vld [vmem:[%s11075_s9 + $0x1360] sm:$0xff]  ;;  %v2060_v25 = vld [vmem:[%s11075_s9 + $0x1430] sm:$0xff] }
 0x3b1   : > { %v2041_v18 = vld [vmem:[%s11075_s9 + $0x1398] sm:$0xff]  ;;  %v5930_v56 = vpack.c.bf16 %v2034_v3, %v2030_v20  ;;  %v2071_v20 = vld [vmem:[%s11075_s9 + $0x1488] sm:$0xff] }
 0x3b2   : > { %5899 = vmatpush1.bf16.msra.mxu1 %v5898_v32  ;;  %v2008_v32 = vld [vmem:[%s11075_s9 + $0x1290] sm:$0xff]  ;;  %v2075_v3 = vld [vmem:[%s11075_s9 + $0x14a8] sm:$0xff] }
 0x3b3   : > { %6301 = vmatpush1.bf16.msra.mxu0 %v6300_v34  ;;  %5901 = vmatprep.subr.bf16.mxu1 %v5900_v30  ;;  %v6318_v34 = vpack.c.bf16 %v2013_v31, %v2009_v22  ;;  %v2012_v30 = vld [vmem:[%s11075_s9 + $0x12b0] sm:$0xff]  ;;  %v2038_v22 = vld [vmem:[%s11075_s9 + $0x1380] sm:$0xff] }
 0x3b4   : > { %6303 = vmatprep.subr.bf16.mxu0 %v6302_v29  ;;  %v2021_v29 = vld [vmem:[%s11075_s9 + $0x12f8] sm:$0xff]  ;;  %v6320_v58 = vpack.c.bf16 %v2012_v30, %v2008_v32  ;;  %v2042_v31 = vld [vmem:[%s11075_s9 + $0x13a0] sm:$0xff] }
 0x3b5   : > { %v2049_v32 = vld [vmem:[%s11075_s9 + $0x13d8] sm:$0xff]  ;;  %v5934_v30 = vpack.c.bf16 %v2042_v31, %v2038_v22  ;;  %v2076_v22 = vld [vmem:[%s11075_s9 + $0x14b0] sm:$0xff]  ;;  %v2079_v31 = vld [vmem:[%s11075_s9 + $0x14c8] sm:$0xff] }
 0x3b6   : > { %5903 = vmatpush1.bf16.msra.mxu1 %v5902_v36  ;;  %v2016_v36 = vld [vmem:[%s11075_s9 + $0x12d0] sm:$0xff] }
 0x3b7   : > { %6305 = vmatpush1.bf16.msra.mxu0 %v6304_v37  ;;  %5905 = vmatprep.subr.bf16.mxu1 %v5904_v38  ;;  %v6322_v37 = vpack.c.bf16 %v2021_v29, %v2017_v23  ;;  %v2020_v38 = vld [vmem:[%s11075_s9 + $0x12f0] sm:$0xff]  ;;  %v2046_v23 = vld [vmem:[%s11075_s9 + $0x13c0] sm:$0xff] }
 0x3b8   : > { %6307 = vmatprep.subr.bf16.mxu0 %v6306_v19  ;;  %v2029_v19 = vld [vmem:[%s11075_s9 + $0x1338] sm:$0xff]  ;;  %v6324_v44 = vpack.c.bf16 %v2020_v38, %v2016_v36  ;;  %v2050_v29 = vld [vmem:[%s11075_s9 + $0x13e0] sm:$0xff] }
 0x3b9   : > { %v2057_v36 = vld [vmem:[%s11075_s9 + $0x1418] sm:$0xff]  ;;  %v5938_v38 = vpack.c.bf16 %v2050_v29, %v2046_v23  ;;  %v2084_v23 = vld [vmem:[%s11075_s9 + $0x14f0] sm:$0xff]  ;;  %v2087_v29 = vld [vmem:[%s11075_s9 + $0x1508] sm:$0xff] }
 0x3ba   : > { %5907 = vmatpush1.bf16.msra.mxu1 %v5906_v52  ;;  %v2024_v52 = vld [vmem:[%s11075_s9 + $0x1310] sm:$0xff] }
 0x3bb   : > { %6309 = vmatpush1.bf16.msra.mxu0 %v6308_v51  ;;  %5909 = vmatprep.subr.bf16.mxu1 %v5908_v48  ;;  %v6326_v51 = vpack.c.bf16 %v2029_v19, %v2025_v5  ;;  %v2028_v48 = vld [vmem:[%s11075_s9 + $0x1330] sm:$0xff]  ;;  %v5940_v5 = vpack.c.bf16 %v2059_v33, %v2055_v47  ;;  %v2054_v19 = vld [vmem:[%s11075_s9 + $0x1400] sm:$0xff] }
 0x3bc   : > { %6311 = vmatprep.subr.bf16.mxu0 %v6310_v2  ;;  %v2037_v2 = vld [vmem:[%s11075_s9 + $0x1378] sm:$0xff]  ;;  %v6328_v9 = vpack.c.bf16 %v2028_v48, %v2024_v52  ;;  %v9493_v52 = vpop.permute.xlu0 %1374 }
 0x3bd   : > { %v2065_v48 = vld [vmem:[%s11075_s9 + $0x1458] sm:$0xff] }
 0x3be   : > { %5911 = vmatpush1.bf16.msra.mxu1 %v5910_v11  ;;  %v2032_v11 = vld [vmem:[%s11075_s9 + $0x1350] sm:$0xff] }
 0x3bf   : > { %6313 = vmatpush1.bf16.msra.mxu0 %v6312_v12  ;;  %5913 = vmatprep.subr.bf16.mxu1 %v5912_v10  ;;  %v6330_v12 = vpack.c.bf16 %v2037_v2, %v2033_v50  ;;  %v2036_v10 = vld [vmem:[%s11075_s9 + $0x1370] sm:$0xff]  ;;  %v6344_v50 = vpack.c.bf16 %v2060_v25, %v2056_v46  ;;  %v2062_v2 = vld [vmem:[%s11075_s9 + $0x1440] sm:$0xff]  ;;  %v2101_v46 = vld [vmem:[%s11075_s9 + $0x1578] sm:$0xff] }
 0x3c0   : > { %6315 = vmatprep.subr.bf16.mxu0 %v6314_v62  ;;  %v2045_v62 = vld [vmem:[%s11075_s9 + $0x13b8] sm:$0xff]  ;;  %v6332_v42 = vpack.c.bf16 %v2036_v10, %v2032_v11 }
 0x3c1   : > { %v2073_v10 = vld [vmem:[%s11075_s9 + $0x1498] sm:$0xff] }
 0x3c2   : > { %5915 = vmatpush1.bf16.msra.mxu1 %v5914_v26  ;;  %v2040_v26 = vld [vmem:[%s11075_s9 + $0x1390] sm:$0xff] }
 0x3c3   : > { %6317 = vmatpush1.bf16.msra.mxu0 %v6316_v27  ;;  %5917 = vmatprep.subr.bf16.mxu1 %v5916_v28  ;;  %v6334_v27 = vpack.c.bf16 %v2045_v62, %v2041_v18  ;;  %v2044_v28 = vld [vmem:[%s11075_s9 + $0x13b0] sm:$0xff]  ;;  %v5948_v62 = vpack.c.bf16 %v2075_v3, %v2071_v20  ;;  %v2102_v3 = vld [vmem:[%s11075_s9 + $0x1580] sm:$0xff] }
 0x3c4   : > { %6319 = vmatprep.subr.bf16.mxu0 %v6318_v34  ;;  %v2053_v34 = vld [vmem:[%s11075_s9 + $0x13f8] sm:$0xff]  ;;  %v6336_v57 = vpack.c.bf16 %v2044_v28, %v2040_v26  ;;  %v2083_v26 = vld [vmem:[%s11075_s9 + $0x14e8] sm:$0xff] }
 0x3c5   : > { %v2085_v28 = vld [vmem:[%s11075_s9 + $0x14f8] sm:$0xff] }
 0x3c6   : > { %5919 = vmatpush1.bf16.msra.mxu1 %v5918_v16  ;;  %v2048_v16 = vld [vmem:[%s11075_s9 + $0x13d0] sm:$0xff] }
 0x3c7   : > { %6321 = vmatpush1.bf16.msra.mxu0 %v6320_v58  ;;  %5921 = vmatprep.subr.bf16.mxu1 %v5920_v14  ;;  %v6338_v58 = vpack.c.bf16 %v2053_v34, %v2049_v32  ;;  %v2052_v14 = vld [vmem:[%s11075_s9 + $0x13f0] sm:$0xff]  ;;  %v5952_v32 = vpack.c.bf16 %v2083_v26, %v2079_v31  ;;  %v2078_v34 = vld [vmem:[%s11075_s9 + $0x14c0] sm:$0xff] }
 0x3c8   : > { %6323 = vmatprep.subr.bf16.mxu0 %v6322_v37  ;;  %v2061_v37 = vld [vmem:[%s11075_s9 + $0x1438] sm:$0xff]  ;;  %v6340_v39 = vpack.c.bf16 %v2052_v14, %v2048_v16  ;;  %v2091_v16 = vld [vmem:[%s11075_s9 + $0x1528] sm:$0xff]  ;;  %v2114_v31 = vld [vmem:[%s11075_s9 + $0x15e0] sm:$0xff] }
 0x3c9   : > { %v2093_v14 = vld [vmem:[%s11075_s9 + $0x1538] sm:$0xff]  ;;  %v2112_v26 = vld [vmem:[%s11075_s9 + $0x15d0] sm:$0xff] }
 0x3ca   : > { %5923 = vmatpush1.bf16.msra.mxu1 %v5922_v43  ;;  %v2058_v43 = vld [vmem:[%s11075_s9 + $0x1420] sm:$0xff] }
 0x3cb   : > { %6325 = vmatpush1.bf16.msra.mxu0 %v6324_v44  ;;  %5925 = vmatprep.subr.bf16.mxu1 %v5924_v45  ;;  %v1384_v44 = vsel %vm573_vm4, %v6901_v24, %v6910_v7  ;;  %v6342_v45 = vpack.c.bf16 %v2061_v37, %v2057_v36  ;;  %v1387_v24 = vsel %vm573_vm4, %v9474_v53, %v9493_v52  ;;  %v2086_v37 = vld [vmem:[%s11075_s9 + $0x1500] sm:$0xff] }
 0x3cc   : > { %6327 = vmatprep.subr.bf16.mxu0 %v6326_v51  ;;  %v2063_v51 = vld [vmem:[%s11075_s9 + $0x1448] sm:$0xff]  ;;  %v5942_v7 = vpack.c.bf16 %v2058_v43, %v2054_v19  ;;  %v1409_v49 = vmax.f32 %v7954_v0, %v1384_v44  ;;  %v2068_v0 = vld [vmem:[%s11075_s9 + $0x1470] sm:$0xff]  ;;  %v1412_v11 = vmax.f32 %v8034_v63, %v1387_v24  ;;  %v2070_v63 = vld [vmem:[%s11075_s9 + $0x1480] sm:$0xff]  ;;  %v5956_v36 = vpack.c.bf16 %v2091_v16, %v2087_v29 }
 0x3cd   : > { %v2092_v19 = vld [vmem:[%s11075_s9 + $0x1530] sm:$0xff]  ;;  %v2095_v43 = vld [vmem:[%s11075_s9 + $0x1548] sm:$0xff]  ;;  %v2094_v24 = vld [vmem:[%s11075_s9 + $0x1540] sm:$0xff] }
 0x3ce   : > { %5927 = vmatpush1.bf16.msra.mxu1 %v5926_v8  ;;  %v2066_v8 = vld [vmem:[%s11075_s9 + $0x1460] sm:$0xff]  ;;  %v2099_v44 = vld [vmem:[%s11075_s9 + $0x1568] sm:$0xff]  ;;  %v2120_v16 = vld [vmem:[%s11075_s9 + $0x1610] sm:$0xff] }
 0x3cf   : > { %6329 = vmatpush1.bf16.msra.mxu0 %v6328_v9  ;;  %5929 = vmatprep.subr.bf16.mxu1 %v5928_v61  ;;  %v2064_v9 = vld [vmem:[%s11075_s9 + $0x1450] sm:$0xff]  ;;  %v5944_v61 = vpack.c.bf16 %v2067_v41, %v2063_v51  ;;  %v5946_v17 = vpack.c.bf16 %v2066_v8, %v2062_v2  ;;  %v5960_v41 = vpack.c.bf16 %v2099_v44, %v2095_v43  ;;  %v2107_v2 = vld [vmem:[%s11075_s9 + $0x15a8] sm:$0xff]  ;;  %v2105_v8 = vld [vmem:[%s11075_s9 + $0x1598] sm:$0xff] }
 0x3d0   : > { %6331 = vmatprep.subr.bf16.mxu0 %v6330_v12  ;;  %v6346_v12 = vpack.c.bf16 %v2069_v54, %v2065_v48  ;;  %v6348_v18 = vpack.c.bf16 %v2068_v0, %v2064_v9  ;;  %v2096_v48 = vld [vmem:[%s11075_s9 + $0x1550] sm:$0xff]  ;;  %v2109_v9 = vld [vmem:[%s11075_s9 + $0x15b8] sm:$0xff]  ;;  %v2122_v29 = vld [vmem:[%s11075_s9 + $0x1620] sm:$0xff] }
 0x3d1   : > { %v2130_v43 = vld [vmem:[%s11075_s9 + $0x1660] sm:$0xff]  ;;  %v2128_v44 = vld [vmem:[%s11075_s9 + $0x1650] sm:$0xff] }
 0x3d2   : > { %5931 = vmatpush1.bf16.msra.mxu1 %v5930_v56  ;;  %v2074_v56 = vld [vmem:[%s11075_s9 + $0x14a0] sm:$0xff] }
 0x3d3   : > { %6333 = vmatpush1.bf16.msra.mxu0 %v6332_v42  ;;  %5933 = vmatprep.subr.bf16.mxu1 %v5932_v59  ;;  %v2072_v42 = vld [vmem:[%s11075_s9 + $0x1490] sm:$0xff]  ;;  %v6350_v59 = vpack.c.bf16 %v2077_v15, %v2073_v10  ;;  %v5950_v35 = vpack.c.bf16 %v2074_v56, %v2070_v63  ;;  %v6366_v10 = vpack.c.bf16 %v2109_v9, %v2105_v8  ;;  %v2117_v63 = vld [vmem:[%s11075_s9 + $0x15f8] sm:$0xff] }
 0x3d4   : > { %6335 = vmatprep.subr.bf16.mxu0 %v6334_v27  ;;  %v2081_v27 = vld [vmem:[%s11075_s9 + $0x14d8] sm:$0xff]  ;;  %v6352_v55 = vpack.c.bf16 %v2076_v22, %v2072_v42  ;;  %v2108_v15 = vld [vmem:[%s11075_s9 + $0x15b0] sm:$0xff]  ;;  %v2110_v22 = vld [vmem:[%s11075_s9 + $0x15c0] sm:$0xff] }
 0x3d5   : > { %v2140_v9 = vld [vmem:[%s11075_s9 + $0x16b0] sm:$0xff] }
 0x3d6   : > { %5935 = vmatpush1.bf16.msra.mxu1 %v5934_v30  ;;  %v2082_v30 = vld [vmem:[%s11075_s9 + $0x14e0] sm:$0xff] }
 0x3d7   : > { %6337 = vmatpush1.bf16.msra.mxu0 %v6336_v57  ;;  %5937 = vmatprep.subr.bf16.mxu1 %v5936_v13  ;;  %v2080_v57 = vld [vmem:[%s11075_s9 + $0x14d0] sm:$0xff]  ;;  %v6354_v13 = vpack.c.bf16 %v2085_v28, %v2081_v27  ;;  %v5954_v47 = vpack.c.bf16 %v2082_v30, %v2078_v34  ;;  %v2125_v34 = vld [vmem:[%s11075_s9 + $0x1638] sm:$0xff]  ;;  %v5970_v30 = vpack.c.bf16 %v2114_v31, %v2110_v22 }
 0x3d8   : > { %6339 = vmatprep.subr.bf16.mxu0 %v6338_v58  ;;  %v2089_v58 = vld [vmem:[%s11075_s9 + $0x1518] sm:$0xff]  ;;  %v6356_v33 = vpack.c.bf16 %v2084_v23, %v2080_v57  ;;  %v2116_v28 = vld [vmem:[%s11075_s9 + $0x15f0] sm:$0xff]  ;;  %v2118_v23 = vld [vmem:[%s11075_s9 + $0x1600] sm:$0xff] }
 0x3d9   : > { %v6372_v57 = vpack.c.bf16 %v2116_v28, %v2112_v26  ;;  %v2157_v22 = vld [vmem:[%s11075_s9 + $0x1738] sm:$0xff]  ;;  %v2150_v28 = vld [vmem:[%s11075_s9 + $0x1700] sm:$0xff] }
 0x3da   : > { %5939 = vmatpush1.bf16.msra.mxu1 %v5938_v38  ;;  %v2090_v38 = vld [vmem:[%s11075_s9 + $0x1520] sm:$0xff] }
 0x3db   : > { %6341 = vmatpush1.bf16.msra.mxu0 %v6340_v39  ;;  %5941 = vmatprep.subr.bf16.mxu1 %v5940_v5  ;;  %v2088_v39 = vld [vmem:[%s11075_s9 + $0x1510] sm:$0xff]  ;;  %v6358_v5 = vpack.c.bf16 %v2093_v14, %v2089_v58  ;;  %v5958_v25 = vpack.c.bf16 %v2090_v38, %v2086_v37  ;;  %v2133_v37 = vld [vmem:[%s11075_s9 + $0x1678] sm:$0xff]  ;;  %v5974_v38 = vpack.c.bf16 %v2122_v29, %v2118_v23 }
 0x3dc   : > { %6343 = vmatprep.subr.bf16.mxu0 %v6342_v45  ;;  %v2097_v45 = vld [vmem:[%s11075_s9 + $0x1558] sm:$0xff]  ;;  %v6360_v51 = vpack.c.bf16 %v2092_v19, %v2088_v39  ;;  %v2124_v14 = vld [vmem:[%s11075_s9 + $0x1630] sm:$0xff]  ;;  %v2126_v19 = vld [vmem:[%s11075_s9 + $0x1640] sm:$0xff] }
 0x3dd   : > { %2579 = vmatmul.mubr.f32.vlgmr.msra.gmra.mrb[6].mxu1 %v1409_v49  ;;  %v6362_v54 = vpack.c.bf16 %v2101_v46, %v2097_v45  ;;  %v6376_v39 = vpack.c.bf16 %v2124_v14, %v2120_v16  ;;  %v2132_v46 = vld [vmem:[%s11075_s9 + $0x1670] sm:$0xff]  ;;  %v2165_v23 = vld [vmem:[%s11075_s9 + $0x1778] sm:$0xff]  ;;  %v2158_v14 = vld [vmem:[%s11075_s9 + $0x1740] sm:$0xff] }
 0x3de   : > { %3076 = vmatmul.mubr.f32.vlgmr.msra.gmra.mrb[8].mxu0 %v1409_v49  ;;  %5943 = vmatpush1.bf16.msra.mxu1 %v5942_v7  ;;  %v2098_v7 = vld [vmem:[%s11075_s9 + $0x1560] sm:$0xff]  ;;  %v2100_v49 = vld [vmem:[%s11075_s9 + $0x1570] sm:$0xff] }
 0x3df   : > { %2649 = vmatprep.mubr.f32.mxu1 %v1412_v11  ;;  %6345 = vmatpush1.bf16.msra.mxu0 %v6344_v50  ;;  %v2103_v50 = vld [vmem:[%s11075_s9 + $0x1588] sm:$0xff]  ;;  %v6364_v0 = vpack.c.bf16 %v2100_v49, %v2096_v48  ;;  %v6380_v48 = vpack.c.bf16 %v2132_v46, %v2128_v44  ;;  %v2134_v49 = vld [vmem:[%s11075_s9 + $0x1680] sm:$0xff] }
 0x3e0   : > { %3146 = vmatprep.mubr.f32.mxu0 %v1412_v11  ;;  %5945 = vmatprep.subr.bf16.mxu1 %v5944_v61  ;;  %v5962_v61 = vpack.c.bf16 %v2098_v7, %v2094_v24  ;;  %v5964_v20 = vpack.c.bf16 %v2107_v2, %v2103_v50  ;;  %v2106_v11 = vld [vmem:[%s11075_s9 + $0x15a0] sm:$0xff]  ;;  %v2141_v24 = vld [vmem:[%s11075_s9 + $0x16b8] sm:$0xff]  ;;  %v5978_v7 = vpack.c.bf16 %v2130_v43, %v2126_v19  ;;  %v2136_v2 = vld [vmem:[%s11075_s9 + $0x1690] sm:$0xff] }
 0x3e1   : > { %6347 = vmatprep.subr.bf16.mxu0 %v6346_v12  ;;  %v2104_v12 = vld [vmem:[%s11075_s9 + $0x1590] sm:$0xff]  ;;  %v5966_v56 = vpack.c.bf16 %v2106_v11, %v2102_v3  ;;  %v2138_v50 = vld [vmem:[%s11075_s9 + $0x16a0] sm:$0xff]  ;;  %v2149_v3 = vld [vmem:[%s11075_s9 + $0x16f8] sm:$0xff] }
 0x3e2   : > { %5947 = vmatpush1.bf16.msra.mxu1 %v5946_v17  ;;  %v2111_v17 = vld [vmem:[%s11075_s9 + $0x15c8] sm:$0xff]  ;;  %v6368_v42 = vpack.c.bf16 %v2108_v15, %v2104_v12  ;;  %v5982_v11 = vpack.c.bf16 %v2138_v50, %v2134_v49  ;;  %v6384_v12 = vpack.c.bf16 %v2140_v9, %v2136_v2  ;;  %v2142_v15 = vld [vmem:[%s11075_s9 + $0x16c0] sm:$0xff]  ;;  %v2173_v19 = vld [vmem:[%s11075_s9 + $0x17b8] sm:$0xff] }
 0x3e3   : > { %6349 = vmatpush1.bf16.msra.mxu0 %v6348_v18  ;;  %5949 = vmatprep.subr.bf16.mxu1 %v5948_v62  ;;  %v2115_v18 = vld [vmem:[%s11075_s9 + $0x15e8] sm:$0xff]  ;;  %v2113_v62 = vld [vmem:[%s11075_s9 + $0x15d8] sm:$0xff]  ;;  %v2166_v46 = vld [vmem:[%s11075_s9 + $0x1780] sm:$0xff] }
 0x3e4   : > { %6351 = vmatprep.subr.bf16.mxu0 %v6350_v59  ;;  %v5968_v59 = vpack.c.bf16 %v2115_v18, %v2111_v17  ;;  %v6370_v27 = vpack.c.bf16 %v2117_v63, %v2113_v62  ;;  %v2146_v17 = vld [vmem:[%s11075_s9 + $0x16e0] sm:$0xff]  ;;  %v2144_v18 = vld [vmem:[%s11075_s9 + $0x16d0] sm:$0xff]  ;;  %v2181_v49 = vld [vmem:[%s11075_s9 + $0x17f8] sm:$0xff] }
 0x3e5   : > { %v2148_v63 = vld [vmem:[%s11075_s9 + $0x16f0] sm:$0xff]  ;;  %v5986_v31 = vpack.c.bf16 %v2146_v17, %v2142_v15  ;;  %v2174_v9 = vld [vmem:[%s11075_s9 + $0x17c0] sm:$0xff]  ;;  %v2189_v15 = vld [vmem:[%s11075_s9 + $0x1838] sm:$0xff] }
 0x3e6   : > { %5951 = vmatpush1.bf16.msra.mxu1 %v5950_v35  ;;  %v2119_v35 = vld [vmem:[%s11075_s9 + $0x1608] sm:$0xff]  ;;  %v6388_v26 = vpack.c.bf16 %v2148_v63, %v2144_v18  ;;  %v2182_v63 = vld [vmem:[%s11075_s9 + $0x1800] sm:$0xff] }
 0x3e7   : > { %6353 = vmatpush1.bf16.msra.mxu0 %v6352_v55  ;;  %5953 = vmatprep.subr.bf16.mxu1 %v5952_v32  ;;  %v2123_v55 = vld [vmem:[%s11075_s9 + $0x1628] sm:$0xff]  ;;  %v2121_v32 = vld [vmem:[%s11075_s9 + $0x1618] sm:$0xff] }
 0x3e8   : > { %6355 = vmatprep.subr.bf16.mxu0 %v6354_v13  ;;  %v5972_v13 = vpack.c.bf16 %v2123_v55, %v2119_v35  ;;  %v6374_v58 = vpack.c.bf16 %v2125_v34, %v2121_v32  ;;  %v2154_v35 = vld [vmem:[%s11075_s9 + $0x1720] sm:$0xff]  ;;  %v2152_v55 = vld [vmem:[%s11075_s9 + $0x1710] sm:$0xff] }
 0x3e9   : > { %v2156_v34 = vld [vmem:[%s11075_s9 + $0x1730] sm:$0xff]  ;;  %v5990_v29 = vpack.c.bf16 %v2154_v35, %v2150_v28 }
 0x3ea   : > { %5955 = vmatpush1.bf16.msra.mxu1 %v5954_v47  ;;  %v2127_v47 = vld [vmem:[%s11075_s9 + $0x1648] sm:$0xff]  ;;  %v6392_v16 = vpack.c.bf16 %v2156_v34, %v2152_v55  ;;  %v2194_v34 = vld [vmem:[%s11075_s9 + $0x1860] sm:$0xff] }
 0x3eb   : > { %6357 = vmatpush1.bf16.msra.mxu0 %v6356_v33  ;;  %5957 = vmatprep.subr.bf16.mxu1 %v5956_v36  ;;  %v2131_v33 = vld [vmem:[%s11075_s9 + $0x1668] sm:$0xff]  ;;  %v2129_v36 = vld [vmem:[%s11075_s9 + $0x1658] sm:$0xff] }
 0x3ec   : > { %6359 = vmatprep.subr.bf16.mxu0 %v6358_v5  ;;  %v5976_v5 = vpack.c.bf16 %v2131_v33, %v2127_v47  ;;  %v6378_v45 = vpack.c.bf16 %v2133_v37, %v2129_v36  ;;  %v2162_v47 = vld [vmem:[%s11075_s9 + $0x1760] sm:$0xff]  ;;  %v2160_v33 = vld [vmem:[%s11075_s9 + $0x1750] sm:$0xff] }
 0x3ed   : > { %v2164_v37 = vld [vmem:[%s11075_s9 + $0x1770] sm:$0xff]  ;;  %v5994_v43 = vpack.c.bf16 %v2162_v47, %v2158_v14 }
 0x3ee   : > { %5959 = vmatpush1.bf16.msra.mxu1 %v5958_v25  ;;  %v2135_v25 = vld [vmem:[%s11075_s9 + $0x1688] sm:$0xff]  ;;  %v6396_v44 = vpack.c.bf16 %v2164_v37, %v2160_v33  ;;  %v2198_v33 = vld [vmem:[%s11075_s9 + $0x1880] sm:$0xff]  ;;  %v2200_v37 = vld [vmem:[%s11075_s9 + $0x1890] sm:$0xff] }
 0x3ef   : > { %6361 = vmatpush1.bf16.msra.mxu0 %v6360_v51  ;;  %5961 = vmatprep.subr.bf16.mxu1 %v5960_v41  ;;  %v2139_v51 = vld [vmem:[%s11075_s9 + $0x16a8] sm:$0xff]  ;;  %v2137_v41 = vld [vmem:[%s11075_s9 + $0x1698] sm:$0xff] }
 0x3f0   : > { %6363 = vmatprep.subr.bf16.mxu0 %v6362_v54  ;;  %v5980_v54 = vpack.c.bf16 %v2139_v51, %v2135_v25  ;;  %v6382_v8 = vpack.c.bf16 %v2141_v24, %v2137_v41  ;;  %v2170_v25 = vld [vmem:[%s11075_s9 + $0x17a0] sm:$0xff]  ;;  %v2168_v51 = vld [vmem:[%s11075_s9 + $0x1790] sm:$0xff] }
 0x3f1   : > { %v2172_v24 = vld [vmem:[%s11075_s9 + $0x17b0] sm:$0xff]  ;;  %v5998_v50 = vpack.c.bf16 %v2170_v25, %v2166_v46 }
 0x3f2   : > { %5963 = vmatpush1.bf16.msra.mxu1 %v5962_v61  ;;  %v2143_v61 = vld [vmem:[%s11075_s9 + $0x16c8] sm:$0xff]  ;;  %v6400_v2 = vpack.c.bf16 %v2172_v24, %v2168_v51  ;;  %v2206_v51 = vld [vmem:[%s11075_s9 + $0x18c0] sm:$0xff] }
 0x3f3   : > { %6365 = vmatpush1.bf16.msra.mxu0 %v6364_v0  ;;  %5965 = vmatprep.subr.bf16.mxu1 %v5964_v20  ;;  %v2147_v0 = vld [vmem:[%s11075_s9 + $0x16e8] sm:$0xff]  ;;  %v2145_v20 = vld [vmem:[%s11075_s9 + $0x16d8] sm:$0xff] }
 0x3f4   : > { %6367 = vmatprep.subr.bf16.mxu0 %v6366_v10  ;;  %v5984_v10 = vpack.c.bf16 %v2147_v0, %v2143_v61  ;;  %v6386_v62 = vpack.c.bf16 %v2149_v3, %v2145_v20  ;;  %v2178_v61 = vld [vmem:[%s11075_s9 + $0x17e0] sm:$0xff]  ;;  %v2176_v0 = vld [vmem:[%s11075_s9 + $0x17d0] sm:$0xff] }
 0x3f5   : > { %v2180_v3 = vld [vmem:[%s11075_s9 + $0x17f0] sm:$0xff]  ;;  %v6002_v17 = vpack.c.bf16 %v2178_v61, %v2174_v9 }
 0x3f6   : > { %5967 = vmatpush1.bf16.msra.mxu1 %v5966_v56  ;;  %v2151_v56 = vld [vmem:[%s11075_s9 + $0x1708] sm:$0xff]  ;;  %v6404_v18 = vpack.c.bf16 %v2180_v3, %v2176_v0 }
 0x3f7   : > { %6369 = vmatpush1.bf16.msra.mxu0 %v6368_v42  ;;  %5969 = vmatprep.subr.bf16.mxu1 %v5968_v59  ;;  %v2155_v42 = vld [vmem:[%s11075_s9 + $0x1728] sm:$0xff]  ;;  %v2153_v59 = vld [vmem:[%s11075_s9 + $0x1718] sm:$0xff] }
 0x3f8   : > { %6371 = vmatprep.subr.bf16.mxu0 %v6370_v27  ;;  %v5988_v27 = vpack.c.bf16 %v2155_v42, %v2151_v56  ;;  %v6390_v32 = vpack.c.bf16 %v2157_v22, %v2153_v59  ;;  %v2186_v56 = vld [vmem:[%s11075_s9 + $0x1820] sm:$0xff]  ;;  %v2184_v42 = vld [vmem:[%s11075_s9 + $0x1810] sm:$0xff]  ;;  %v1386_v59 = vsel %vm573_vm4, %v6911_v6, %v9474_v53  ;;  %v2197_v6 = vld [vmem:[%s11075_s9 + $0x1878] sm:$0xff]  ;;  %vm3304_vm4 = vcmask 891904  }
 0x3f9   : > { %v6006_v53 = vpack.c.bf16 %v2186_v56, %v2182_v63  ;;  %v1411_v28 = vmax.f32 %v7989_v1, %v1386_v59  ;;  %v2196_v1 = vld [vmem:[%s11075_s9 + $0x1870] sm:$0xff] }
 0x3fa   : > { %5971 = vmatpush1.bf16.msra.mxu1 %v5970_v30  ;;  %v2159_v30 = vld [vmem:[%s11075_s9 + $0x1748] sm:$0xff] }
 0x3fb   : > { %6373 = vmatpush1.bf16.msra.mxu0 %v6372_v57  ;;  %5973 = vmatprep.subr.bf16.mxu1 %v5972_v13  ;;  %v2163_v57 = vld [vmem:[%s11075_s9 + $0x1768] sm:$0xff]  ;;  %v2161_v13 = vld [vmem:[%s11075_s9 + $0x1758] sm:$0xff] }
 0x3fc   : > { %6375 = vmatprep.subr.bf16.mxu0 %v6374_v58  ;;  %v5992_v58 = vpack.c.bf16 %v2163_v57, %v2159_v30  ;;  %v6394_v36 = vpack.c.bf16 %v2165_v23, %v2161_v13  ;;  %v2192_v30 = vld [vmem:[%s11075_s9 + $0x1850] sm:$0xff]  ;;  %v6410_v57 = vpack.c.bf16 %v2197_v6, %v2193_v60  ;;  %v2199_v13 = vld [vmem:[%s11075_s9 + $0x1888] sm:$0xff] }
 0x3fd   : > { %v2203_v23 = vld [vmem:[%s11075_s9 + $0x18a8] sm:$0xff]  ;;  %v6412_v14 = vpack.c.bf16 %v2196_v1, %v2192_v30 }
 0x3fe   : > { %5975 = vmatpush1.bf16.msra.mxu1 %v5974_v38  ;;  %v2167_v38 = vld [vmem:[%s11075_s9 + $0x1788] sm:$0xff]  ;;  %v6012_v47 = vpack.c.bf16 %v2203_v23, %v2199_v13 }
 0x3ff   : > { %6377 = vmatpush1.bf16.msra.mxu0 %v6376_v39  ;;  %5977 = vmatprep.subr.bf16.mxu1 %v5976_v5  ;;  %v2171_v39 = vld [vmem:[%s11075_s9 + $0x17a8] sm:$0xff]  ;;  %v2169_v5 = vld [vmem:[%s11075_s9 + $0x1798] sm:$0xff] }
 0x400   : > { %6379 = vmatprep.subr.bf16.mxu0 %v6378_v45  ;;  %v5996_v45 = vpack.c.bf16 %v2171_v39, %v2167_v38  ;;  %v6398_v41 = vpack.c.bf16 %v2173_v19, %v2169_v5  ;;  %v2204_v39 = vld [vmem:[%s11075_s9 + $0x18b0] sm:$0xff]  ;;  %v2207_v5 = vld [vmem:[%s11075_s9 + $0x18c8] sm:$0xff] }
 0x401   : > { %v2211_v19 = vld [vmem:[%s11075_s9 + $0x18e8] sm:$0x7]  ;;  %v6416_v46 = vpack.c.bf16 %v2204_v39, %v2200_v37 }
 0x402   : > { %5979 = vmatpush1.bf16.msra.mxu1 %v5978_v7  ;;  %v2175_v7 = vld [vmem:[%s11075_s9 + $0x17c8] sm:$0xff]  ;;  %v6016_v25 = vpack.c.bf16 %v2211_v19, %v2207_v5 }
 0x403   : > { %6381 = vmatpush1.bf16.msra.mxu0 %v6380_v48  ;;  %5981 = vmatprep.subr.bf16.mxu1 %v5980_v54  ;;  %v2179_v48 = vld [vmem:[%s11075_s9 + $0x17e8] sm:$0xff]  ;;  %v2177_v54 = vld [vmem:[%s11075_s9 + $0x17d8] sm:$0xff] }
 0x404   : > { %6383 = vmatprep.subr.bf16.mxu0 %v6382_v8  ;;  %v6000_v8 = vpack.c.bf16 %v2179_v48, %v2175_v7  ;;  %v6402_v20 = vpack.c.bf16 %v2181_v49, %v2177_v54  ;;  %v2208_v48 = vld [vmem:[%s11075_s9 + $0x18d0] sm:$0xff] }
 0x405   : > { %v2212_v54 = vld [vmem:[%s11075_s9 + $0x18f0] sm:$0x7] }
 0x406   : > { %5983 = vmatpush1.bf16.msra.mxu1 %v5982_v11  ;;  %v2183_v11 = vld [vmem:[%s11075_s9 + $0x1808] sm:$0xff] }
 0x407   : > { %6385 = vmatpush1.bf16.msra.mxu0 %v6384_v12  ;;  %5985 = vmatprep.subr.bf16.mxu1 %v5984_v10  ;;  %v2187_v12 = vld [vmem:[%s11075_s9 + $0x1828] sm:$0xff]  ;;  %v2185_v10 = vld [vmem:[%s11075_s9 + $0x1818] sm:$0xff] }
 0x408   : > { %6387 = vmatprep.subr.bf16.mxu0 %v6386_v62  ;;  %v6004_v62 = vpack.c.bf16 %v2187_v12, %v2183_v11  ;;  %v6406_v22 = vpack.c.bf16 %v2189_v15, %v2185_v10  ;;  %v3416_v11 = vld [vmem:[%s11070_s4] sm:$0xff] }
 0x40a   : > { %5987 = vmatpush1.bf16.msra.mxu1 %v5986_v31  ;;  %v2188_v31 = vld [vmem:[%s11075_s9 + $0x1830] sm:$0xff] }
 0x40b   : > { %6389 = vmatpush1.bf16.msra.mxu0 %v6388_v26  ;;  %5989 = vmatprep.subr.bf16.mxu1 %v5988_v27  ;;  %v2191_v26 = vld [vmem:[%s11075_s9 + $0x1848] sm:$0xff]  ;;  %v6408_v35 = vpack.c.bf16 %v2188_v31, %v2184_v42 }
 0x40c   : > { %6391 = vmatprep.subr.bf16.mxu0 %v6390_v32  ;;  %v2195_v27 = vld [vmem:[%s11075_s9 + $0x1868] sm:$0xff]  ;;  %v2190_v32 = vld [vmem:[%s11075_s9 + $0x1840] sm:$0xff] }
 0x40d   : > { %v6008_v55 = vpack.c.bf16 %v2195_v27, %v2191_v26 }
 0x40e   : > { %5991 = vmatpush1.bf16.msra.mxu1 %v5990_v29  ;;  %v2201_v29 = vld [vmem:[%s11075_s9 + $0x1898] sm:$0xff] }
 0x40f   : > { %6393 = vmatpush1.bf16.msra.mxu0 %v6392_v16  ;;  %5993 = vmatprep.subr.bf16.mxu1 %v5992_v58  ;;  %v2205_v16 = vld [vmem:[%s11075_s9 + $0x18b8] sm:$0xff]  ;;  %v6010_v58 = vpack.c.bf16 %v2194_v34, %v2190_v32 }
 0x410   : > { %6395 = vmatprep.subr.bf16.mxu0 %v6394_v36  ;;  %v2202_v36 = vld [vmem:[%s11075_s9 + $0x18a0] sm:$0xff]  ;;  %v6414_v38 = vpack.c.bf16 %v2205_v16, %v2201_v29 }
 0x412   : > { %5995 = vmatpush1.bf16.msra.mxu1 %v5994_v43  ;;  %v2209_v43 = vld [vmem:[%s11075_s9 + $0x18d8] sm:$0xff] }
 0x413   : > { %6397 = vmatpush1.bf16.msra.mxu0 %v6396_v44  ;;  %5997 = vmatprep.subr.bf16.mxu1 %v5996_v45  ;;  %v2213_v44 = vld [vmem:[%s11075_s9 + $0x18f8] sm:$0x7]  ;;  %v6014_v45 = vpack.c.bf16 %v2202_v36, %v2198_v33 }
 0x414   : > { %6399 = vmatprep.subr.bf16.mxu0 %v6398_v41  ;;  %v2210_v41 = vld [vmem:[%s11075_s9 + $0x18e0] sm:$0x7]  ;;  %v6418_v7 = vpack.c.bf16 %v2213_v44, %v2209_v43 }
 0x415   : > { %v6019_v49 = vpack.c.bf16 %v2210_v41, %v2206_v51 }
 0x416   : > { %5999 = vmatpush1.bf16.msra.mxu1 %v5998_v50  ;;  %v6421_v50 = vpack.c.bf16 %v2212_v54, %v2208_v48 }
 0x417   : > { %6401 = vmatpush1.bf16.msra.mxu0 %v6400_v2  ;;  %6001 = vmatprep.subr.bf16.mxu1 %v6000_v8  ;;  %v1413_v2 = vmax.f32 %v7992_v21, %v9493_v52 }
 0x418   : > { %6403 = vmatprep.subr.bf16.mxu0 %v6402_v20 }
 0x41a   : > { %6003 = vmatpush1.bf16.msra.mxu1 %v6002_v17 }
 0x41b   : > { %6405 = vmatpush1.bf16.msra.mxu0 %v6404_v18  ;;  %6005 = vmatprep.subr.bf16.mxu1 %v6004_v62 }
 0x41c   : > { %6407 = vmatprep.subr.bf16.mxu0 %v6406_v22 }
 0x41d   : > { %2650 = vmatmul.mubr.f32.vlgmr.msra.gmra.mrb[6].mxu1 %v1411_v28 }
 0x41e   : > { %3147 = vmatmul.mubr.f32.vlgmr.msra.gmra.mrb[8].mxu0 %v1411_v28  ;;  %6007 = vmatpush1.bf16.msra.mxu1 %v6006_v53 }
 0x41f   : > { %6409 = vmatpush1.bf16.msra.mxu0 %v6408_v35  ;;  %6009 = vmatprep.subr.bf16.mxu1 %v6008_v55 }
 0x420   : > { %6411 = vmatprep.subr.bf16.mxu0 %v6410_v57  ;;  %2720 = vmatprep.mubr.f32.mxu1 %v7041_v4 }
 0x421   : > { %3217 = vmatprep.mubr.f32.mxu0 %v7041_v4 }
 0x422   : > { %6011 = vmatpush1.bf16.msra.mxu1 %v6010_v58 }
 0x423   : > { %6413 = vmatpush1.bf16.msra.mxu0 %v6412_v14  ;;  %6013 = vmatprep.subr.bf16.mxu1 %v6012_v47 }
 0x424   : > { %6415 = vmatprep.subr.bf16.mxu0 %v6414_v38 }
 0x426   : > { %6015 = vmatpush1.bf16.msra.mxu1 %v6014_v45 }
 0x427   : > { %6417 = vmatpush1.bf16.msra.mxu0 %v6416_v46  ;;  %6018 = vmatprep.subr.msk.bf16.mxu1 %vm9958_vm0, %v6016_v25 }
 0x428   : > { %6420 = vmatprep.subr.msk.bf16.mxu0 %vm9958_vm0, %v6418_v7 }
 0x42a   : > { %6021 = vmatpush1.bf16.msk.msra.mxu1 %vm9958_vm0, %v6019_v49 }
 0x42b   : > { %6423 = vmatpush1.bf16.msk.msra.mxu0 %vm9958_vm0, %v6421_v50 }
 0x42d   : > { %5374 = vmatmul.mubr.msk.f32.vlgmr.msra.gmra.mrb[6].mxu1 %vm645_vm8, %v1413_v2 }
 0x42e   : > { %5377 = vmatmul.mubr.msk.f32.vlgmr.msra.gmra.mrb[8].mxu0 %vm645_vm8, %v1413_v2  ;;  %3503 = vmatprep.mubr.f32.mxu1 %v7041_v4  ;;  %vm3383_vm8 = vcmask 736256  }
 0x42f   : > { %3574 = vmatprep.mubr.f32.mxu0 %v7041_v4 }
 0x500   : > { %v2722_v8 = vpop.f32.mrb[6].mxu1 }
 0x501   : > { %3224 = vst [vmem:[#allocation3] sm:$0xf] %v2722_v8  ;;  %v3219_v9 = vpop.f32.mrb[8].mxu0  ;;  %3257 = vrot.lane.b32.xlu1 %v2722_v8, %s11121_s17  ;;  %v2724_v61 = vpop.f32.mrb[7].mxu1  ;;  %v3233_v52 = vrot.slane %v2722_v8, 4 }
 0x502   : > { %3226 = vst [vmem:[#allocation3 + $0x10] sm:$0xf] %v3219_v9  ;;  %3261 = vrot.lane.b32.xlu0 %v3219_v9, %s11121_s17  ;;  %v3221_v21 = vpop.f32.mrb[9].mxu0  ;;  %3225 = vst [vmem:[#allocation3 + $0x8] sm:$0xf] %v2724_v61  ;;  %v3235_v0 = vrot.slane %v3219_v9, 4 }
 0x503   : > { %3228 = vst.msk [vmem:[#allocation3 + $0x18] sm:$0xf] %vm3227_vm1, %v3221_v21  ;;  %v3234_v20 = vrot.slane %v2724_v61, 4  ;;  %v3236_v3 = vrot.slane %v3221_v21, 4 }
 0x505   : > { %3296 = vrot.lane.b32.xlu1 %v2722_v8, %s7046_s28 }
 0x506   : > { %3300 = vrot.lane.b32.xlu0 %v3219_v9, %s7046_s28 }
 0x509   : > { %3336 = vrot.lane.b32.xlu1 %v2722_v8, %s11122_s29 }
 0x50a   : > { %3340 = vrot.lane.b32.xlu0 %v3219_v9, %s11122_s29 }
 0x50d   : > { %3259 = vrot.lane.b32.xlu1 %v2724_v61, %s11121_s17 }
 0x50e   : > { %3263 = vrot.lane.b32.xlu0 %v3221_v21, %s11121_s17 }
 0x511   : > { %3298 = vrot.lane.b32.xlu1 %v2724_v61, %s7046_s28 }
 0x512   : > { %3302 = vrot.lane.b32.xlu0 %v3221_v21, %s7046_s28  ;;  %s7051_s28 = smov 117  }
 0x515   : > { %3338 = vrot.lane.b32.xlu1 %v2724_v61, %s11122_s29 }
 0x516   : > { %3342 = vrot.lane.b32.xlu0 %v3221_v21, %s11122_s29  ;;  %s7052_s29 = smov 118  }
 0x519   : > { %3237 = vrot.lane.b32.xlu1 %v3233_v52, %s11118_s26 }
 0x51a   : > { %3241 = vrot.lane.b32.xlu0 %v3235_v0, %s11118_s26 }
 0x51d   : > { %3276 = vrot.lane.b32.xlu1 %v3233_v52, %s7047_s19 }
 0x51e   : > { %3280 = vrot.lane.b32.xlu0 %v3235_v0, %s7047_s19 }
 0x521   : > { %3316 = vrot.lane.b32.xlu1 %v3233_v52, %s11096_s20 }
 0x522   : > { %3320 = vrot.lane.b32.xlu0 %v3235_v0, %s11096_s20 }
 0x525   : > { %3355 = vrot.lane.b32.xlu1 %v3233_v52, %s7049_s21 }
 0x526   : > { %3359 = vrot.lane.b32.xlu0 %v3235_v0, %s7049_s21 }
 0x529   : > { %3239 = vrot.lane.b32.xlu1 %v3234_v20, %s11118_s26 }
 0x52a   : > { %3243 = vrot.lane.b32.xlu0 %v3236_v3, %s11118_s26 }
 0x52d   : > { %3278 = vrot.lane.b32.xlu1 %v3234_v20, %s7047_s19 }
 0x52e   : > { %3282 = vrot.lane.b32.xlu0 %v3236_v3, %s7047_s19 }
 0x531   : > { %3318 = vrot.lane.b32.xlu1 %v3234_v20, %s11096_s20 }
 0x532   : > { %3322 = vrot.lane.b32.xlu0 %v3236_v3, %s11096_s20 }
 0x535   : > { %3357 = vrot.lane.b32.xlu1 %v3234_v20, %s7049_s21 }
 0x536   : > { %3361 = vrot.lane.b32.xlu0 %v3236_v3, %s7049_s21  ;;  %s11098_s21 = smov 116  }
 0x539   : > { %3377 = vrot.lane.b32.xlu1 %v2724_v61, %s7050_s23 }
 0x53a   : > { %3379 = vrot.lane.b32.xlu0 %v3219_v9, %s7050_s23 }
 0x53d   : > { %3375 = vrot.lane.b32.xlu1 %v2722_v8, %s7050_s23 }
 0x53e   : > { %3381 = vrot.lane.b32.xlu0 %v3221_v21, %s7050_s23  ;;  %s11123_s23 = smov 108  }
 0x541   : > { %3419 = vperm.xlu1 %6912, %v3416_v11  }
 0x573   : > { %v3258_v12 = vpop.permute.xlu1 %3257 }
 0x574   : > { %v3262_v10 = vpop.permute.xlu0 %3261 }
 0x577   : > { %v3297_v15 = vpop.permute.xlu1 %3296 }
 0x578   : > { %v3301_v17 = vpop.permute.xlu0 %3300 }
 0x57b   : > { %v3337_v18 = vpop.permute.xlu1 %3336 }
 0x57c   : > { %v3341_v62 = vpop.permute.xlu0 %3340 }
 0x57f   : > { %v3260_v63 = vpop.permute.xlu1 %3259 }
 0x580   : > { %v3264_v56 = vpop.permute.xlu0 %3263  ;;  %v3265_v42 = vsel %vm555_vm2, %v3258_v12, %v3260_v63  ;;  %v3266_v59 = vsel %vm555_vm2, %v3260_v63, %v3262_v10 }
 0x581   : > { %v3267_v22 = vsel %vm555_vm2, %v3262_v10, %v3264_v56  ;;  %3275 = vst.msk [vmem:[#allocation3 + $0x38] sm:$0xf] %vm3227_vm1, %v3264_v56  ;;  %3272 = vst [vmem:[#allocation3 + $0x20] sm:$0xf] %v3265_v42  ;;  %vm3255_vm2 = vcmask 375812  }
 0x582   : > { %3273 = vst [vmem:[#allocation3 + $0x28] sm:$0xf] %v3266_v59  ;;  %3274 = vst [vmem:[#allocation3 + $0x30] sm:$0xf] %v3267_v22 }
 0x583   : > { %v3299_v31 = vpop.permute.xlu1 %3298 }
 0x584   : > { %v3303_v26 = vpop.permute.xlu0 %3302  ;;  %v3305_v27 = vsel %vm3304_vm4, %v3297_v15, %v3299_v31  ;;  %v3306_v60 = vsel %vm3304_vm4, %v3299_v31, %v3301_v17 }
 0x585   : > { %v3307_v6 = vsel %vm3304_vm4, %v3301_v17, %v3303_v26  ;;  %3315 = vst.msk [vmem:[#allocation3 + $0x58] sm:$0xf] %vm3227_vm1, %v3303_v26  ;;  %3312 = vst [vmem:[#allocation3 + $0x40] sm:$0xf] %v3305_v27  ;;  %vm4167_vm4 = vcmask 277504  }
 0x586   : > { %3313 = vst [vmem:[#allocation3 + $0x48] sm:$0xf] %v3306_v60  ;;  %3314 = vst [vmem:[#allocation3 + $0x50] sm:$0xf] %v3307_v6 }
 0x587   : > { %v3339_v53 = vpop.permute.xlu1 %3338 }
 0x588   : > { %v3343_v28 = vpop.permute.xlu0 %3342  ;;  %v3344_v35 = vsel %vm609_vm6, %v3337_v18, %v3339_v53  ;;  %v3345_v55 = vsel %vm609_vm6, %v3339_v53, %v3341_v62 }
 0x589   : > { %v3346_v32 = vsel %vm609_vm6, %v3341_v62, %v3343_v28  ;;  %3354 = vst.msk [vmem:[#allocation3 + $0x78] sm:$0xf] %vm3227_vm1, %v3343_v28  ;;  %3351 = vst [vmem:[#allocation3 + $0x60] sm:$0xf] %v3344_v35  ;;  %vm3324_vm6 = vcmask 883712  }
 0x58a   : > { %3352 = vst [vmem:[#allocation3 + $0x68] sm:$0xf] %v3345_v55  ;;  %3353 = vst [vmem:[#allocation3 + $0x70] sm:$0xf] %v3346_v32  ;;  %v3395_v32 = vld [vmem:[%s11069_s3] sm:$0xff] }
 0x58b   : > { %v3238_v34 = vpop.permute.xlu1 %3237 }
 0x58c   : > { %v3242_v30 = vpop.permute.xlu0 %3241 }
 0x58f   : > { %v3277_v57 = vpop.permute.xlu1 %3276 }
 0x590   : > { %v3281_v1 = vpop.permute.xlu0 %3280 }
 0x593   : > { %v3317_v13 = vpop.permute.xlu1 %3316 }
 0x594   : > { %v3321_v23 = vpop.permute.xlu0 %3320 }
 0x597   : > { %v3356_v29 = vpop.permute.xlu1 %3355 }
 0x598   : > { %v3360_v16 = vpop.permute.xlu0 %3359 }
 0x59b   : > { %v3240_v58 = vpop.permute.xlu1 %3239 }
 0x59c   : > { %v3244_v14 = vpop.permute.xlu0 %3243  ;;  %v3245_v47 = vsel %vm537_vm3, %v3238_v34, %v3240_v58  ;;  %v3246_v33 = vsel %vm537_vm3, %v3240_v58, %v3242_v30 }
 0x59d   : > { %v3247_v36 = vsel %vm537_vm3, %v3242_v30, %v3244_v14  ;;  %3256 = vst.msk [vmem:[#allocation3 + $0x18] sm:$0xf0] %vm3255_vm2, %v3244_v14  ;;  %3252 = vst [vmem:[#allocation3] sm:$0xf0] %v3245_v47 }
 0x59e   : > { %3253 = vst [vmem:[#allocation3 + $0x8] sm:$0xf0] %v3246_v33  ;;  %3254 = vst [vmem:[#allocation3 + $0x10] sm:$0xf0] %v3247_v36 }
 0x59f   : > { %v3279_v37 = vpop.permute.xlu1 %3278 }
 0x5a0   : > { %v3283_v38 = vpop.permute.xlu0 %3282  ;;  %v3285_v39 = vsel %vm3284_vm5, %v3277_v57, %v3279_v37  ;;  %v3286_v5 = vsel %vm3284_vm5, %v3279_v37, %v3281_v1 }
 0x5a1   : > { %v3287_v19 = vsel %vm3284_vm5, %v3281_v1, %v3283_v38  ;;  %3295 = vst.msk [vmem:[#allocation3 + $0x38] sm:$0xf0] %vm3255_vm2, %v3283_v38  ;;  %3292 = vst [vmem:[#allocation3 + $0x20] sm:$0xf0] %v3285_v39 }
 0x5a2   : > { %3293 = vst [vmem:[#allocation3 + $0x28] sm:$0xf0] %v3286_v5  ;;  %3294 = vst [vmem:[#allocation3 + $0x30] sm:$0xf0] %v3287_v19  ;;  %v3632_v5 = vld [vmem:[%s11076_s10 + $0x8] sm:$0xff]  ;;  %v3634_v19 = vld [vmem:[%s11076_s10 + $0x18] sm:$0xff] }
 0x5a3   : > { %v3319_v43 = vpop.permute.xlu1 %3318 }
 0x5a4   : > { %v3323_v44 = vpop.permute.xlu0 %3322  ;;  %v3325_v45 = vsel %vm3324_vm6, %v3317_v13, %v3319_v43  ;;  %v3326_v46 = vsel %vm3324_vm6, %v3319_v43, %v3321_v23  ;;  %v3399_v41 = vld [vmem:[#allocation3 + $0x18] sm:$0xff]  ;;  %v3396_v48 = vld [vmem:[#allocation3] sm:$0xff]  ;;  %v3631_v43 = vld [vmem:[%s11076_s10] sm:$0xff] }
 0x5a5   : > { %v3327_v25 = vsel %vm3324_vm6, %v3321_v23, %v3323_v44  ;;  %3335 = vst.msk [vmem:[#allocation3 + $0x58] sm:$0xf0] %vm3255_vm2, %v3323_v44  ;;  %3332 = vst [vmem:[#allocation3 + $0x40] sm:$0xf0] %v3325_v45  ;;  %v3397_v7 = vld [vmem:[#allocation3 + $0x8] sm:$0xff]  ;;  %v3398_v52 = vld [vmem:[#allocation3 + $0x10] sm:$0xff]  ;;  %v6440_v44 = vpack.c.bf16 %v3634_v19, %v3632_v5 }
 0x5a6   : > { %3333 = vst [vmem:[#allocation3 + $0x48] sm:$0xf0] %v3326_v46  ;;  %3334 = vst [vmem:[#allocation3 + $0x50] sm:$0xf0] %v3327_v25  ;;  %v3633_v45 = vld [vmem:[%s11076_s10 + $0x10] sm:$0xff]  ;;  %v3636_v46 = vld [vmem:[%s11076_s10 + $0x28] sm:$0xff] }
 0x5a7   : > { %v3358_v51 = vpop.permute.xlu1 %3357  ;;  %v3638_v25 = vld [vmem:[%s11076_s10 + $0x38] sm:$0xff]  ;;  %v3667_v5 = vld [vmem:[%s11076_s10 + $0x120] sm:$0xff]  ;;  %v3669_v19 = vld [vmem:[%s11076_s10 + $0x130] sm:$0xff] }
 0x5a8   : > { %v3362_v54 = vpop.permute.xlu0 %3361  ;;  %v3364_v49 = vsel %vm3363_vm7, %v3356_v29, %v3358_v51  ;;  %v3365_v50 = vsel %vm3363_vm7, %v3358_v51, %v3360_v16  ;;  %v3403_v2 = vld [vmem:[#allocation3 + $0x38] sm:$0xff]  ;;  %v3400_v9 = vld [vmem:[#allocation3 + $0x20] sm:$0xff]  ;;  %v6442_v51 = vpack.c.bf16 %v3633_v45, %v3631_v43  ;;  %v6478_v45 = vpack.c.bf16 %v3669_v19, %v3667_v5  ;;  %v3702_v19 = vld [vmem:[%s11076_s10 + $0x238] sm:$0xff] }
 0x5a9   : > { %v3401_v8 = vld [vmem:[#allocation3 + $0x28] sm:$0xff]  ;;  %v3366_v61 = vsel %vm3363_vm7, %v3360_v16, %v3362_v54  ;;  %3374 = vst.msk [vmem:[#allocation3 + $0x78] sm:$0xf0] %vm3255_vm2, %v3362_v54  ;;  %3371 = vst [vmem:[#allocation3 + $0x60] sm:$0xf0] %v3364_v49  ;;  %v6432_v21 = vpack.c.bf16 %v3403_v2, %v3399_v41  ;;  %v3402_v0 = vld [vmem:[#allocation3 + $0x30] sm:$0xff]  ;;  %v6426_v3 = vpack.c.bf16 %v3400_v9, %v3396_v48 }
 0x5aa   : > { %3372 = vst [vmem:[#allocation3 + $0x68] sm:$0xf0] %v3365_v50  ;;  %v6424_v20 = vpack.c.bf16 %v3401_v8, %v3397_v7  ;;  %3373 = vst [vmem:[#allocation3 + $0x70] sm:$0xf0] %v3366_v61  ;;  %v6434_v11 = vpack.c.bf16 %v3402_v0, %v3398_v52  ;;  %v6444_v41 = vpack.c.bf16 %v3638_v25, %v3636_v46  ;;  %v3635_v7 = vld [vmem:[%s11076_s10 + $0x20] sm:$0xff]  ;;  %v3637_v48 = vld [vmem:[%s11076_s10 + $0x30] sm:$0xff] }
 0x5ab   : > { %6433 = vmatprep.subr.bf16.mxu0 %v6432_v21  ;;  %v3378_v12 = vpop.permute.xlu1 %3377  ;;  %v3640_v54 = vld [vmem:[%s11076_s10 + $0x48] sm:$0xff]  ;;  %v3642_v49 = vld [vmem:[%s11076_s10 + $0x58] sm:$0xff]  ;;  %v6446_v50 = vpack.c.bf16 %v3637_v48, %v3635_v7  ;;  %v3639_v9 = vld [vmem:[%s11076_s10 + $0x40] sm:$0xff]  ;;  %vm4430_vm2 = vcmask 1041408  }
 0x5ac   : > { %6425 = vmatprep.subr.bf16.mxu1 %v6424_v20  ;;  %v3380_v10 = vpop.permute.xlu0 %3379  ;;  %6435 = vmatpush1.bf16.msra.mxu0 %v6434_v11  ;;  %v3407_v18 = vld [vmem:[#allocation3 + $0x58] sm:$0xff]  ;;  %v3404_v63 = vld [vmem:[#allocation3 + $0x40] sm:$0xff]  ;;  %v6448_v8 = vpack.c.bf16 %v3642_v49, %v3640_v54  ;;  %v3646_v52 = vld [vmem:[%s11076_s10 + $0x78] sm:$0xff] }
 0x5ad   : > { %6427 = vmatpush1.bf16.msra.mxu1 %v6426_v3  ;;  %v3385_v15 = vsel %vm3383_vm8, %v3378_v12, %v3380_v10  ;;  %v3405_v62 = vld [vmem:[#allocation3 + $0x48] sm:$0xff]  ;;  %v3406_v6 = vld [vmem:[#allocation3 + $0x50] sm:$0xff]  ;;  %v3641_v61 = vld [vmem:[%s11076_s10 + $0x50] sm:$0xff] }
 0x5ae   : > { %3392 = vst [vmem:[#allocation3 + $0x88] sm:$0xf] %v3385_v15  ;;  %v3644_v21 = vld [vmem:[%s11076_s10 + $0x68] sm:$0xff]  ;;  %v6450_v0 = vpack.c.bf16 %v3641_v61, %v3639_v9  ;;  %v3643_v3 = vld [vmem:[%s11076_s10 + $0x60] sm:$0xff]  ;;  %v3645_v11 = vld [vmem:[%s11076_s10 + $0x70] sm:$0xff] }
 0x5af   : > { %v3376_v17 = vpop.permute.xlu1 %3375  ;;  %v6452_v20 = vpack.c.bf16 %v3646_v52, %v3644_v21  ;;  %v6454_v15 = vpack.c.bf16 %v3645_v11, %v3643_v3  ;;  %v3672_v43 = vld [vmem:[%s11076_s10 + $0x148] sm:$0xff]  ;;  %v3671_v25 = vld [vmem:[%s11076_s10 + $0x140] sm:$0xff]  ;;  %v3678_v7 = vld [vmem:[%s11076_s10 + $0x178] sm:$0xff] }
 0x5b0   : > { %v3382_v56 = vpop.permute.xlu0 %3381  ;;  %v3384_v42 = vsel %vm3383_vm8, %v3376_v17, %v3378_v12  ;;  %v3411_v59 = vld [vmem:[#allocation3 + $0x78] sm:$0xff]  ;;  %v3408_v31 = vld [vmem:[#allocation3 + $0x60] sm:$0xff]  ;;  %v3675_v49 = vld [vmem:[%s11076_s10 + $0x160] sm:$0xff] }
 0x5b1   : > { %v3409_v22 = vld [vmem:[#allocation3 + $0x68] sm:$0xff]  ;;  %v3386_v26 = vsel %vm3383_vm8, %v3380_v10, %v3382_v56  ;;  %3394 = vst.msk [vmem:[#allocation3 + $0x98] sm:$0xf] %vm3227_vm1, %v3382_v56  ;;  %3391 = vst [vmem:[#allocation3 + $0x80] sm:$0xf] %v3384_v42  ;;  %v6436_v27 = vpack.c.bf16 %v3411_v59, %v3407_v18  ;;  %v3410_v53 = vld [vmem:[#allocation3 + $0x70] sm:$0xff]  ;;  %v6430_v28 = vpack.c.bf16 %v3408_v31, %v3404_v63 }
 0x5b2   : > { %v6428_v60 = vpack.c.bf16 %v3409_v22, %v3405_v62  ;;  %3393 = vst [vmem:[#allocation3 + $0x90] sm:$0xf] %v3386_v26  ;;  %v6438_v35 = vpack.c.bf16 %v3410_v53, %v3406_v6  ;;  %v3648_v12 = vld [vmem:[%s11076_s10 + $0x88] sm:$0xff]  ;;  %v3650_v10 = vld [vmem:[%s11076_s10 + $0x98] sm:$0xff]  ;;  %v3647_v18 = vld [vmem:[%s11076_s10 + $0x80] sm:$0xff]  ;;  %vm3938_vm1 = vcmask 867328  }
 0x5b3   : > { %6437 = vmatprep.subr.bf16.mxu0 %v6436_v27  ;;  %v6456_v17 = vpack.c.bf16 %v3650_v10, %v3648_v12  ;;  %v3649_v62 = vld [vmem:[%s11076_s10 + $0x90] sm:$0xff]  ;;  %v3652_v63 = vld [vmem:[%s11076_s10 + $0xa8] sm:$0xff]  ;;  %v3654_v56 = vld [vmem:[%s11076_s10 + $0xb8] sm:$0xff] }
 0x5b4   : > { %6429 = vmatprep.subr.bf16.mxu1 %v6428_v60  ;;  %6439 = vmatpush1.bf16.msra.mxu0 %v6438_v35  ;;  %v6458_v42 = vpack.c.bf16 %v3649_v62, %v3647_v18  ;;  %v6460_v59 = vpack.c.bf16 %v3654_v56, %v3652_v63  ;;  %v3651_v22 = vld [vmem:[%s11076_s10 + $0xa0] sm:$0xff]  ;;  %v3653_v31 = vld [vmem:[%s11076_s10 + $0xb0] sm:$0xff]  ;;  %v3656_v26 = vld [vmem:[%s11076_s10 + $0xc8] sm:$0xff] }
 0x5b5   : > { %6431 = vmatpush1.bf16.msra.mxu1 %v6430_v28  ;;  %v3413_v55 = vld [vmem:[#allocation3 + $0x88] sm:$0xf]  ;;  %v6462_v60 = vpack.c.bf16 %v3653_v31, %v3651_v22  ;;  %v3655_v53 = vld [vmem:[%s11076_s10 + $0xc0] sm:$0xff]  ;;  %v3657_v28 = vld [vmem:[%s11076_s10 + $0xd0] sm:$0xff] }
 0x5b6   : > { %5378 = vmatprep.subr.msk.mxu1 %vm3426_vm9, %v3413_v55  ;;  %v3658_v27 = vld [vmem:[%s11076_s10 + $0xd8] sm:$0xff]  ;;  %v3660_v35 = vld [vmem:[%s11076_s10 + $0xe8] sm:$0xff]  ;;  %v3679_v52 = vld [vmem:[%s11076_s10 + $0x180] sm:$0xff] }
 0x5b7   : > { %v6464_v6 = vpack.c.bf16 %v3658_v27, %v3656_v26  ;;  %v3662_v55 = vld [vmem:[%s11076_s10 + $0xf8] sm:$0xff]  ;;  %v3683_v10 = vld [vmem:[%s11076_s10 + $0x1a0] sm:$0xff]  ;;  %v3692_v22 = vld [vmem:[%s11076_s10 + $0x1e8] sm:$0xff] }
 0x5b8   : > { %v3415_v34 = vld [vmem:[#allocation3 + $0x98] sm:$0xf]  ;;  %v3412_v30 = vld [vmem:[#allocation3 + $0x80] sm:$0xf]  ;;  %v3682_v9 = vld [vmem:[%s11076_s10 + $0x198] sm:$0xff] }
 0x5b9   : > { %5381 = vmatprep.subr.msk.mxu0 %vm3426_vm9, %v3415_v34  ;;  %5379 = vmatpush1.msk.msra.mxu1 %vm3426_vm9, %v3412_v30  ;;  %v3414_v57 = vld [vmem:[#allocation3 + $0x90] sm:$0xf]  ;;  %v6468_v34 = vpack.c.bf16 %v3662_v55, %v3660_v35  ;;  %v3686_v3 = vld [vmem:[%s11076_s10 + $0x1b8] sm:$0xff] }
 0x5ba   : > { %5382 = vmatpush1.msk.msra.mxu0 %vm3426_vm9, %v3414_v57  ;;  %5380 = vmatmul.mubr.msk.f32.vlgmr.msra.gmra.mrb[8].mxu1 %vm3422_vm10, %v3395_v32  ;;  %v3659_v30 = vld [vmem:[%s11076_s10 + $0xe0] sm:$0xff]  ;;  %v3661_v57 = vld [vmem:[%s11076_s10 + $0xf0] sm:$0xff]  ;;  %v3690_v18 = vld [vmem:[%s11076_s10 + $0x1d8] sm:$0xff] }
 0x5bb   : > { %5383 = vmatmul.mubr.msk.f32.vlgmr.msra.gmra.mrb[10].mxu0 %vm3422_vm10, %v3395_v32  ;;  %6441 = vmatprep.subr.bf16.mxu1 %v6440_v44  ;;  %v6466_v32 = vpack.c.bf16 %v3657_v28, %v3655_v53  ;;  %v3674_v44 = vld [vmem:[%s11076_s10 + $0x158] sm:$0xff]  ;;  %v3687_v56 = vld [vmem:[%s11076_s10 + $0x1c0] sm:$0xff]  ;;  %v3696_v28 = vld [vmem:[%s11076_s10 + $0x208] sm:$0xff] }
 0x5bc   : > { %6443 = vmatpush1.bf16.msra.mxu1 %v6442_v51  ;;  %v6480_v46 = vpack.c.bf16 %v3674_v44, %v3672_v43  ;;  %v3673_v51 = vld [vmem:[%s11076_s10 + $0x150] sm:$0xff]  ;;  %v3694_v31 = vld [vmem:[%s11076_s10 + $0x1f8] sm:$0xff]  ;;  %v3691_v26 = vld [vmem:[%s11076_s10 + $0x1e0] sm:$0xff] }
 0x5bd   : > { %6445 = vmatprep.subr.bf16.mxu1 %v6444_v41  ;;  %v3676_v41 = vld [vmem:[%s11076_s10 + $0x168] sm:$0xff]  ;;  %v6482_v48 = vpack.c.bf16 %v3673_v51, %v3671_v25  ;;  %v6500_v27 = vpack.c.bf16 %v3694_v31, %v3692_v22  ;;  %v3698_v35 = vld [vmem:[%s11076_s10 + $0x218] sm:$0xff]  ;;  %v3715_v31 = vld [vmem:[%s11076_s10 + $0x2a0] sm:$0xff] }
 0x5be   : > { %v6484_v54 = vpack.c.bf16 %v3678_v7, %v3676_v41 }
 0x5c0   : > { %v3420_v1 = vpop.permute.xlu1 %3419  ;;  %6447 = vmatpush1.bf16.msra.mxu1 %v6446_v50  ;;  %v3677_v50 = vld [vmem:[%s11076_s10 + $0x170] sm:$0xff] }
 0x5c1   : > { %6449 = vmatprep.subr.bf16.mxu1 %v6448_v8  ;;  %v3680_v8 = vld [vmem:[%s11076_s10 + $0x188] sm:$0xff]  ;;  %v6486_v61 = vpack.c.bf16 %v3677_v50, %v3675_v49  ;;  %v3706_v50 = vld [vmem:[%s11076_s10 + $0x258] sm:$0xff] }
 0x5c2   : > { %v6488_v21 = vpack.c.bf16 %v3682_v9, %v3680_v8  ;;  %v3704_v49 = vld [vmem:[%s11076_s10 + $0x248] sm:$0xff] }
 0x5c3   : > { %v6512_v9 = vpack.c.bf16 %v3706_v50, %v3704_v49 }
 0x5c4   : > { %6451 = vmatpush1.bf16.msra.mxu1 %v6450_v0  ;;  %v3681_v0 = vld [vmem:[%s11076_s10 + $0x190] sm:$0xff] }
 0x5c5   : > { %6453 = vmatprep.subr.bf16.mxu1 %v6452_v20  ;;  %v3684_v20 = vld [vmem:[%s11076_s10 + $0x1a8] sm:$0xff]  ;;  %v6490_v11 = vpack.c.bf16 %v3681_v0, %v3679_v52  ;;  %v3710_v0 = vld [vmem:[%s11076_s10 + $0x278] sm:$0xff] }
 0x5c6   : > { %v6492_v12 = vpack.c.bf16 %v3686_v3, %v3684_v20  ;;  %v3708_v52 = vld [vmem:[%s11076_s10 + $0x268] sm:$0xff] }
 0x5c7   : > { %v6516_v3 = vpack.c.bf16 %v3710_v0, %v3708_v52 }
 0x5c8   : > { %6455 = vmatpush1.bf16.msra.mxu1 %v6454_v15  ;;  %v3685_v15 = vld [vmem:[%s11076_s10 + $0x1b0] sm:$0xff] }
 0x5c9   : > { %6457 = vmatprep.subr.bf16.mxu1 %v6456_v17  ;;  %v3688_v17 = vld [vmem:[%s11076_s10 + $0x1c8] sm:$0xff]  ;;  %v6494_v62 = vpack.c.bf16 %v3685_v15, %v3683_v10  ;;  %v3714_v15 = vld [vmem:[%s11076_s10 + $0x298] sm:$0xff] }
 0x5ca   : > { %v6496_v63 = vpack.c.bf16 %v3690_v18, %v3688_v17  ;;  %v3712_v10 = vld [vmem:[%s11076_s10 + $0x288] sm:$0xff] }
 0x5cb   : > { %v6520_v18 = vpack.c.bf16 %v3714_v15, %v3712_v10 }
 0x5cc   : > { %6459 = vmatpush1.bf16.msra.mxu1 %v6458_v42  ;;  %v3689_v42 = vld [vmem:[%s11076_s10 + $0x1d0] sm:$0xff] }
 0x5cd   : > { %6461 = vmatprep.subr.bf16.mxu1 %v6460_v59  ;;  %v6498_v59 = vpack.c.bf16 %v3689_v42, %v3687_v56  ;;  %v3716_v56 = vld [vmem:[%s11076_s10 + $0x2a8] sm:$0xff]  ;;  %v3718_v42 = vld [vmem:[%s11076_s10 + $0x2b8] sm:$0xff] }
 0x5ce   : > { %v6524_v22 = vpack.c.bf16 %v3718_v42, %v3716_v56 }
 0x5d0   : > { %6463 = vmatpush1.bf16.msra.mxu1 %v6462_v60  ;;  %v3693_v60 = vld [vmem:[%s11076_s10 + $0x1f0] sm:$0xff] }
 0x5d1   : > { %6465 = vmatprep.subr.bf16.mxu1 %v6464_v6  ;;  %v6502_v53 = vpack.c.bf16 %v3693_v60, %v3691_v26  ;;  %v3717_v26 = vld [vmem:[%s11076_s10 + $0x2b0] sm:$0xff]  ;;  %v3722_v60 = vld [vmem:[%s11076_s10 + $0x2d8] sm:$0xff] }
 0x5d4   : > { %6467 = vmatpush1.bf16.msra.mxu1 %v6466_v32 }
 0x5d5   : > { %6469 = vmatprep.subr.bf16.mxu1 %v6468_v34  ;;  %v6504_v34 = vpack.c.bf16 %v3698_v35, %v3696_v28  ;;  %v3719_v28 = vld [vmem:[%s11076_s10 + $0x2c0] sm:$0xff]  ;;  %v3721_v35 = vld [vmem:[%s11076_s10 + $0x2d0] sm:$0xff] }
 0x68d   : > { %v3505_v13 = vpop.f32.mrb[8].mxu1 }
 0x68e   : > { %v3576_v23 = vpop.f32.mrb[10].mxu0  ;;  %v3507_v29 = vpop.f32.mrb[9].mxu1  ;;  %v3506_v33 = vadd.f32 %v3505_v13, %v3420_v1  ;;  %v3666_v13 = vld [vmem:[%s11076_s10 + $0x118] sm:$0xff] }
 0x68f   : > { %v3577_v16 = vadd.f32 %v3576_v23, %v3420_v1  ;;  %v3508_v58 = vadd.f32 %v3507_v29, %v3420_v1  ;;  %v3578_v14 = vpop.f32.mrb[11].mxu0  ;;  %v6470_v23 = vpack.c.bf16 %v3661_v57, %v3659_v30 }
 0x690   : > { %v3579_v47 = vadd.f32 %v3578_v14, %v3420_v1  ;;  %v3664_v1 = vld [vmem:[%s11076_s10 + $0x108] sm:$0xff] }
 0x691   : > { %6949 = vtanh.f32 %v3577_v16  ;;  %v6472_v29 = vpack.c.bf16 %v3666_v13, %v3664_v1  ;;  %v3663_v16 = vld [vmem:[%s11076_s10 + $0x100] sm:$0xff]  ;;  %v3668_v14 = vld [vmem:[%s11076_s10 + $0x128] sm:$0xff]  ;;  %6471 = vmatpush1.bf16.msra.mxu1 %v6470_v23 }
 0x692   : > { %6951 = vtanh.f32 %v3508_v58  ;;  %v3665_v58 = vld [vmem:[%s11076_s10 + $0x110] sm:$0xff] }
 0x693   : > { %6953 = vtanh.f32 %v3579_v47  ;;  %v3670_v47 = vld [vmem:[%s11076_s10 + $0x138] sm:$0xff]  ;;  %6473 = vmatprep.subr.bf16.mxu1 %v6472_v29 }
 0x694   : > { %6955 = vtanh.f32 %v3506_v33  ;;  %v6474_v33 = vpack.c.bf16 %v3665_v58, %v3663_v16 }
 0x696   : > { %6475 = vmatpush1.bf16.msra.mxu1 %v6474_v33 }
 0x69b   : > { %v10035_v36 = vpop.eup %6949 }
 0x69c   : > { %v10037_v37 = vpop.eup %6951 }
 0x69d   : > { %v10039_v38 = vpop.eup %6953  ;;  %v6913_v39 = vpack.i.bf16 %v10035_v36, %v10037_v37 }
 0x69e   : > { %3595 = vrot.lane.b32.xlu1 %v10039_v38, %s11118_s26  ;;  %v10076_v2 = vpop.eup %6955 }
 0x69f   : > { %6914 = vrot.lane.b32.xlu0 %v6913_v39, %s11118_s26  ;;  %v6476_v39 = vpack.c.bf16 %v3670_v47, %v3668_v14 }
 0x6a1   : > { %6477 = vmatprep.subr.bf16.mxu1 %v6476_v39  ;;  %v3697_v39 = vld [vmem:[%s11076_s10 + $0x210] sm:$0xff] }
 0x6a2   : > { %6479 = vmatpush1.bf16.msra.mxu1 %v6478_v45 }
 0x6a3   : > { %3589 = vrot.lane.b32.xlu0 %v10076_v2, %s11118_s26  ;;  %6481 = vmatprep.subr.bf16.mxu1 %v6480_v46 }
 0x6a6   : > { %6483 = vmatpush1.bf16.msra.mxu1 %v6482_v48  ;;  %v3699_v48 = vld [vmem:[%s11076_s10 + $0x220] sm:$0xff] }
 0x6a7   : > { %6485 = vmatprep.subr.bf16.mxu1 %v6484_v54  ;;  %v3701_v54 = vld [vmem:[%s11076_s10 + $0x230] sm:$0xff] }
 0x6a8   : > { %v6510_v8 = vpack.c.bf16 %v3701_v54, %v3699_v48 }
 0x6aa   : > { %6487 = vmatpush1.bf16.msra.mxu1 %v6486_v61  ;;  %v3703_v61 = vld [vmem:[%s11076_s10 + $0x240] sm:$0xff] }
 0x6ab   : > { %6489 = vmatprep.subr.bf16.mxu1 %v6488_v21  ;;  %v3705_v21 = vld [vmem:[%s11076_s10 + $0x250] sm:$0xff] }
 0x6ac   : > { %v6514_v20 = vpack.c.bf16 %v3705_v21, %v3703_v61 }
 0x6ae   : > { %6491 = vmatpush1.bf16.msra.mxu1 %v6490_v11  ;;  %v3707_v11 = vld [vmem:[%s11076_s10 + $0x260] sm:$0xff] }
 0x6af   : > { %6493 = vmatprep.subr.bf16.mxu1 %v6492_v12  ;;  %v3709_v12 = vld [vmem:[%s11076_s10 + $0x270] sm:$0xff] }
 0x6b0   : > { %v6518_v17 = vpack.c.bf16 %v3709_v12, %v3707_v11 }
 0x6b2   : > { %6495 = vmatpush1.bf16.msra.mxu1 %v6494_v62  ;;  %v3711_v62 = vld [vmem:[%s11076_s10 + $0x280] sm:$0xff] }
 0x6b3   : > { %6497 = vmatprep.subr.bf16.mxu1 %v6496_v63  ;;  %v3713_v63 = vld [vmem:[%s11076_s10 + $0x290] sm:$0xff] }
 0x6b6   : > { %6499 = vmatpush1.bf16.msra.mxu1 %v6498_v59  ;;  %v6522_v59 = vpack.c.bf16 %v3713_v63, %v3711_v62 }
 0x6b7   : > { %6501 = vmatprep.subr.bf16.mxu1 %v6500_v27  ;;  %v3720_v27 = vld [vmem:[%s11076_s10 + $0x2c8] sm:$0xff] }
 0x6ba   : > { %6503 = vmatpush1.bf16.msra.mxu1 %v6502_v53  ;;  %v6528_v53 = vpack.c.bf16 %v3722_v60, %v3720_v27 }
 0x6bb   : > { %6505 = vmatprep.subr.bf16.mxu1 %v6504_v34  ;;  %v6530_v34 = vpack.c.bf16 %v3721_v35, %v3719_v28 }
 0x710   : > { %v3596_v30 = vpop.permute.xlu1 %3595 }
 0x711   : > { %v6915_v6 = vpop.permute.xlu0 %6914  ;;  %v3607_v47 = vmax.f32 %v10039_v38, %v3596_v30  ;;  %v3700_v38 = vld [vmem:[%s11076_s10 + $0x228] sm:$0xff] }
 0x712   : > { %v6917_v55 = vunpack.i.h.bf16 %v6915_v6  ;;  %v6916_v32 = vunpack.i.l.bf16 %v6915_v6  ;;  %v6508_v7 = vpack.c.bf16 %v3702_v19, %v3700_v38  ;;  %v6526_v6 = vpack.c.bf16 %v3717_v26, %v3715_v31  ;;  %v3731_v38 = vld [vmem:[%s11076_s10 + $0x320] sm:$0xff]  ;;  %v3733_v19 = vld [vmem:[%s11076_s10 + $0x330] sm:$0x7] }
 0x714   : > { %v3599_v57 = vsel %vm537_vm3, %v6917_v55, %v3596_v30  ;;  %v3598_v1 = vsel %vm537_vm3, %v6916_v32, %v6917_v55  ;;  %v3724_v55 = vld [vmem:[%s11076_s10 + $0x2e8] sm:$0xff] }
 0x715   : > { %v3590_v13 = vpop.permute.xlu0 %3589  ;;  %v3605_v23 = vmax.f32 %v10037_v37, %v3598_v1  ;;  %v10252_v29 = vmax.f32 %v10035_v36, %v3599_v57  ;;  %v3723_v57 = vld [vmem:[%s11076_s10 + $0x2e0] sm:$0xff]  ;;  %v3725_v1 = vld [vmem:[%s11076_s10 + $0x2f0] sm:$0xff] }
 0x716   : > { %v3597_v16 = vsel %vm537_vm3, %v3590_v13, %v6916_v32  ;;  %vm3735_vm3 = vcmask 220160   ;;  %v3726_v32 = vld [vmem:[%s11076_s10 + $0x2f8] sm:$0xff]  ;;  %v3728_v13 = vld [vmem:[%s11076_s10 + $0x308] sm:$0xff] }
 0x717   : > { %v3604_v58 = vmax.f32 %v10076_v2, %v3597_v16  ;;  %v6918_v14 = vpack.i.bf16 %v10252_v29, %v3605_v23  ;;  %v3695_v2 = vld [vmem:[%s11076_s10 + $0x200] sm:$0xff]  ;;  %v6532_v30 = vpack.c.bf16 %v3726_v32, %v3724_v55  ;;  %v6534_v16 = vpack.c.bf16 %v3725_v1, %v3723_v57  ;;  %v4070_v57 = vld [vmem:[%s11077_s11 + $0x8] sm:$0xff]  ;;  %v4071_v1 = vld [vmem:[%s11077_s11 + $0x10] sm:$0xff] }
 0x718   : > { %v6506_v51 = vpack.c.bf16 %v3697_v39, %v3695_v2  ;;  %v3734_v2 = vld [vmem:[%s11076_s10 + $0x338] sm:$0x7] }
 0x719   : > { %6919 = vrot.lane.b32.xlu1 %v6918_v14, %s7047_s19  ;;  %3612 = vrot.lane.b32.xlu0 %v3604_v58, %s7047_s19  ;;  %v3727_v14 = vld [vmem:[%s11076_s10 + $0x300] sm:$0xff] }
 0x71d   : > { %3618 = vrot.lane.b32.xlu1 %v3607_v47, %s7047_s19  ;;  %s7060_s19 = smov 114  }
 0x78b   : > { %v10261_v33 = vpop.permute.xlu1 %6919  ;;  %v3613_v5 = vpop.permute.xlu0 %3612 }
 0x78c   : > { %v6922_v37 = vunpack.i.h.bf16 %v10261_v33  ;;  %v6921_v36 = vunpack.i.l.bf16 %v10261_v33  ;;  %v3953_v33 = vld [vmem:[%s11072_s6] sm:$0xff] }
 0x78e   : > { %v3620_v43 = vsel %vm3284_vm5, %v3613_v5, %v6921_v36  ;;  %v3621_v44 = vsel %vm3284_vm5, %v6921_v36, %v6922_v37  ;;  %v3732_v36 = vld [vmem:[%s11076_s10 + $0x328] sm:$0xff] }
 0x78f   : > { %v3627_v45 = vmax.f32 %v3604_v58, %v3620_v43  ;;  %v10281_v46 = vpop.permute.xlu1 %3618  ;;  %v3628_v25 = vmax.f32 %v3605_v23, %v3621_v44  ;;  %v3730_v23 = vld [vmem:[%s11076_s10 + $0x318] sm:$0xff]  ;;  %v6540_v5 = vpack.c.bf16 %v3734_v2, %v3732_v36  ;;  %v6543_v43 = vpack.c.bf16 %v3733_v19, %v3731_v38  ;;  %v4075_v36 = vld [vmem:[%s11077_s11 + $0x30] sm:$0xff]  ;;  %v4077_v19 = vld [vmem:[%s11077_s11 + $0x40] sm:$0xff] }
 0x790   : > { %v3630_v41 = vmax.f32 %v3607_v47, %v10281_v46  ;;  %v6536_v58 = vpack.c.bf16 %v3730_v23, %v3728_v13  ;;  %v3729_v47 = vld [vmem:[%s11076_s10 + $0x310] sm:$0xff]  ;;  %v3622_v44 = vsel %vm3284_vm5, %v6922_v37, %v10281_v46  ;;  %v3954_v37 = vld [vmem:[%s11072_s6 + $0x8] sm:$0xff]  ;;  %v4072_v23 = vld [vmem:[%s11077_s11 + $0x18] sm:$0xff]  ;;  %vm4764_vm5 = vcmask 261120  }
 0x791   : > { %3809 = vmatprep.mubr.f32.mxu1 %v3628_v25  ;;  %v6538_v39 = vpack.c.bf16 %v3729_v47, %v3727_v14  ;;  %v4074_v14 = vld [vmem:[%s11077_s11 + $0x28] sm:$0xff]  ;;  %v4076_v2 = vld [vmem:[%s11077_s11 + $0x38] sm:$0xff] }
 0x792   : > { %3810 = vmatmul.mubr.f32.vlgmr.msra.gmra.mrb[10].mxu1 %v3627_v45  ;;  %v3629_v45 = vmax.f32 %v10252_v29, %v3622_v44  ;;  %v3942_v29 = vld [vmem:[%s11071_s5] sm:$0xff] }
 0x793   : > { %6507 = vmatpush1.bf16.msra.mxu1 %v6506_v51  ;;  %5386 = vmatprep.mubr.msk.f32.mxu1 %vm3735_vm3, %v3630_v41 }
 0x794   : > { %6509 = vmatprep.subr.bf16.mxu1 %v6508_v7 }
 0x797   : > { %6511 = vmatpush1.bf16.msra.mxu1 %v6510_v8 }
 0x798   : > { %6513 = vmatprep.subr.bf16.mxu1 %v6512_v9 }
 0x79b   : > { %6515 = vmatpush1.bf16.msra.mxu1 %v6514_v20 }
 0x79c   : > { %6517 = vmatprep.subr.bf16.mxu1 %v6516_v3 }
 0x79f   : > { %6519 = vmatpush1.bf16.msra.mxu1 %v6518_v17 }
 0x7a0   : > { %6521 = vmatprep.subr.bf16.mxu1 %v6520_v18 }
 0x7a3   : > { %6523 = vmatpush1.bf16.msra.mxu1 %v6522_v59 }
 0x7a4   : > { %6525 = vmatprep.subr.bf16.mxu1 %v6524_v22 }
 0x7a7   : > { %6527 = vmatpush1.bf16.msra.mxu1 %v6526_v6  ;;  %v3943_v6 = vld [vmem:[%s11071_s5 + $0x8] sm:$0xff] }
 0x7a8   : > { %6529 = vmatprep.subr.bf16.mxu1 %v6528_v53 }
 0x7ab   : > { %6531 = vmatpush1.bf16.msra.mxu1 %v6530_v34 }
 0x7ac   : > { %6533 = vmatprep.subr.bf16.mxu1 %v6532_v30  ;;  %v4069_v30 = vld [vmem:[%s11077_s11] sm:$0xff] }
 0x7ad   : > { %v6562_v13 = vpack.c.bf16 %v4070_v57, %v4069_v30 }
 0x7af   : > { %6535 = vmatpush1.bf16.msra.mxu1 %v6534_v16  ;;  %v6566_v16 = vpack.c.bf16 %v4072_v23, %v4071_v1  ;;  %6563 = vmatprep.subr.bf16.mxu0 %v6562_v13 }
 0x7b0   : > { %6537 = vmatprep.subr.bf16.mxu1 %v6536_v58  ;;  %v4073_v58 = vld [vmem:[%s11077_s11 + $0x20] sm:$0xff]  ;;  %6565 = vmatpush3.bf16.msra.mxu0 %v6562_v13 }
 0x7b1   : > { %6567 = vmatprep.subr.bf16.mxu0 %v6566_v16  ;;  %v6570_v47 = vpack.c.bf16 %v4074_v14, %v4073_v58 }
 0x7b3   : > { %6539 = vmatpush1.bf16.msra.mxu1 %v6538_v39 }
 0x7b4   : > { %6542 = vmatprep.subr.msk.bf16.mxu1 %vm9958_vm0, %v6540_v5  ;;  %6569 = vmatpush3.bf16.msra.mxu0 %v6566_v16  ;;  %v6574_v5 = vpack.c.bf16 %v4076_v2, %v4075_v36 }
 0x7b5   : > { %6571 = vmatprep.subr.bf16.mxu0 %v6570_v47 }
 0x7b7   : > { %6545 = vmatpush1.bf16.msk.msra.mxu1 %vm9958_vm0, %v6543_v43  ;;  %v4078_v43 = vld [vmem:[%s11077_s11 + $0x48] sm:$0xff] }
 0x7b8   : > { %6573 = vmatpush3.bf16.msra.mxu0 %v6570_v47  ;;  %v6578_v44 = vpack.c.bf16 %v4078_v43, %v4077_v19 }
 0x7b9   : > { %6575 = vmatprep.subr.bf16.mxu0 %v6574_v5 }
 0x7ba   : > { %3881 = vmatmul.mubr.f32.vlgmr.msra.gmra.mrb[10].mxu1 %v3629_v45  ;;  %v4079_v45 = vld [vmem:[%s11077_s11 + $0x50] sm:$0xff] }
 0x7bb   : > { %5546 = vmatprep.mubr.msk.f32.mxu1 %vm3965_vm12, %v3942_v29  ;;  %v4081_v29 = vld [vmem:[%s11077_s11 + $0x60] sm:$0xff] }
 0x7bc   : > { %6577 = vmatpush3.bf16.msra.mxu0 %v6574_v5 }
 0x7bd   : > { %6579 = vmatprep.subr.bf16.mxu0 %v6578_v44 }
 0x7c0   : > { %6581 = vmatpush3.bf16.msra.mxu0 %v6578_v44 }
 0x88d   : > { %v3882_v25 = vpop.f32.mrb[10].mxu1 }
 0x88e   : > { %3894 = vrot.lane.b32.xlu1 %v3882_v25, %s11121_s17  ;;  %3890 = vrot.lane.b32.xlu0 %v3882_v25, %s11118_s26  ;;  %v3884_v51 = vpop.f32.mrb[11].mxu1  ;;  %3888 = vst.msk [vmem:[#allocation4] sm:$0xff] %vm3887_vm11, %v3882_v25 }
 0x892   : > { %3903 = vrot.lane.b32.xlu1 %v3882_v25, %s7051_s28  ;;  %3898 = vrot.lane.b32.xlu0 %v3882_v25, %s7052_s29 }
 0x895   : > { %v3944_v50 = vld [vmem:[#allocation4] sm:$0xff] }
 0x896   : > { %3911 = vrot.lane.b32.xlu1 %v3882_v25, %s11098_s21  ;;  %3905 = vrot.lane.b32.xlu0 %v3884_v51, %s7051_s28 }
 0x89a   : > { %3919 = vrot.lane.b32.xlu1 %v3882_v25, %s11123_s23  ;;  %3913 = vrot.lane.b32.xlu0 %v3884_v51, %s11098_s21  ;;  %s511_s21 = scalar_lea.vmem [#allocation6], %s510_s2 }
 0x89b   : > { %s5293_s28 = sshll.u32 %s511_s21, 4  ;;  %s11026_s28 = int_to_ptr.vmem [resolvable:$true] %s5293_s28 }
 0x89e   : > { %3926 = vrot.lane.b32.xlu1 %v3882_v25, %s7054_s30  ;;  %3921 = vrot.lane.b32.xlu0 %v3884_v51, %s11123_s23  ;;  %s7057_s23 = smov 121  }
 0x8a2   : > { %3934 = vrot.lane.b32.xlu1 %v3882_v25, %s7055_s1  ;;  %3928 = vrot.lane.b32.xlu0 %v3884_v51, %s7054_s30  ;;  %v4080_v25 = vld [vmem:[%s11077_s11 + $0x58] sm:$0xff]  ;;  %s7058_s30 = smov 120  }
 0x8a6   : > { %3957 = vperm.xlu1 %6912, %v3953_v33   ;;  %3936 = vrot.lane.b32.xlu0 %v3884_v51, %s7055_s1  ;;  %v6582_v51 = vpack.c.bf16 %v4080_v25, %v4079_v45  ;;  %v4082_v33 = vld [vmem:[%s11077_s11 + $0x68] sm:$0x7]  ;;  %s6973_s1 = sshll.u32 %s7062_s25, 4  ;;  %s6974_s1 = int_to_ptr.vmem [resolvable:$false] %s6973_s1 }
 0x8a7   : > { %s6975_s18 = scalar_lea.vmem %s6974_s1, 32  ;;  %p6976_p0 = scmp.lt.s32.totalorder %s11026_s28, %s6974_s1 }
 0x8a8   : > { %6583 = vmatprep.subr.bf16.mxu0 %v6582_v51 }
 0x8a9   : > { %6585 = vmatpush3.bf16.msra.mxu0 %v6582_v51  ;;  %v4236_v51 = vld [vmem:[%s11073_s7] sm:$0xff] }
 0x8aa   : > { %3962 = vperm.xlu0 %6856, %v3954_v37   ;;  %v6586_v37 = vpack.c.bf16 %v4082_v33, %v4081_v29  ;;  %v4239_v29 = vld [vmem:[%s11073_s7 + $0x18] sm:$0xff]  ;;  %v4238_v33 = vld [vmem:[%s11073_s7 + $0x10] sm:$0xff] }
 0x8ac   : > { %6588 = vmatprep.subr.msk.bf16.mxu0 %vm9958_vm0, %v6586_v37 }
 0x8ad   : > { %6591 = vmatpush3.bf16.msk.msra.mxu0 %vm9958_vm0, %v6586_v37  ;;  %vm4286_vm0 = vcmask 130048   ;;  %v4241_v37 = vld [vmem:[%s11073_s7 + $0x28] sm:$0xff] }
 0x8ae   : > { %6592 = vmatprep.subr.bf16.mxu0 %v7044_v40 }
 0x900   : > { %v3895_v46 = vpop.permute.xlu1 %3894  ;;  %v3891_v41 = vpop.permute.xlu0 %3890 }
 0x901   : > { %3897 = vst.msk [vmem:[#allocation4 + $0x10] sm:$0xff] %vm3887_vm11, %v3895_v46  ;;  %3893 = vst.msk [vmem:[#allocation4 + $0x8] sm:$0xff] %vm3887_vm11, %v3891_v41 }
 0x904   : > { %v3904_v7 = vpop.permute.xlu1 %3903  ;;  %v3899_v48 = vpop.permute.xlu0 %3898 }
 0x905   : > { %3901 = vst.msk [vmem:[#allocation4 + $0x18] sm:$0xff] %vm3887_vm11, %v3899_v48 }
 0x908   : > { %v3912_v54 = vpop.permute.xlu1 %3911  ;;  %v3906_v49 = vpop.permute.xlu0 %3905  ;;  %v3945_v8 = vld [vmem:[#allocation4 + $0x8] sm:$0xff]  ;;  %v3946_v0 = vld [vmem:[#allocation4 + $0x10] sm:$0xff] }
 0x909   : > { %v3908_v9 = vsel %vm3907_vm13, %v3904_v7, %v3906_v49  ;;  %v6546_v61 = vpack.c.bf16 %v3945_v8, %v3944_v50 }
 0x90a   : > { %3910 = vst.msk [vmem:[#allocation4 + $0x20] sm:$0xff] %vm3887_vm11, %v3908_v9 }
 0x90b   : > { %6547 = vmatprep.subr.bf16.mxu1 %v6546_v61 }
 0x90c   : > { %v3920_v21 = vpop.permute.xlu1 %3919  ;;  %6549 = vmatpush3.bf16.msra.mxu1 %v6546_v61  ;;  %v3914_v52 = vpop.permute.xlu0 %3913  ;;  %v3947_v20 = vld [vmem:[#allocation4 + $0x18] sm:$0xff] }
 0x90d   : > { %v3916_v3 = vsel %vm3915_vm14, %v3912_v54, %v3914_v52  ;;  %v6550_v11 = vpack.c.bf16 %v3947_v20, %v3946_v0  ;;  %v4237_v0 = vld [vmem:[%s11073_s7 + $0x8] sm:$0xff] }
 0x90e   : > { %3918 = vst.msk [vmem:[#allocation4 + $0x28] sm:$0xff] %vm3887_vm11, %v3916_v3  ;;  %v4263_v20 = vld [vmem:[%s11074_s8 + $0x8] sm:$0xff]  ;;  %v4262_v3 = vld [vmem:[%s11074_s8] sm:$0xff] }
 0x90f   : > { %6551 = vmatprep.subr.bf16.mxu1 %v6550_v11 }
 0x910   : > { %6553 = vmatpush3.bf16.msra.mxu1 %v6550_v11  ;;  %v3922_v12 = vpop.permute.xlu0 %3921  ;;  %v3927_v15 = vpop.permute.xlu1 %3926  ;;  %v4265_v11 = vld [vmem:[%s11074_s8 + $0x18] sm:$0xff] }
 0x911   : > { %v3923_v10 = vsel %vm3324_vm6, %v3920_v21, %v3922_v12  ;;  %v3948_v62 = vld [vmem:[#allocation4 + $0x20] sm:$0xff] }
 0x912   : > { %3925 = vst.msk [vmem:[#allocation4 + $0x30] sm:$0xff] %vm3887_vm11, %v3923_v10  ;;  %v4264_v12 = vld [vmem:[%s11074_s8 + $0x10] sm:$0xff] }
 0x914   : > { %v3929_v17 = vpop.permute.xlu0 %3928  ;;  %v3935_v42 = vpop.permute.xlu1 %3934 }
 0x915   : > { %v3931_v18 = vsel %vm3930_vm15, %v3927_v15, %v3929_v17  ;;  %v3949_v63 = vld [vmem:[#allocation4 + $0x28] sm:$0xff] }
 0x916   : > { %3933 = vst.msk [vmem:[#allocation4 + $0x38] sm:$0xff] %vm3887_vm11, %v3931_v18  ;;  %v6554_v56 = vpack.c.bf16 %v3949_v63, %v3948_v62 }
 0x918   : > { %6555 = vmatprep.subr.bf16.mxu1 %v6554_v56  ;;  %v3937_v59 = vpop.permute.xlu0 %3936 }
 0x919   : > { %v3939_v22 = vsel %vm3938_vm1, %v3935_v42, %v3937_v59  ;;  %6557 = vmatpush3.bf16.msra.mxu1 %v6554_v56  ;;  %v3950_v31 = vld [vmem:[#allocation4 + $0x30] sm:$0xff] }
 0x91a   : > { %3941 = vst.msk [vmem:[#allocation4 + $0x40] sm:$0xff] %vm3887_vm11, %v3939_v22 }
 0x91d   : > { %v3951_v26 = vld [vmem:[#allocation4 + $0x38] sm:$0xff] }
 0x91e   : > { %v6558_v27 = vpack.c.bf16 %v3951_v26, %v3950_v31 }
 0x920   : > { %6559 = vmatprep.subr.bf16.mxu1 %v6558_v27 }
 0x921   : > { %6561 = vmatpush3.bf16.msra.mxu1 %v6558_v27  ;;  %v3952_v60 = vld [vmem:[#allocation4 + $0x40] sm:$0xff] }
 0x922   : > { %5544 = vmatprep.subr.mxu1 %v3952_v60 }
 0x925   : > { %5545 = vmatpush3.msra.mxu1 %v3952_v60  ;;  %v3958_v35 = vpop.permute.xlu1 %3957 }
 0x926   : > { %5547 = vmatmul.mubr.msk.f32.vlgmr.msra.gmra.mrb[12].mxu1 %vm3965_vm12, %v3943_v6 }
 0x927   : > { %4602 = vmatprep.mubr.f32.mxu1 %v7041_v4 }
 0x929   : > { %v3963_v53 = vpop.permute.xlu0 %3962 }
 0x9f9   : > { %v5548_v28 = vpop.f32.mrb[12].mxu1 }
 0x9fa   : > { %v4044_v55 = vadd.f32 %v5548_v28, %v3963_v53  ;;  %v4038_v32 = vpop.f32.mrb[13].mxu1 }
 0x9fb   : > { %v4039_v34 = vadd.f32 %v4038_v32, %v3958_v35 }
 0x9fc   : > { %6957 = vtanh.f32 %v4044_v55 }
 0x9fd   : > { %6959 = vtanh.f32 %v4039_v34 }
 0xa06   : > { %v6958_v39 = vpop.eup %6957 }
 0xa07   : > { %v6960_v38 = vpop.eup %6959  ;;  %4053 = vrot.lane.b32.xlu0 %v6958_v39, %s11118_s26 }
 0xa08   : > { %4051 = vrot.lane.b32.xlu1 %v6960_v38, %s11118_s26 }
 0xa79   : > { %v4054_v46 = vpop.permute.xlu0 %4053 }
 0xa7a   : > { %v4058_v41 = vmax.f32 %v6958_v39, %v4054_v46  ;;  %v4052_v7 = vpop.permute.xlu1 %4051  ;;  %v4240_v46 = vld [vmem:[%s11073_s7 + $0x20] sm:$0xff] }
 0xa7b   : > { %v4057_v48 = vmax.f32 %v6960_v38, %v4052_v7  ;;  %v4242_v7 = vld [vmem:[%s11073_s7 + $0x30] sm:$0xff] }
 0xa7c   : > { %4063 = vrot.lane.b32.xlu0 %v4058_v41, %s7052_s29 }
 0xa7d   : > { %4061 = vrot.lane.b32.xlu1 %v4057_v48, %s7052_s29  ;;  %s7056_s29 = smov 122  }
 0xaee   : > { %v4064_v54 = vpop.permute.xlu0 %4063 }
 0xaef   : > { %v4062_v49 = vpop.permute.xlu1 %4061  ;;  %v4068_v8 = vmax.f32 %v4058_v41, %v4064_v54  ;;  %v4243_v41 = vld [vmem:[%s11073_s7 + $0x38] sm:$0xff] }
 0xaf0   : > { %v4067_v50 = vmax.f32 %v4057_v48, %v4062_v49  ;;  %v4389_v48 = vld [vmem:[%s11078_s12 + $0x8] sm:$0xff]  ;;  %v4395_v54 = vld [vmem:[%s11078_s12 + $0x38] sm:$0xff]  ;;  %v4388_v49 = vld [vmem:[%s11078_s12] sm:$0xff] }
 0xaf2   : > { %5577 = vmatprep.mubr.msk.f32.mxu0 %vm3930_vm15, %v4067_v50  ;;  %v6619_v50 = vpack.c.bf16 %v4395_v54, %v4389_v48 }
 0xaf3   : > { %5578 = vmatmul.mubr.msk.f32.vlgmr.msra.gmra.mrb[12].mxu0 %vm3930_vm15, %v4068_v8  ;;  %v4394_v8 = vld [vmem:[%s11078_s12 + $0x30] sm:$0xff] }
 0xaf4   : > { %5392 = vmatprep.mubr.msk.f32.mxu0 %vm4286_vm0, %v4237_v0  ;;  %v4396_v0 = vld [vmem:[%s11078_s12 + $0x40] sm:$0xff] }
 0xbc6   : > { %v5579_v24 = vpop.f32.mrb[12].mxu0 }
 0xbc7   : > { %4169 = vst.msk [vmem:[#allocation5 + $0x8] sm:$0xff] %vm4167_vm4, %v5579_v24  ;;  %4174 = vrot.lane.b32.xlu0 %v5579_v24, %s11118_s26  ;;  %v4158_v9 = vpop.f32.mrb[13].mxu0 }
 0xbc8   : > { %4168 = vst.msk [vmem:[#allocation5] sm:$0xff] %vm4167_vm4, %v4158_v9  ;;  %4172 = vrot.lane.b32.xlu1 %v4158_v9, %s11118_s26  ;;  %s11124_s26 = smov 116  }
 0xbcb   : > { %4182 = vrot.lane.b32.xlu0 %v5579_v24, %s11121_s17 }
 0xbcc   : > { %4180 = vrot.lane.b32.xlu1 %v4158_v9, %s11121_s17  ;;  %s7059_s17 = smov 115  }
 0xbce   : > { %v4245_v61 = vld [vmem:[#allocation5 + $0x8] sm:$0xff] }
 0xbcf   : > { %4190 = vrot.lane.b32.xlu0 %v5579_v24, %s7056_s29  ;;  %v4244_v21 = vld [vmem:[#allocation5] sm:$0xff] }
 0xbd0   : > { %4188 = vrot.lane.b32.xlu1 %v4158_v9, %s7056_s29  ;;  %v6593_v52 = vpack.c.bf16 %v4245_v61, %v4244_v21  ;;  %v4397_v61 = vld [vmem:[%s11078_s12 + $0x48] sm:$0xff] }
 0xbd2   : > { %6594 = vmatpush1.bf16.msra.mxu0 %v6593_v52  ;;  %v4390_v52 = vld [vmem:[%s11078_s12 + $0x10] sm:$0xff] }
 0xbd3   : > { %4198 = vrot.lane.b32.xlu0 %v5579_v24, %s7057_s23  ;;  %6595 = vmatprep.subr.bf16.mxu0 %v7044_v40 }
 0xbd4   : > { %4196 = vrot.lane.b32.xlu1 %v4158_v9, %s7057_s23 }
 0xbd7   : > { %4206 = vrot.lane.b32.xlu0 %v5579_v24, %s7058_s30 }
 0xbd8   : > { %4204 = vrot.lane.b32.xlu1 %v4158_v9, %s7058_s30  ;;  %s11024_s30 = scalar_lea.hbm %s11082_s16, %s5418_s27 }
 0xbdb   : > { %4214 = vrot.lane.b32.xlu0 %v5579_v24, %s11124_s26 }
 0xbdc   : > { %4212 = vrot.lane.b32.xlu1 %v4158_v9, %s11124_s26  ;;  %s5281_s26 = scalar_lea.sflag [#allocation7], %s510_s2 }
 0xbdf   : > { %4222 = vrot.lane.b32.xlu0 %v5579_v24, %s7059_s17 }
 0xbe0   : > { %4220 = vrot.lane.b32.xlu1 %v4158_v9, %s7059_s17  ;;  %s6969_s17 = scalar_lea.vmem %s11026_s28, 16 }
 0xbe1   : > { %p6970_p11 = scmp.ne.s32.totalorder %s11026_s28, %s6969_s17  ;;  %p6977_p1 = scmp.lt.s32.totalorder %s6975_s18, %s6969_s17 }
 0xbe3   : > { %4230 = vrot.lane.b32.xlu0 %v5579_v24, %s7060_s19  ;;  %v6621_v24 = vpack.c.bf16 %v4394_v8, %v4388_v49  ;;  %v4716_v49 = vld [vmem:[%s11079_s13] sm:$0xff]  ;;  %p6971_p12 = pnand %p6970_p11, %p7186_p5  ;;  %p6978_p2 = por %p6977_p1, %p6976_p0 }
 0xbe4   : > { %4228 = vrot.lane.b32.xlu1 %v4158_v9, %s7060_s19  ;;  %v4391_v9 = vld [vmem:[%s11078_s12 + $0x18] sm:$0xff] }
 0xbe5   : > { %v6627_v21 = vpack.c.bf16 %v4397_v61, %v4391_v9  ;;  %v4717_v9 = vld [vmem:[%s11079_s13 + $0x8] sm:$0xff]  ;;  %v4722_v61 = vld [vmem:[%s11079_s13 + $0x30] sm:$0xff]  ;;  %p6972_p13 = pneg %p6971_p12 }
 0xbe7   : > { %4273 = vperm.xlu0 %6856, %v4263_v20   ;;  %v6629_v20 = vpack.c.bf16 %v4396_v0, %v4390_v52  ;;  %6628 = vmatprep.subr.bf16.mxu1 %v6627_v21  ;;  %v4724_v21 = vld [vmem:[%s11079_s13 + $0x40] sm:$0xff]  ;;  %v4719_v52 = vld [vmem:[%s11079_s13 + $0x18] sm:$0xff]  ;;  %p6979_p3 = pnand %p6978_p2, %p6972_p13 }
 0xbe8   : > { %4268 = vperm.xlu1 %6912, %v4262_v3   ;;  %v4401_v3 = vld [vmem:[%s11078_s12 + $0x68] sm:$0xff]  ;;  %v4723_v0 = vld [vmem:[%s11079_s13 + $0x38] sm:$0xff] }
 0xbe9   : > { %6630 = vmatpush1.bf16.msra.mxu1 %v6629_v20  ;;  %v4725_v20 = vld [vmem:[%s11079_s13 + $0x48] sm:$0xff] }
 0xbeb   : > { %4283 = vperm.xlu0 %6856, %v4265_v11   ;;  %v4407_v11 = vld [vmem:[%s11078_s12 + $0x98] sm:$0xff] }
 0xbec   : > { %4278 = vperm.xlu1 %6912, %v4264_v12   ;;  %v4403_v12 = vld [vmem:[%s11078_s12 + $0x78] sm:$0xff] }
 0xc39   : > { %v4175_v10 = vpop.permute.xlu0 %4174 }
 0xc3a   : > { %4179 = vst.msk [vmem:[#allocation5 + $0x18] sm:$0xff] %vm4167_vm4, %v4175_v10  ;;  %v4173_v15 = vpop.permute.xlu1 %4172  ;;  %v6623_v10 = vpack.c.bf16 %v4407_v11, %v4401_v3 }
 0xc3b   : > { %4178 = vst.msk [vmem:[#allocation5 + $0x10] sm:$0xff] %vm4167_vm4, %v4173_v15  ;;  %v4409_v15 = vld [vmem:[%s11078_s12 + $0xa8] sm:$0xff] }
 0xc3d   : > { %v4183_v17 = vpop.permute.xlu0 %4182 }
 0xc3e   : > { %4187 = vst.msk [vmem:[#allocation5 + $0x28] sm:$0xff] %vm4167_vm4, %v4183_v17  ;;  %v4181_v18 = vpop.permute.xlu1 %4180  ;;  %v4400_v17 = vld [vmem:[%s11078_s12 + $0x60] sm:$0xff] }
 0xc3f   : > { %4186 = vst.msk [vmem:[#allocation5 + $0x20] sm:$0xff] %vm4167_vm4, %v4181_v18  ;;  %v4406_v18 = vld [vmem:[%s11078_s12 + $0x90] sm:$0xff] }
 0xc41   : > { %v4191_v62 = vpop.permute.xlu0 %4190  ;;  %v4247_v63 = vld [vmem:[#allocation5 + $0x18] sm:$0xff] }
 0xc42   : > { %4195 = vst.msk [vmem:[#allocation5 + $0x38] sm:$0xff] %vm4167_vm4, %v4191_v62  ;;  %v4189_v56 = vpop.permute.xlu1 %4188  ;;  %v4246_v42 = vld [vmem:[#allocation5 + $0x10] sm:$0xff]  ;;  %v6631_v62 = vpack.c.bf16 %v4409_v15, %v4403_v12 }
 0xc43   : > { %4194 = vst.msk [vmem:[#allocation5 + $0x30] sm:$0xff] %vm4167_vm4, %v4189_v56  ;;  %v6596_v59 = vpack.c.bf16 %v4247_v63, %v4246_v42  ;;  %v6625_v63 = vpack.c.bf16 %v4406_v18, %v4400_v17  ;;  %v4402_v56 = vld [vmem:[%s11078_s12 + $0x70] sm:$0xff]  ;;  %v4408_v42 = vld [vmem:[%s11078_s12 + $0xa0] sm:$0xff] }
 0xc44   : > { %6632 = vmatprep.subr.bf16.mxu1 %v6631_v62 }
 0xc45   : > { %v4199_v22 = vpop.permute.xlu0 %4198  ;;  %6597 = vmatpush1.bf16.msra.mxu0 %v6596_v59  ;;  %v4249_v31 = vld [vmem:[#allocation5 + $0x28] sm:$0xff]  ;;  %v6633_v59 = vpack.c.bf16 %v4408_v42, %v4402_v56 }
 0xc46   : > { %4203 = vst.msk [vmem:[#allocation5 + $0x48] sm:$0xff] %vm4167_vm4, %v4199_v22  ;;  %v4197_v26 = vpop.permute.xlu1 %4196  ;;  %6598 = vmatprep.subr.bf16.mxu0 %v7044_v40  ;;  %v4248_v27 = vld [vmem:[#allocation5 + $0x20] sm:$0xff]  ;;  %v4413_v22 = vld [vmem:[%s11078_s12 + $0xc8] sm:$0x3] }
 0xc47   : > { %4202 = vst.msk [vmem:[#allocation5 + $0x40] sm:$0xff] %vm4167_vm4, %v4197_v26  ;;  %v6599_v60 = vpack.c.bf16 %v4249_v31, %v4248_v27  ;;  %6634 = vmatpush1.bf16.msra.mxu1 %v6633_v59  ;;  %v4415_v31 = vld [vmem:[%s11078_s12 + $0xd8] sm:$0x3]  ;;  %v4412_v26 = vld [vmem:[%s11078_s12 + $0xc0] sm:$0x3] }
 0xc48   : > { %5402 = vmatprep.subr.msk.mxu1 %vm4430_vm2, %v4415_v31  ;;  %v4414_v27 = vld [vmem:[%s11078_s12 + $0xd0] sm:$0x3] }
 0xc49   : > { %v4207_v6 = vpop.permute.xlu0 %4206  ;;  %6600 = vmatpush1.bf16.msra.mxu0 %v6599_v60  ;;  %v4251_v53 = vld [vmem:[#allocation5 + $0x38] sm:$0xff]  ;;  %v4393_v60 = vld [vmem:[%s11078_s12 + $0x28] sm:$0xff] }
 0xc4a   : > { %4211 = vst.msk [vmem:[#allocation5 + $0x58] sm:$0xff] %vm4167_vm4, %v4207_v6  ;;  %v4205_v28 = vpop.permute.xlu1 %4204  ;;  %6601 = vmatprep.subr.bf16.mxu0 %v7044_v40  ;;  %v4250_v35 = vld [vmem:[#allocation5 + $0x30] sm:$0xff]  ;;  %v4399_v6 = vld [vmem:[%s11078_s12 + $0x58] sm:$0xff] }
 0xc4b   : > { %4210 = vst.msk [vmem:[#allocation5 + $0x50] sm:$0xff] %vm4167_vm4, %v4205_v28  ;;  %v6602_v55 = vpack.c.bf16 %v4251_v53, %v4250_v35  ;;  %5403 = vmatpush1.msk.msra.mxu1 %vm4430_vm2, %v4414_v27  ;;  %v6635_v53 = vpack.c.bf16 %v4399_v6, %v4393_v60 }
 0xc4d   : > { %v4215_v32 = vpop.permute.xlu0 %4214  ;;  %6603 = vmatpush1.bf16.msra.mxu0 %v6602_v55  ;;  %v4253_v34 = vld [vmem:[#allocation5 + $0x48] sm:$0xff] }
 0xc4e   : > { %4219 = vst.msk [vmem:[#allocation5 + $0x68] sm:$0xff] %vm4167_vm4, %v4215_v32  ;;  %v4213_v30 = vpop.permute.xlu1 %4212  ;;  %6604 = vmatprep.subr.bf16.mxu0 %v7044_v40  ;;  %v4252_v57 = vld [vmem:[#allocation5 + $0x40] sm:$0xff] }
 0xc4f   : > { %4218 = vst.msk [vmem:[#allocation5 + $0x60] sm:$0xff] %vm4167_vm4, %v4213_v30  ;;  %v6605_v1 = vpack.c.bf16 %v4253_v34, %v4252_v57 }
 0xc51   : > { %v4223_v13 = vpop.permute.xlu0 %4222  ;;  %6606 = vmatpush1.bf16.msra.mxu0 %v6605_v1  ;;  %v4255_v23 = vld [vmem:[#allocation5 + $0x58] sm:$0xff] }
 0xc52   : > { %4227 = vst.msk [vmem:[#allocation5 + $0x78] sm:$0xff] %vm4167_vm4, %v4223_v13  ;;  %v4221_v16 = vpop.permute.xlu1 %4220  ;;  %6607 = vmatprep.subr.bf16.mxu0 %v7044_v40  ;;  %v4254_v58 = vld [vmem:[#allocation5 + $0x50] sm:$0xff] }
 0xc53   : > { %4226 = vst.msk [vmem:[#allocation5 + $0x70] sm:$0xff] %vm4167_vm4, %v4221_v16  ;;  %v6608_v14 = vpack.c.bf16 %v4255_v23, %v4254_v58 }
 0xc55   : > { %v4231_v47 = vpop.permute.xlu0 %4230  ;;  %6609 = vmatpush1.bf16.msra.mxu0 %v6608_v14  ;;  %v4257_v36 = vld [vmem:[#allocation5 + $0x68] sm:$0xff] }
 0xc56   : > { %4235 = vst.msk [vmem:[#allocation5 + $0x88] sm:$0xff] %vm4167_vm4, %v4231_v47  ;;  %v4229_v2 = vpop.permute.xlu1 %4228  ;;  %6610 = vmatprep.subr.bf16.mxu0 %v7044_v40  ;;  %v4256_v39 = vld [vmem:[#allocation5 + $0x60] sm:$0xff]  ;;  %v4392_v14 = vld [vmem:[%s11078_s12 + $0x20] sm:$0xff]  ;;  %v4398_v47 = vld [vmem:[%s11078_s12 + $0x50] sm:$0xff] }
 0xc57   : > { %4234 = vst.msk [vmem:[#allocation5 + $0x80] sm:$0xff] %vm4167_vm4, %v4229_v2  ;;  %v6611_v5 = vpack.c.bf16 %v4257_v36, %v4256_v39  ;;  %v4405_v36 = vld [vmem:[%s11078_s12 + $0x88] sm:$0xff]  ;;  %v4411_v2 = vld [vmem:[%s11078_s12 + $0xb8] sm:$0xff] }
 0xc59   : > { %6612 = vmatpush1.bf16.msra.mxu0 %v6611_v5  ;;  %v4259_v38 = vld [vmem:[#allocation5 + $0x78] sm:$0xff] }
 0xc5a   : > { %6613 = vmatprep.subr.bf16.mxu0 %v7044_v40  ;;  %v4258_v19 = vld [vmem:[#allocation5 + $0x70] sm:$0xff] }
 0xc5b   : > { %v6614_v43 = vpack.c.bf16 %v4259_v38, %v4258_v19  ;;  %v6637_v38 = vpack.c.bf16 %v4398_v47, %v4392_v14 }
 0xc5d   : > { %6615 = vmatpush1.bf16.msra.mxu0 %v6614_v43  ;;  %v4261_v44 = vld [vmem:[#allocation5 + $0x88] sm:$0xff] }
 0xc5e   : > { %6616 = vmatprep.subr.bf16.mxu0 %v7044_v40  ;;  %v4260_v45 = vld [vmem:[#allocation5 + $0x80] sm:$0xff] }
 0xc5f   : > { %v6617_v25 = vpack.c.bf16 %v4261_v44, %v4260_v45  ;;  %v6639_v45 = vpack.c.bf16 %v4411_v2, %v4405_v36 }
 0xc61   : > { %6618 = vmatpush1.bf16.msra.mxu0 %v6617_v25  ;;  %v4404_v25 = vld [vmem:[%s11078_s12 + $0x80] sm:$0xff] }
 0xc62   : > { %6620 = vmatprep.subr.bf16.mxu0 %v6619_v50  ;;  %v4718_v50 = vld [vmem:[%s11079_s13 + $0x10] sm:$0xff] }
 0xc64   : > { %4364 = vmatmul.mubr.f32.vlgmr.msra.gmra.mrb[14].mxu0 %v4236_v51  ;;  %v4410_v51 = vld [vmem:[%s11078_s12 + $0xb0] sm:$0xff] }
 0xc65   : > { %5393 = vmatprep.mubr.msk.f32.mxu0 %vm4286_vm0, %v4239_v29  ;;  %6622 = vmatpush1.bf16.msra.mxu0 %v6621_v24  ;;  %v6641_v29 = vpack.c.bf16 %v4410_v51, %v4404_v25 }
 0xc66   : > { %6624 = vmatprep.subr.bf16.mxu0 %v6623_v10  ;;  %v4274_v34 = vpop.permute.xlu0 %4273 }
 0xc67   : > { %v4269_v28 = vpop.permute.xlu1 %4268 }
 0xc68   : > { %4369 = vmatmul.mubr.f32.gmra.mrb[16].mxu0 %v4238_v33 }
 0xc69   : > { %5394 = vmatprep.mubr.msk.f32.mxu0 %vm4286_vm0, %v4241_v37  ;;  %6626 = vmatpush1.bf16.msra.mxu0 %v6625_v63  ;;  %v4417_v37 = vld [vmem:[%s11078_s12 + $0xe8] sm:$0x3] }
 0xc6a   : > { %5396 = vmatprep.subr.msk.mxu0 %vm4430_vm2, %v4413_v22  ;;  %v4284_v39 = vpop.permute.xlu0 %4283 }
 0xc6b   : > { %v4279_v13 = vpop.permute.xlu1 %4278 }
 0xc6c   : > { %4374 = vmatmul.mubr.f32.gmra.mrb[18].mxu0 %v4240_v46 }
 0xc6d   : > { %5395 = vmatprep.mubr.msk.f32.mxu0 %vm4286_vm0, %v4243_v41  ;;  %5397 = vmatpush1.msk.msra.mxu0 %vm4430_vm2, %v4412_v26  ;;  %v4416_v41 = vld [vmem:[%s11078_s12 + $0xe0] sm:$0x3] }
 0xc6e   : > { %6636 = vmatprep.subr.bf16.mxu0 %v6635_v53  ;;  %v4728_v53 = vld [vmem:[%s11079_s13 + $0x60] sm:$0xff] }
 0xc70   : > { %4379 = vmatmul.mubr.f32.gmra.mrb[20].mxu0 %v4242_v7 }
 0xc71   : > { %4513 = vmatprep.mubr.f32.mxu0 %v7041_v4 }
 0xd37   : > { %v4365_v35 = vpop.f32.mrb[14].mxu0 }
 0xd38   : > { %v4366_v55 = vadd.f32 %v4365_v35, %v4269_v28  ;;  %v4367_v32 = vpop.f32.mrb[15].mxu0  ;;  %v4730_v28 = vld [vmem:[%s11079_s13 + $0x70] sm:$0xff] }
 0xd39   : > { %v4729_v32 = vld [vmem:[%s11079_s13 + $0x68] sm:$0xff] }
 0xd3a   : > { %6961 = vtanh.f32 %v4366_v55 }
 0xd3b   : > { %v4370_v30 = vpop.f32.mrb[16].mxu0 }
 0xd3c   : > { %v4371_v57 = vadd.f32 %v4370_v30, %v4274_v34  ;;  %v4372_v1 = vpop.f32.mrb[17].mxu0  ;;  %v4734_v34 = vld [vmem:[%s11079_s13 + $0x90] sm:$0xff]  ;;  %v4736_v30 = vld [vmem:[%s11079_s13 + $0xa0] sm:$0xff] }
 0xd3d   : > { %v4735_v1 = vld [vmem:[%s11079_s13 + $0x98] sm:$0xff] }
 0xd3e   : > { %6963 = vtanh.f32 %v4371_v57  ;;  %v4731_v57 = vld [vmem:[%s11079_s13 + $0x78] sm:$0xff] }
 0xd3f   : > { %v4375_v23 = vpop.f32.mrb[18].mxu0 }
 0xd40   : > { %v4376_v16 = vadd.f32 %v4375_v23, %v4279_v13  ;;  %v4377_v58 = vpop.f32.mrb[19].mxu0  ;;  %v4737_v13 = vld [vmem:[%s11079_s13 + $0xa8] sm:$0xff] }
 0xd42   : > { %6965 = vtanh.f32 %v4376_v16 }
 0xd43   : > { %v4380_v5 = vpop.f32.mrb[20].mxu0 }
 0xd44   : > { %v6962_v19 = vpop.eup %6961  ;;  %v4381_v43 = vadd.f32 %v4380_v5, %v4284_v39  ;;  %v4382_v44 = vpop.f32.mrb[21].mxu0  ;;  %v4997_v5 = vld [vmem:[%s11080_s14 + $0x80] sm:$0xff] }
 0xd45   : > { %5398 = vmatmul.mubr.msk.f32.vlgmr.msra.gmra.mrb[22].mxu0 %vm4167_vm4, %v6962_v19  ;;  %5404 = vmatmul.mubr.msk.f32.vlgmr.msra.gmra.mrb[14].mxu1 %vm4167_vm4, %v6962_v19 }
 0xd46   : > { %6967 = vtanh.f32 %v4381_v43  ;;  %4519 = vmatprep.mubr.f32.mxu0 %v7041_v4  ;;  %4608 = vmatprep.mubr.f32.mxu1 %v7041_v4 }
 0xd47   : > { %6638 = vmatpush1.bf16.msra.mxu0 %v6637_v38  ;;  %v4998_v38 = vld [vmem:[%s11080_s14 + $0x88] sm:$0xff] }
 0xd48   : > { %v6964_v33 = vpop.eup %6963  ;;  %6640 = vmatprep.subr.bf16.mxu0 %v6639_v45 }
 0xd49   : > { %5399 = vmatmul.mubr.msk.f32.gmra.mrb[24].mxu0 %vm4167_vm4, %v6964_v33  ;;  %5405 = vmatmul.mubr.msk.f32.gmra.mrb[16].mxu1 %vm4167_vm4, %v6964_v33 }
 0xd4a   : > { %4525 = vmatprep.mubr.f32.mxu0 %v7041_v4  ;;  %4614 = vmatprep.mubr.f32.mxu1 %v7041_v4 }
 0xd4b   : > { %6642 = vmatpush1.bf16.msra.mxu0 %v6641_v29 }
 0xd4c   : > { %v6966_v46 = vpop.eup %6965  ;;  %5408 = vmatprep.subr.msk.mxu0 %vm4430_vm2, %v4417_v37 }
 0xd4d   : > { %5400 = vmatmul.mubr.msk.f32.gmra.mrb[26].mxu0 %vm4167_vm4, %v6966_v46  ;;  %5406 = vmatmul.mubr.msk.f32.gmra.mrb[18].mxu1 %vm4167_vm4, %v6966_v46 }
 0xd4e   : > { %4531 = vmatprep.mubr.f32.mxu0 %v7041_v4  ;;  %4620 = vmatprep.mubr.f32.mxu1 %v7041_v4 }
 0xd4f   : > { %5409 = vmatpush1.msk.msra.mxu0 %vm4430_vm2, %v4416_v41  ;;  %v4981_v41 = vld [vmem:[%s11080_s14] sm:$0xff] }
 0xd50   : > { %v6968_v7 = vpop.eup %6967 }
 0xd51   : > { %5401 = vmatmul.mubr.msk.f32.gmra.mrb[28].mxu0 %vm4167_vm4, %v6968_v7  ;;  %5407 = vmatmul.mubr.msk.f32.gmra.mrb[20].mxu1 %vm4167_vm4, %v6968_v7 }
 0xd52   : > { %4691 = vmatprep.mubr.f32.mxu0 %v7041_v4  ;;  %4832 = vmatprep.mubr.f32.mxu1 %v7041_v4 }
 0xd55   : > { %5410 = vmatmul.mubr.msk.f32.vlgmr.msra.gmra.mrb[30].mxu0 %vm4167_vm4, %v6962_v19 }
 0xd56   : > { %4697 = vmatprep.mubr.f32.mxu0 %v7041_v4 }
 0xd59   : > { %5411 = vmatmul.mubr.msk.f32.gmra.mrb[32].mxu0 %vm4167_vm4, %v6964_v33 }
 0xd5a   : > { %4703 = vmatprep.mubr.f32.mxu0 %v7041_v4 }
 0xd5d   : > { %5412 = vmatmul.mubr.msk.f32.gmra.mrb[34].mxu0 %vm4167_vm4, %v6966_v46  ;;  %v6667_v46 = vpack.c.bf16 %v4998_v38, %v4997_v5  ;;  %v5013_v5 = vld [vmem:[%s11080_s14 + $0x100] sm:$0xff]  ;;  %v5014_v38 = vld [vmem:[%s11080_s14 + $0x108] sm:$0xff] }
 0xd5e   : > { %4709 = vmatprep.mubr.f32.mxu0 %v7041_v4 }
 0xd61   : > { %5413 = vmatmul.mubr.msk.f32.gmra.mrb[36].mxu0 %vm4167_vm4, %v6968_v7  ;;  %v4982_v7 = vld [vmem:[%s11080_s14 + $0x8] sm:$0xff] }
 0xd62   : > { %4903 = vmatprep.mubr.f32.mxu0 %v7041_v4 }
 0xe18   : > { %v4515_v48 = vpop.f32.mrb[22].mxu0  ;;  %v4604_v54 = vpop.f32.mrb[14].mxu1 }
 0xe19   : > { %v4517_v8 = vpop.f32.mrb[23].mxu0  ;;  %v4606_v24 = vpop.f32.mrb[15].mxu1  ;;  %v4740_v12 = vmul.f32 %v4716_v49, %v4515_v48  ;;  %v4742_v10 = vmul.f32 %v4718_v50, %v4604_v54  ;;  %v4999_v54 = vld [vmem:[%s11080_s14 + $0x90] sm:$0xff]  ;;  %v5000_v49 = vld [vmem:[%s11080_s14 + $0x98] sm:$0xff]  ;;  %v4720_v50 = vld [vmem:[%s11079_s13 + $0x20] sm:$0xff] }
 0xe1a   : > { %v4741_v63 = vmul.f32 %v4717_v9, %v4517_v8  ;;  %v4743_v56 = vmul.f32 %v4719_v52, %v4606_v24  ;;  %v4726_v8 = vld [vmem:[%s11079_s13 + $0x50] sm:$0xff]  ;;  %v4721_v24 = vld [vmem:[%s11079_s13 + $0x28] sm:$0xff]  ;;  %v4727_v9 = vld [vmem:[%s11079_s13 + $0x58] sm:$0xff]  ;;  %v6671_v52 = vpack.c.bf16 %v5000_v49, %v4999_v54 }
 0xe1c   : > { %v4521_v3 = vpop.f32.mrb[24].mxu0  ;;  %v4610_v11 = vpop.f32.mrb[16].mxu1 }
 0xe1d   : > { %v4746_v15 = vmul.f32 %v4722_v61, %v4521_v3  ;;  %v4748_v17 = vmul.f32 %v4724_v21, %v4610_v11  ;;  %v4523_v18 = vpop.f32.mrb[25].mxu0  ;;  %v4612_v62 = vpop.f32.mrb[17].mxu1  ;;  %v6669_v61 = vpack.c.bf16 %v4982_v7, %v4981_v41  ;;  %v6701_v41 = vpack.c.bf16 %v5014_v38, %v5013_v5  ;;  %v5015_v7 = vld [vmem:[%s11080_s14 + $0x110] sm:$0xff] }
 0xe1e   : > { %v4747_v42 = vmul.f32 %v4723_v0, %v4523_v18  ;;  %v4749_v59 = vmul.f32 %v4725_v20, %v4612_v62  ;;  %v4983_v0 = vld [vmem:[%s11080_s14 + $0x10] sm:$0xff]  ;;  %v4984_v20 = vld [vmem:[%s11080_s14 + $0x18] sm:$0xff]  ;;  %v7061_v62 = vmov 1.0  }
 0xe1f   : > { %v6645_v22 = vpack.c.bf16 %v4746_v15, %v4740_v12  ;;  %v6653_v31 = vpack.c.bf16 %v4748_v17, %v4742_v10  ;;  %v5001_v10 = vld [vmem:[%s11080_s14 + $0xa0] sm:$0xff]  ;;  %v5002_v15 = vld [vmem:[%s11080_s14 + $0xa8] sm:$0xff]  ;;  %v5043_v38 = vld [vmem:[%s11080_s14 + $0x1f0] sm:$0xff] }
 0xe20   : > { %v6643_v26 = vpack.c.bf16 %v4747_v42, %v4741_v63  ;;  %v6651_v27 = vpack.c.bf16 %v4749_v59, %v4743_v56  ;;  %v4527_v60 = vpop.f32.mrb[26].mxu0  ;;  %v4616_v6 = vpop.f32.mrb[18].mxu1  ;;  %v6673_v56 = vpack.c.bf16 %v4984_v20, %v4983_v0  ;;  %v5017_v20 = vld [vmem:[%s11080_s14 + $0x120] sm:$0xff] }
 0xe21   : > { %v4529_v35 = vpop.f32.mrb[27].mxu0  ;;  %v4618_v55 = vpop.f32.mrb[19].mxu1  ;;  %v4752_v58 = vmul.f32 %v4728_v53, %v4527_v60  ;;  %v4754_v14 = vmul.f32 %v4730_v28, %v4616_v6  ;;  %v5003_v60 = vld [vmem:[%s11080_s14 + $0xb0] sm:$0xff]  ;;  %v4732_v6 = vld [vmem:[%s11079_s13 + $0x80] sm:$0xff]  ;;  %v4733_v28 = vld [vmem:[%s11079_s13 + $0x88] sm:$0xff] }
 0xe22   : > { %6644 = vmatprep.subr.bf16.mxu1 %v6643_v26  ;;  %6652 = vmatprep.subr.bf16.mxu0 %v6651_v27  ;;  %v4753_v19 = vmul.f32 %v4729_v32, %v4529_v35  ;;  %v4755_v43 = vmul.f32 %v4731_v57, %v4618_v55  ;;  %v4986_v26 = vld [vmem:[%s11080_s14 + $0x28] sm:$0xff]  ;;  %v4738_v53 = vld [vmem:[%s11079_s13 + $0xb0] sm:$0xff]  ;;  %v4739_v35 = vld [vmem:[%s11079_s13 + $0xb8] sm:$0xff] }
 0xe23   : > { %6646 = vmatpush1.bf16.msra.mxu1 %v6645_v22  ;;  %6654 = vmatpush1.bf16.msra.mxu0 %v6653_v31  ;;  %v6675_v22 = vpack.c.bf16 %v5002_v15, %v5001_v10  ;;  %v4985_v31 = vld [vmem:[%s11080_s14 + $0x20] sm:$0xff]  ;;  %v4987_v57 = vld [vmem:[%s11080_s14 + $0x30] sm:$0xff] }
 0xe24   : > { %v4533_v23 = vpop.f32.mrb[28].mxu0  ;;  %v4622_v16 = vpop.f32.mrb[20].mxu1  ;;  %v6677_v55 = vpack.c.bf16 %v4986_v26, %v4985_v31  ;;  %v5035_v10 = vld [vmem:[%s11080_s14 + $0x1b0] sm:$0xff]  ;;  %v5020_v26 = vld [vmem:[%s11080_s14 + $0x138] sm:$0xff] }
 0xe25   : > { %v4758_v47 = vmul.f32 %v4734_v34, %v4533_v23  ;;  %v4760_v36 = vmul.f32 %v4736_v30, %v4622_v16  ;;  %v4535_v2 = vpop.f32.mrb[29].mxu0  ;;  %v4624_v39 = vpop.f32.mrb[21].mxu1  ;;  %v5029_v34 = vld [vmem:[%s11080_s14 + $0x180] sm:$0xff] }
 0xe26   : > { %v4759_v44 = vmul.f32 %v4735_v1, %v4535_v2  ;;  %v4761_v45 = vmul.f32 %v4737_v13, %v4624_v39  ;;  %v4988_v1 = vld [vmem:[%s11080_s14 + $0x38] sm:$0xff] }
 0xe27   : > { %v6649_v25 = vpack.c.bf16 %v4758_v47, %v4752_v58  ;;  %v6657_v51 = vpack.c.bf16 %v4760_v36, %v4754_v14  ;;  %v5030_v58 = vld [vmem:[%s11080_s14 + $0x188] sm:$0xff]  ;;  %v5005_v14 = vld [vmem:[%s11080_s14 + $0xc0] sm:$0xff] }
 0xe28   : > { %v6647_v29 = vpack.c.bf16 %v4759_v44, %v4753_v19  ;;  %v6655_v33 = vpack.c.bf16 %v4761_v45, %v4755_v43  ;;  %v4693_v37 = vpop.f32.mrb[30].mxu0  ;;  %v5006_v47 = vld [vmem:[%s11080_s14 + $0xc8] sm:$0xff]  ;;  %v6681_v19 = vpack.c.bf16 %v4988_v1, %v4987_v57  ;;  %v6699_v44 = vpack.c.bf16 %v5030_v58, %v5029_v34  ;;  %v5031_v45 = vld [vmem:[%s11080_s14 + $0x190] sm:$0xff]  ;;  %v5040_v57 = vld [vmem:[%s11080_s14 + $0x1d8] sm:$0xff] }
 0xe29   : > { %v4695_v48 = vpop.f32.mrb[31].mxu0  ;;  %v4744_v3 = vmul.f32 %v4720_v50, %v4693_v37  ;;  %v5007_v37 = vld [vmem:[%s11080_s14 + $0xd0] sm:$0xff]  ;;  %v5033_v50 = vld [vmem:[%s11080_s14 + $0x1a0] sm:$0xff]  ;;  %v5022_v34 = vld [vmem:[%s11080_s14 + $0x148] sm:$0xff] }
 0xe2a   : > { %6648 = vmatprep.subr.bf16.mxu1 %v6647_v29  ;;  %6656 = vmatprep.subr.bf16.mxu0 %v6655_v33  ;;  %v4745_v17 = vmul.f32 %v4721_v24, %v4695_v48  ;;  %v4990_v29 = vld [vmem:[%s11080_s14 + $0x48] sm:$0xff]  ;;  %v5032_v33 = vld [vmem:[%s11080_s14 + $0x198] sm:$0xff]  ;;  %v4991_v24 = vld [vmem:[%s11080_s14 + $0x50] sm:$0xff] }
 0xe2b   : > { %6650 = vmatpush1.bf16.msra.mxu1 %v6649_v25  ;;  %6658 = vmatpush1.bf16.msra.mxu0 %v6657_v51  ;;  %v6683_v25 = vpack.c.bf16 %v5006_v47, %v5005_v14  ;;  %v4989_v51 = vld [vmem:[%s11080_s14 + $0x40] sm:$0xff]  ;;  %v5016_v48 = vld [vmem:[%s11080_s14 + $0x118] sm:$0xff]  ;;  %v6703_v49 = vpack.c.bf16 %v5032_v33, %v5031_v45  ;;  %v5042_v14 = vld [vmem:[%s11080_s14 + $0x1e8] sm:$0xff] }
 0xe2c   : > { %v4699_v21 = vpop.f32.mrb[32].mxu0  ;;  %6668 = vmatprep.subr.bf16.mxu0 %v6667_v46  ;;  %v5008_v46 = vld [vmem:[%s11080_s14 + $0xd8] sm:$0xff]  ;;  %v6685_v54 = vpack.c.bf16 %v4990_v29, %v4989_v51  ;;  %v6705_v0 = vpack.c.bf16 %v5016_v48, %v5015_v7  ;;  %v5041_v58 = vld [vmem:[%s11080_s14 + $0x1e0] sm:$0xff]  ;;  %v5046_v29 = vld [vmem:[%s11080_s14 + $0x208] sm:$0xff] }
 0xe2d   : > { %v4750_v11 = vmul.f32 %v4726_v8, %v4699_v21  ;;  %v4701_v12 = vpop.f32.mrb[33].mxu0  ;;  %v6687_v8 = vpack.c.bf16 %v5008_v46, %v5007_v37  ;;  %v5009_v21 = vld [vmem:[%s11080_s14 + $0xe0] sm:$0xff]  ;;  %v5028_v45 = vld [vmem:[%s11080_s14 + $0x178] sm:$0xff]  ;;  %v5047_v48 = vld [vmem:[%s11080_s14 + $0x210] sm:$0xff] }
 0xe2e   : > { %v4751_v18 = vmul.f32 %v4727_v9, %v4701_v12  ;;  %5414 = vmatmul.mubr.msk.f32.vlgmr.msra.gmra.mrb[22].mxu1 %vm4764_vm5, %v7061_v62  ;;  %5415 = vmatmul.mubr.msk.f32.vlgmr.msra.gmra.mrb[38].mxu0 %vm4764_vm5, %v7061_v62  ;;  %v4992_v9 = vld [vmem:[%s11080_s14 + $0x58] sm:$0xff]  ;;  %v5045_v51 = vld [vmem:[%s11080_s14 + $0x200] sm:$0xff] }
 0xe2f   : > { %v6661_v63 = vpack.c.bf16 %v4750_v11, %v4744_v3  ;;  %4974 = vmatprep.mubr.f32.mxu1 %v7041_v4  ;;  %6670 = vmatpush3.bf16.msra.mxu0 %v6669_v61  ;;  %v5004_v4 = vld [vmem:[%s11080_s14 + $0xb8] sm:$0xff]  ;;  %v5034_v61 = vld [vmem:[%s11080_s14 + $0x1a8] sm:$0xff]  ;;  %v6689_v11 = vpack.c.bf16 %v4992_v9, %v4991_v24  ;;  %v6732_v37 = vpack.c.bf16 %v5046_v29, %v5045_v51  ;;  %v5051_v9 = vld [vmem:[%s11080_s14 + $0x230] sm:$0xff] }
 0xe30   : > { %v6659_v42 = vpack.c.bf16 %v4751_v18, %v4745_v17  ;;  %v4705_v59 = vpop.f32.mrb[34].mxu0  ;;  %6672 = vmatprep.subr.bf16.mxu0 %v6671_v52  ;;  %v6679_v30 = vpack.c.bf16 %v5004_v4, %v5003_v60  ;;  %v5010_v52 = vld [vmem:[%s11080_s14 + $0xe8] sm:$0xff]  ;;  %v6707_v12 = vpack.c.bf16 %v5034_v61, %v5033_v50  ;;  %v4993_v17 = vld [vmem:[%s11080_s14 + $0x60] sm:$0xff]  ;;  %v4995_v60 = vld [vmem:[%s11080_s14 + $0x70] sm:$0xff] }
 0xe31   : > { %v4707_v27 = vpop.f32.mrb[35].mxu0  ;;  %v4756_v13 = vmul.f32 %v4732_v6, %v4705_v59  ;;  %v5018_v3 = vld [vmem:[%s11080_s14 + $0x128] sm:$0xff]  ;;  %v6691_v15 = vpack.c.bf16 %v5010_v52, %v5009_v21  ;;  %v5019_v59 = vld [vmem:[%s11080_s14 + $0x130] sm:$0xff]  ;;  %v4996_v4 = vld [vmem:[%s11080_s14 + $0x78] sm:$0xff] }
 0xe32   : > { %6660 = vmatprep.subr.bf16.mxu1 %v6659_v42  ;;  %v4757_v36 = vmul.f32 %v4733_v28, %v4707_v27  ;;  %v4994_v18 = vld [vmem:[%s11080_s14 + $0x68] sm:$0xff]  ;;  %v6709_v42 = vpack.c.bf16 %v5018_v3, %v5017_v20  ;;  %v5037_v6 = vld [vmem:[%s11080_s14 + $0x1c0] sm:$0xff]  ;;  %v6713_v28 = vpack.c.bf16 %v5020_v26, %v5019_v59  ;;  %v5052_v61 = vld [vmem:[%s11080_s14 + $0x238] sm:$0xff] }
 0xe33   : > { %6662 = vmatpush1.bf16.msra.mxu1 %v6661_v63  ;;  %6674 = vmatpush3.bf16.msra.mxu0 %v6673_v56  ;;  %v5011_v63 = vld [vmem:[%s11080_s14 + $0xf0] sm:$0xff]  ;;  %v5012_v56 = vld [vmem:[%s11080_s14 + $0xf8] sm:$0xff]  ;;  %v5049_v50 = vld [vmem:[%s11080_s14 + $0x220] sm:$0xff]  ;;  %v6741_v21 = vpack.c.bf16 %v5052_v61, %v5051_v9 }
 0xe34   : > { %v4711_v32 = vpop.f32.mrb[36].mxu0  ;;  %6676 = vmatprep.subr.bf16.mxu0 %v6675_v22  ;;  %v6693_v22 = vpack.c.bf16 %v4994_v18, %v4993_v17  ;;  %v6695_v27 = vpack.c.bf16 %v5012_v56, %v5011_v63  ;;  %v5053_v52 = vld [vmem:[%s11080_s14 + $0x240] sm:$0xff]  ;;  %v5058_v18 = vld [vmem:[%s11080_s14 + $0x268] sm:$0xff]  ;;  %v5059_v63 = vld [vmem:[%s11080_s14 + $0x270] sm:$0xff] }
 0xe35   : > { %v4762_v23 = vmul.f32 %v4738_v53, %v4711_v32  ;;  %v4713_v16 = vpop.f32.mrb[37].mxu0  ;;  %v5038_v53 = vld [vmem:[%s11080_s14 + $0x1c8] sm:$0xff]  ;;  %v5021_v32 = vld [vmem:[%s11080_s14 + $0x140] sm:$0xff]  ;;  %v5060_v56 = vld [vmem:[%s11080_s14 + $0x278] sm:$0xff] }
 0xe36   : > { %v4763_v2 = vmul.f32 %v4739_v35, %v4713_v16  ;;  %v6697_v35 = vpack.c.bf16 %v4996_v4, %v4995_v60  ;;  %v6717_v1 = vpack.c.bf16 %v5022_v34, %v5021_v32  ;;  %v5024_v16 = vld [vmem:[%s11080_s14 + $0x158] sm:$0xff]  ;;  %v5057_v17 = vld [vmem:[%s11080_s14 + $0x260] sm:$0xff]  ;;  %v5063_v26 = vld [vmem:[%s11080_s14 + $0x290] sm:$0xff] }
 0xe37   : > { %v6665_v39 = vpack.c.bf16 %v4762_v23, %v4756_v13  ;;  %6678 = vmatpush3.bf16.msra.mxu0 %v6677_v55  ;;  %v6715_v55 = vpack.c.bf16 %v5038_v53, %v5037_v6  ;;  %v5023_v23 = vld [vmem:[%s11080_s14 + $0x150] sm:$0xff]  ;;  %v5061_v59 = vld [vmem:[%s11080_s14 + $0x280] sm:$0xff] }
 0xe38   : > { %v6663_v43 = vpack.c.bf16 %v4763_v2, %v4757_v36  ;;  %6680 = vmatprep.subr.bf16.mxu0 %v6679_v30  ;;  %v5039_v30 = vld [vmem:[%s11080_s14 + $0x1d0] sm:$0xff]  ;;  %v6721_v47 = vpack.c.bf16 %v5024_v16, %v5023_v23  ;;  %v6723_v36 = vpack.c.bf16 %v5042_v14, %v5041_v58  ;;  %v5025_v2 = vld [vmem:[%s11080_s14 + $0x160] sm:$0xff] }
 0xe39   : > { %v6719_v13 = vpack.c.bf16 %v5040_v57, %v5039_v30  ;;  %v5065_v53 = vld [vmem:[%s11081_s15] sm:$0x1] }
 0xe3a   : > { %6664 = vmatprep.subr.bf16.mxu1 %v6663_v43 }
 0xe3b   : > { %6666 = vmatpush1.bf16.msra.mxu1 %v6665_v39  ;;  %6682 = vmatpush3.bf16.msra.mxu0 %v6681_v19  ;;  %v5026_v39 = vld [vmem:[%s11080_s14 + $0x168] sm:$0xff]  ;;  %v5044_v19 = vld [vmem:[%s11080_s14 + $0x1f8] sm:$0xff] }
 0xe3c   : > { %6700 = vmatprep.subr.bf16.mxu1 %v6699_v44  ;;  %6684 = vmatprep.subr.bf16.mxu0 %v6683_v25  ;;  %v6725_v5 = vpack.c.bf16 %v5026_v39, %v5025_v2  ;;  %v6727_v43 = vpack.c.bf16 %v5044_v19, %v5043_v38  ;;  %v5027_v44 = vld [vmem:[%s11080_s14 + $0x170] sm:$0xff] }
 0xe3d   : > { %v6729_v25 = vpack.c.bf16 %v5028_v45, %v5027_v44 }
 0xe3e   : > { %5416 = vmatmul.mubr.msk.f32.vlgmr.msra.gmra.mrb[24].mxu1 %vm4764_vm5, %v7061_v62  ;;  %v5036_v62 = vld [vmem:[%s11080_s14 + $0x1b8] sm:$0xff] }
 0xe3f   : > { %6702 = vmatpush3.bf16.msra.mxu1 %v6701_v41  ;;  %6686 = vmatpush3.bf16.msra.mxu0 %v6685_v54  ;;  %v6711_v31 = vpack.c.bf16 %v5036_v62, %v5035_v10  ;;  %v5048_v54 = vld [vmem:[%s11080_s14 + $0x218] sm:$0xff]  ;;  %v6750_v62 = vpack.c.bf16 %v5058_v18, %v5057_v17 }
 0xe40   : > { %6704 = vmatprep.subr.bf16.mxu1 %v6703_v49  ;;  %6688 = vmatprep.subr.bf16.mxu0 %v6687_v8  ;;  %v6735_v49 = vpack.c.bf16 %v5048_v54, %v5047_v48  ;;  %v5050_v8 = vld [vmem:[%s11080_s14 + $0x228] sm:$0xff] }
 0xe41   : > { %v6738_v24 = vpack.c.bf16 %v5050_v8, %v5049_v50 }
 0xe43   : > { %6706 = vmatpush3.bf16.msra.mxu1 %v6705_v0  ;;  %6690 = vmatpush3.bf16.msra.mxu0 %v6689_v11  ;;  %v5054_v0 = vld [vmem:[%s11080_s14 + $0x248] sm:$0xff]  ;;  %v5055_v11 = vld [vmem:[%s11080_s14 + $0x250] sm:$0xff] }
 0xe44   : > { %6708 = vmatprep.subr.bf16.mxu1 %v6707_v12  ;;  %6692 = vmatprep.subr.bf16.mxu0 %v6691_v15  ;;  %v6744_v20 = vpack.c.bf16 %v5054_v0, %v5053_v52  ;;  %v5056_v12 = vld [vmem:[%s11080_s14 + $0x258] sm:$0xff] }
 0xe45   : > { %v6747_v15 = vpack.c.bf16 %v5056_v12, %v5055_v11 }
 0xe47   : > { %6710 = vmatpush3.bf16.msra.mxu1 %v6709_v42  ;;  %6694 = vmatpush3.bf16.msra.mxu0 %v6693_v22  ;;  %v6753_v42 = vpack.c.bf16 %v5060_v56, %v5059_v63  ;;  %v5062_v22 = vld [vmem:[%s11080_s14 + $0x288] sm:$0xff] }
 0xe48   : > { %6712 = vmatprep.subr.bf16.mxu1 %v6711_v31  ;;  %6696 = vmatprep.subr.bf16.mxu0 %v6695_v27  ;;  %v6756_v31 = vpack.c.bf16 %v5062_v22, %v5061_v59  ;;  %v5064_v27 = vld [vmem:[%s11080_s14 + $0x298] sm:$0xff] }
 0xe49   : > { %v6759_v60 = vpack.c.bf16 %v5064_v27, %v5063_v26 }
 0xe4b   : > { %6714 = vmatpush3.bf16.msra.mxu1 %v6713_v28  ;;  %6698 = vmatpush3.bf16.msra.mxu0 %v6697_v35 }
 0xe4c   : > { %6716 = vmatprep.subr.bf16.mxu1 %v6715_v55  ;;  %6731 = vmatprep.subr.bf16.mxu0 %v7044_v40 }
 0xe4f   : > { %6718 = vmatpush3.bf16.msra.mxu1 %v6717_v1 }
 0xe50   : > { %6720 = vmatprep.subr.bf16.mxu1 %v6719_v13 }
 0xe53   : > { %6722 = vmatpush3.bf16.msra.mxu1 %v6721_v47 }
 0xe54   : > { %6724 = vmatprep.subr.bf16.mxu1 %v6723_v36 }
 0xe57   : > { %6726 = vmatpush3.bf16.msra.mxu1 %v6725_v5 }
 0xe58   : > { %6728 = vmatprep.subr.bf16.mxu1 %v6727_v43 }
 0xe5b   : > { %6730 = vmatpush3.bf16.msra.mxu1 %v6729_v25 }
 0xf01   : > { %v4834_v33 = vpop.f32.mrb[22].mxu1  ;;  %v4905_v46 = vpop.f32.mrb[38].mxu0 }
 0xf02   : > { %v4836_v41 = vpop.f32.mrb[23].mxu1  ;;  %v4907_v7 = vpop.f32.mrb[39].mxu0 }
 0xf03   : > { %5133 = vmatprep.mubr.f32.mxu0 %v4836_v41  ;;  %5203 = vmatprep.mubr.f32.mxu1 %v4907_v7 }
 0xf04   : > { %5134 = vmatmul.mubr.f32.vlgmr.msra.gmra.mrb[40].mxu0 %v4834_v33  ;;  %5204 = vmatmul.mubr.f32.vlgmr.msra.gmra.mrb[26].mxu1 %v4905_v46 }
 0xf05   : > { %6733 = vmatpush1.bf16.msra.mxu0 %v6732_v37 }
 0xf06   : > { %6734 = vmatprep.subr.bf16.mxu0 %v7044_v40 }
 0xf09   : > { %6736 = vmatpush1.bf16.msra.mxu0 %v6735_v49 }
 0xf0a   : > { %6737 = vmatprep.subr.bf16.mxu0 %v7044_v40 }
 0xf0d   : > { %6739 = vmatpush1.bf16.msra.mxu0 %v6738_v24 }
 0xf0e   : > { %6740 = vmatprep.subr.bf16.mxu0 %v7044_v40 }
 0xf11   : > { %6742 = vmatpush1.bf16.msra.mxu0 %v6741_v21  ;;  %v4976_v3 = vpop.f32.mrb[24].mxu1 }
 0xf12   : > { %6743 = vmatprep.subr.bf16.mxu0 %v7044_v40  ;;  %v4978_v10 = vpop.f32.mrb[25].mxu1 }
 0xf13   : > { %5417 = vmatprep.mubr.msk.f32.mxu0 %vm4764_vm5, %v4978_v10 }
 0xf15   : > { %6745 = vmatpush1.bf16.msra.mxu0 %v6744_v20 }
 0xf16   : > { %6746 = vmatprep.subr.bf16.mxu0 %v7044_v40 }
 0xf19   : > { %6748 = vmatpush1.bf16.msra.mxu0 %v6747_v15 }
 0xf1a   : > { %6749 = vmatprep.subr.bf16.mxu0 %v7044_v40 }
 0xf1d   : > { %6751 = vmatpush1.bf16.msra.mxu0 %v6750_v62 }
 0xf1e   : > { %6752 = vmatprep.subr.bf16.mxu0 %v7044_v40 }
 0xf21   : > { %6754 = vmatpush1.bf16.msra.mxu0 %v6753_v42 }
 0xf22   : > { %6755 = vmatprep.subr.bf16.mxu0 %v7044_v40 }
 0xf25   : > { %6757 = vmatpush1.bf16.msra.mxu0 %v6756_v31 }
 0xf26   : > { %6758 = vmatprep.subr.bf16.mxu0 %v7044_v40 }
 0xf29   : > { %6760 = vmatpush1.bf16.msra.mxu0 %v6759_v60 }
 0xf2c   : > { %5274 = vmatmul.mubr.f32.vlgmr.msra.gmra.mrb[42].mxu0 %v4976_v3 }
 0xfd7   : > { %v5483_v4 = vpop.f32.mrb[40].mxu0  ;;  %v5518_v6 = vpop.f32.mrb[26].mxu1 }
 0xfd8   : > { %v5484_v28 = vpop.f32.mrb[41].mxu0  ;;  %v5519_v35 = vpop.f32.mrb[27].mxu1 }
 0xfd9   : > { %v5485_v55 = vadd.f32 %v5484_v28, %v5483_v4  ;;  %v5520_v32 = vadd.f32 %v5519_v35, %v5518_v6 }
 0xfdb   : > { %v5136_v34 = vadd.f32 %v5485_v55, %v5065_v53 }
 0xfdd   : > { %v5206_v30 = vadd.f32 %v5520_v32, %v5136_v34 }
 0xfff   : > { %v5275_v40 = vpop.f32.mrb[42].mxu0 }
0x1000   : > { %v5276_v57 = vadd.f32 %v5275_v40, %v5206_v30  ;;  %v5277_v1 = vpop.f32.mrb[43].mxu0 }
0x1002   : > { %5279 = vst [vmem:[%s511_s21] sm:$0x1] %v5276_v57 }
0x1003   : > { %6982 = shalt.err (!%p6979_p3)
}
0x1004   : > { %s6983_s19 = scalar_lea.hbm %s11024_s30, 16  ;;  %s6987_s27 = scalar_lea.hbm %s11082_s16, 32 }
0x1005   : > { %p6984_p4 = scmp.ne.s32.totalorder %s11024_s30, %s6983_s19  ;;  %p6988_p9 = scmp.lt.u32.totalorder %s11024_s30, %s11082_s16 }
0x1006   : > { %p6989_p10 = scmp.lt.u32.totalorder %s6987_s27, %s6983_s19  ;;  %p6991_p12 = scmp.lt.u32.totalorder %s6983_s19, %s11024_s30 }
0x1007   : > { %p6985_p7 = pnand %p6984_p4, %p7186_p5 }
0x1008   : > { %p6990_p11 = por %p6989_p10, %p6988_p9 }
0x1009   : > { %p6986_p8 = pneg %p6985_p7 }
0x100a   : > { %p6992_p13 = por %p6991_p12, %p6990_p11 }
0x100c   : > { %p6993_p0 = pnand %p6992_p13, %p6986_p8 }
0x100e   : > { %6996 = shalt.err (!%p6993_p0)
}
0x100f   : > { %6788 = dma.vmem_to_hbm [thread:$0]  (%p7186_p5), %s11026_s28, 16, %s11024_s30, %s5281_s26  }
0x1010 PF: > { %s11125_s23 = sld [smem:[#allocation9_spill]]  ;;  %p6794_p1 = scmp.ge.s32.totalorder %s7031_s24, 2 }
0x1012   : > { %p6791_p2 = pnand %p6794_p1, %p7190_p6 }
0x1016   : > { %s5305_s25 = sand.u32 1, %s11125_s23  }
0x1017   : > { %s5306_s1 = scalar_lea.sflag [#allocation7], %s5305_s25 }
0x1018   : > { %7014 = dma.done.wait (!%p6791_p2), %s5306_s1, 16  }
0x1019   : > { %7016 = vsyncadd (!%p6791_p2), %s5306_s1, 4294967280  ;;  %s11127_s24 = sld [smem:[#allocation11_spill]]  ;;  %s11128_s18 = sld [smem:[#allocation10_spill]] }
0x101a   : > { %s11129_s23 = sld [smem:[#allocation12_spill]]  ;;  %s11130_s21 = smov %s7023_s22 }
0x101f   : > { %p26_p3 = scmp.ge.s32.totalorder %s11127_s24, 4   ;;  %s11131_s22 = smov %s11128_s18 }
0x1021   :  { %28 = sbr.rel (!%p26_p3) target bundleno = 7 (0x7), region = 136 }
0x1028   :  { %5310 = vsyncpa [#allocation7], 1 }
0x1029   :  { %5312 = vsyncpa [#allocation7 + $0x1], 1 }

</bundles_post_ra>
